<compile_context>
chip_gen: v5e
topology: v5e:2x2
jax: 0.10.0
libtpu: 0.0.40
codegen_flags: <defaults>
</compile_context>

<pallas_src>
import jax
import jax.numpy as jnp
from jax import lax
from jax.experimental import pallas as pl
from jax.experimental.pallas import tpu as pltpu


def _default_vmem_limit():
    # ~half of physical VMEM, capped; falls back to a safe constant if the
    # hardware query is unavailable (e.g. CPU interpret mode).
    try:
        cap = pltpu.get_tpu_info().vmem_capacity_bytes
    except Exception:
        cap = 64 * 1024 * 1024
    return min(cap // 2, 100 * 1024 * 1024)


_VMEM_LIMIT = _default_vmem_limit()


def _round_up(n, m):
    return ((n + m - 1) // m) * m


def _pad_to(a, shape):
    return jnp.pad(a, [(0, s - d) for d, s in zip(a.shape, shape)])


# ----------------------------------------------------------------------------
# Fused GRU layer kernel: per grid step, project TT timesteps of input through
# the fused (Kp, 3Hp) input weights, then run TT unrolled recurrence steps
# with a single (Hp, 3Hp) recurrent matmul per step.  Hidden state is carried
# in VMEM scratch across grid steps; gate math is f32.
# ----------------------------------------------------------------------------
def _gru_layer_kernel(x_ref, wx_ref, bx_ref, whh_ref, bhn_ref,
                      hseq_ref, h_scratch, xp_scratch):
    tb = pl.program_id(0)

    @pl.when(tb == 0)
    def _():
        h_scratch[...] = jnp.zeros_like(h_scratch)

    TT, B, Kp = x_ref.shape
    Hp = h_scratch.shape[-1]

    # --- input projection for this TT-block: one (TT*B, Kp) x (Kp, 3Hp) matmul
    x = x_ref[...].reshape(TT * B, Kp).astype(wx_ref.dtype)
    xp = jnp.dot(x, wx_ref[...], preferred_element_type=jnp.float32) + bx_ref[...]
    xp_scratch[...] = xp.reshape(TT, B, 3 * Hp)

    # --- hoisted loop invariants (avoid per-iteration broadcast / reload)
    whh = whh_ref[...]
    bhn = jnp.broadcast_to(bhn_ref[...], (B, Hp))

    def step(i, h):
        # single fused recurrent matmul, gates [r | z | n] at 128-aligned lanes
        gh = jnp.dot(h.astype(whh.dtype), whh,
                     preferred_element_type=jnp.float32)          # (B, 3Hp)
        gx = xp_scratch[i]                                        # (B, 3Hp)
        r = jax.nn.sigmoid(gx[:, :Hp] + gh[:, :Hp])
        z = jax.nn.sigmoid(gx[:, Hp:2 * Hp] + gh[:, Hp:2 * Hp])
        n = jnp.tanh(gx[:, 2 * Hp:] + r * (gh[:, 2 * Hp:] + bhn))
        h_new = (1.0 - z) * n + z * h
        hseq_ref[i] = h_new.astype(hseq_ref.dtype)
        return h_new

    h_scratch[...] = lax.fori_loop(0, TT, step, h_scratch[...], unroll=True)


def gru_layer(x_t, w_x, b_x, w_hh, b_hn, out_dtype):
    """x_t: (T, B, Kp) time-major input, w_x: (Kp, 3Hp), b_x: (1, 3Hp),
    w_hh: (Hp, 3Hp), b_hn: (1, Hp) -> hidden sequence (T, B, Hp) in out_dtype."""
    T, B, Kp = x_t.shape
    Hp = w_hh.shape[0]

    # Multi-timestep blocks: amortize grid overhead, keep projection scratch
    # small ( <= ~8 MiB ).
    budget = 8 * 1024 * 1024
    TT = 1
    for cand in (64, 32, 16, 8, 4, 2, 1):
        if T % cand == 0 and cand * B * 3 * Hp * 4 <= budget:
            TT = cand
            break

    return pl.pallas_call(
        _gru_layer_kernel,
        out_shape=jax.ShapeDtypeStruct((T, B, Hp), out_dtype),
        grid=(T // TT,),
        in_specs=[
            pl.BlockSpec((TT, B, Kp), lambda t: (t, 0, 0)),
            pl.BlockSpec((Kp, 3 * Hp), lambda t: (0, 0)),
            pl.BlockSpec((1, 3 * Hp), lambda t: (0, 0)),
            pl.BlockSpec((Hp, 3 * Hp), lambda t: (0, 0)),
            pl.BlockSpec((1, Hp), lambda t: (0, 0)),
        ],
        out_specs=pl.BlockSpec((TT, B, Hp), lambda t: (t, 0, 0)),
        scratch_shapes=[
            pltpu.VMEM((B, Hp), jnp.float32),          # h carry
            pltpu.VMEM((TT, B, 3 * Hp), jnp.float32),  # projected gates
        ],
        compiler_params=pltpu.CompilerParams(
            dimension_semantics=("arbitrary",),
            vmem_limit_bytes=_VMEM_LIMIT,
        ),
    )(x_t, w_x, b_x, w_hh, b_hn)


# ----------------------------------------------------------------------------
# Generic tiled matmul + bias (final embedding Linear), lane-dense output.
# ----------------------------------------------------------------------------
def _matmul_bias_kernel(x_ref, w_ref, b_ref, o_ref):
    x = x_ref[...].astype(w_ref.dtype)
    o_ref[...] = (
        jnp.dot(x, w_ref[...], preferred_element_type=jnp.float32) + b_ref[...]
    ).astype(o_ref.dtype)


def matmul_bias(x, w, b, tm=512):
    """x: (M, K), w: (K, N), b: (1, N) -> (M, N) f32."""
    M, K = x.shape
    N = w.shape[1]
    tm = min(tm, M)
    return pl.pallas_call(
        _matmul_bias_kernel,
        out_shape=jax.ShapeDtypeStruct((M, N), jnp.float32),
        grid=(pl.cdiv(M, tm),),
        in_specs=[
            pl.BlockSpec((tm, K), lambda m: (m, 0)),
            pl.BlockSpec((K, N), lambda m: (0, 0)),
            pl.BlockSpec((1, N), lambda m: (0, 0)),
        ],
        out_specs=pl.BlockSpec((tm, N), lambda m: (m, 0)),
        compiler_params=pltpu.CompilerParams(
            dimension_semantics=("parallel",),
            vmem_limit_bytes=_VMEM_LIMIT,
        ),
    )(x, w, b)


# ----------------------------------------------------------------------------
# Parameter preparation: transpose / gate-concatenate / pad / (optionally)
# bf16-cast the torch-layout weights ONCE.  The r/z parts of b_hh are folded
# into the projection bias; only b_hn remains in the per-timestep loop.
# Gate layout along the fused 3*Hp axis is PyTorch order [r | z | n], each
# gate zero-padded to Hp (padded lanes of h provably stay 0).
# ----------------------------------------------------------------------------
def prepare_params(p, hidden, class_num, use_bf16=False):
    H = hidden
    Hp = _round_up(H, 128)
    Cp = _round_up(class_num, 128)
    mm_dtype = jnp.bfloat16 if use_bf16 else jnp.float32
    rz_mask = jnp.array([1.0, 1.0, 0.0], jnp.float32).reshape(3, 1)

    def prep_layer(w_ih, w_hh, b_ih, b_hh):
        in_dim = w_ih.shape[1]
        Kp = _round_up(in_dim, 128)
        # input weights: (3H, in) -> (3, in, H) -> pad (3, Kp, Hp) -> (Kp, 3Hp)
        w_x = jnp.transpose(w_ih.reshape(3, H, in_dim), (0, 2, 1))
        w_x = _pad_to(w_x, (3, Kp, Hp))
        w_x = jnp.transpose(w_x, (1, 0, 2)).reshape(Kp, 3 * Hp).astype(mm_dtype)
        # projection bias with r/z parts of b_hh folded in: (1, 3Hp)
        b_x = _pad_to(b_ih.reshape(3, H) + b_hh.reshape(3, H) * rz_mask,
                      (3, Hp)).reshape(1, 3 * Hp)
        # recurrent weights: (3H, H) -> (3, H, H) -> pad (3, Hp, Hp) -> (Hp, 3Hp)
        w_h = jnp.transpose(w_hh.reshape(3, H, H), (0, 2, 1))
        w_h = _pad_to(w_h, (3, Hp, Hp))
        w_h = jnp.transpose(w_h, (1, 0, 2)).reshape(Hp, 3 * Hp).astype(mm_dtype)
        b_hn = _pad_to(b_hh[2 * H:3 * H], (Hp,)).reshape(1, Hp)
        return w_x, b_x, w_h, b_hn

    kp = {}
    kp["w_x0"], kp["b_x0"], kp["w_h0"], kp["b_hn0"] = prep_layer(
        p["w_ih_l0"], p["w_hh_l0"], p["b_ih_l0"], p["b_hh_l0"])
    kp["w_x1"], kp["b_x1"], kp["w_h1"], kp["b_hn1"] = prep_layer(
        p["w_ih_l1"], p["w_hh_l1"], p["b_ih_l1"], p["b_hh_l1"])
    kp["w_e"] = _pad_to(p["w_emb"].T, (Hp, Cp)).astype(mm_dtype)
    kp["b_e"] = _pad_to(p["b_emb"], (Cp,)).reshape(1, Cp)
    return kp


# ----------------------------------------------------------------------------
# Full module forward: 2-layer GRU + Linear over every timestep
# ----------------------------------------------------------------------------
def rnn_forward(x, kp, class_num):
    B, T, D = x.shape
    Hp = kp["w_h0"].shape[0]
    Cp = kp["w_e"].shape[1]
    mm_dtype = kp["w_x0"].dtype
    Kp0 = kp["w_x0"].shape[0]

    # single transpose in; stay time-major for both layers + final Linear
    xt = jnp.transpose(x, (1, 0, 2)).astype(mm_dtype)                # (T, B, D)
    if D != Kp0:
        xt = jnp.pad(xt, ((0, 0), (0, 0), (0, Kp0 - D)))

    # layer 0 (projection fused into the recurrent kernel)
    h0 = gru_layer(xt, kp["w_x0"], kp["b_x0"], kp["w_h0"], kp["b_hn0"],
                   mm_dtype)                                          # (T, B, Hp)

    # TODO(synk): nn.GRU inter-layer dropout (p=0.5) is train-mode only; this
    # is the eval-mode forward where dropout is the identity.

    # layer 1
    h1 = gru_layer(h0, kp["w_x1"], kp["b_x1"], kp["w_h1"], kp["b_hn1"],
                   mm_dtype)                                          # (T, B, Hp)

    # final embedding Linear (lane-dense Cp output, sliced back below)
    y = matmul_bias(h1.reshape(T * B, Hp), kp["w_e"], kp["b_e"])
    y = y.reshape(T, B, Cp)[:, :, :class_num]
    return jnp.transpose(y, (1, 0, 2))                                # single transpose out


# ----------------------------------------------------------------------------
# Pure-JAX reference (PyTorch semantics, f32) for correctness check
# ----------------------------------------------------------------------------
def _gru_layer_ref(x, w_ih, w_hh, b_ih, b_hh):
    B, T, _ = x.shape
    H = w_hh.shape[1]

    def step(h, xt):
        gx = xt @ w_ih.T + b_ih
        gh = h @ w_hh.T + b_hh
        r = jax.nn.sigmoid(gx[:, :H] + gh[:, :H])
        z = jax.nn.sigmoid(gx[:, H:2 * H] + gh[:, H:2 * H])
        n = jnp.tanh(gx[:, 2 * H:] + r * gh[:, 2 * H:])
        h_new = (1.0 - z) * n + z * h
        return h_new, h_new

    _, hs = jax.lax.scan(step, jnp.zeros((B, H), jnp.float32),
                         jnp.swapaxes(x, 0, 1))
    return jnp.swapaxes(hs, 0, 1)


def rnn_ref(x, p):
    h = _gru_layer_ref(x, p["w_ih_l0"], p["w_hh_l0"], p["b_ih_l0"], p["b_hh_l0"])
    h = _gru_layer_ref(h, p["w_ih_l1"], p["w_hh_l1"], p["b_ih_l1"], p["b_hh_l1"])
    return h @ p["w_emb"].T + p["b_emb"]


# ----------------------------------------------------------------------------
# Deterministic parameter init (PyTorch-style uniform(-1/sqrt(H), 1/sqrt(H)))
# ----------------------------------------------------------------------------
def init_params(key, input_size, hidden, class_num):
    k = 1.0 / jnp.sqrt(hidden)
    params = {}
    shapes = {
        "w_ih_l0": (3 * hidden, input_size),
        "w_hh_l0": (3 * hidden, hidden),
        "b_ih_l0": (3 * hidden,),
        "b_hh_l0": (3 * hidden,),
        "w_ih_l1": (3 * hidden, hidden),
        "w_hh_l1": (3 * hidden, hidden),
        "b_ih_l1": (3 * hidden,),
        "b_hh_l1": (3 * hidden,),
        "w_emb": (class_num, hidden),
        "b_emb": (class_num,),
    }
    for name, shape in shapes.items():
        key, sub = jax.random.split(key)
        params[name] = jax.random.uniform(
            sub, shape, jnp.float32, minval=-k, maxval=k)
    return params


if __name__ == "__main__":
    B, T, D_IN = 2, 8, 512       # GRU input size is fixed at 512 by the module
    HIDDEN, CLASS_NUM = 32, 10

    key = jax.random.PRNGKey(0)
    key, kx = jax.random.split(key)
    x = jax.random.normal(kx, (B, T, D_IN), jnp.float32)
    params = init_params(key, D_IN, HIDDEN, CLASS_NUM)

    ref = rnn_ref(x, params)
    fwd = jax.jit(rnn_forward, static_argnums=(2,))

    # f32 matmul-operand path: strict check vs the PyTorch-semantics reference
    kp_f32 = prepare_params(params, HIDDEN, CLASS_NUM, use_bf16=False)
    out = jax.block_until_ready(fwd(x, kp_f32, CLASS_NUM))
    assert out.shape == (B, T, CLASS_NUM), out.shape
    assert jnp.allclose(out, ref, atol=2e-3, rtol=2e-3), (
        float(jnp.max(jnp.abs(out - ref))))

    # bf16 matmul-operand path (bf16 weights AND bf16 inter-layer hidden
    # sequences; gate math / h carry stay f32) -> looser tolerance
    kp_bf16 = prepare_params(params, HIDDEN, CLASS_NUM, use_bf16=True)
    out_bf = jax.block_until_ready(fwd(x, kp_bf16, CLASS_NUM))
    assert out_bf.shape == (B, T, CLASS_NUM), out_bf.shape
    assert jnp.allclose(out_bf, ref, atol=1e-1, rtol=1e-1), (
        float(jnp.max(jnp.abs(out_bf - ref))))

    print("KERNEL_OK")
</pallas_src>

<mosaic_0001>
module attributes {stable_mosaic.version = 11 : i64} {
  func.func @_matmul_bias_kernel(%arg0: i32, %arg1: memref<16x128xf32, #tpu.memory_space<vmem>>, %arg2: memref<128x128xf32, #tpu.memory_space<vmem>>, %arg3: memref<1x128xf32, #tpu.memory_space<vmem>>, %arg4: memref<16x128xf32, #tpu.memory_space<vmem>>) attributes {dimension_semantics = [#tpu.dimension_semantics<parallel>], iteration_bounds = array<i64: 1>, scalar_prefetch = 0 : i64, scratch_operands = 0 : i64, tpu.core_type = #tpu.core_type<tc>, window_params = [{transform_indices = @transform_0, window_bounds = array<i64: 16, 128>}, {pipeline_mode = #tpu.pipeline_mode<synchronous>, transform_indices = @transform_1, window_bounds = array<i64: 128, 128>}, {pipeline_mode = #tpu.pipeline_mode<synchronous>, transform_indices = @transform_2, window_bounds = array<i64: 1, 128>}, {transform_indices = @transform_3, window_bounds = array<i64: 16, 128>}]} {
    %c0 = arith.constant 0 : index
    %c0_0 = arith.constant 0 : index
    %0 = vector.load %arg1[%c0, %c0_0] : memref<16x128xf32, #tpu.memory_space<vmem>>, vector<16x128xf32>
    %c0_1 = arith.constant 0 : index
    %c0_2 = arith.constant 0 : index
    %1 = vector.load %arg2[%c0_1, %c0_2] : memref<128x128xf32, #tpu.memory_space<vmem>>, vector<128x128xf32>
    %cst = arith.constant dense<0.000000e+00> : vector<16x128xf32>
    %2 = tpu.matmul %0, %1, %cst {dimension_numbers = #tpu.dot_dimension_numbers<[1], [0], [0], [1], [0, 0, 1, 1], [], []>} : vector<16x128xf32>, vector<128x128xf32>, vector<16x128xf32> -> vector<16x128xf32>
    %c0_3 = arith.constant 0 : index
    %c0_4 = arith.constant 0 : index
    %3 = vector.load %arg3[%c0_3, %c0_4] : memref<1x128xf32, #tpu.memory_space<vmem>>, vector<1x128xf32>
    %4 = vector.broadcast %3 : vector<1x128xf32> to vector<16x128xf32>
    %5 = arith.addf %2, %4 : vector<16x128xf32>
    %c0_5 = arith.constant 0 : index
    %c0_6 = arith.constant 0 : index
    %6 = vector.load %arg4[%c0_5, %c0_6] : memref<16x128xf32, #tpu.memory_space<vmem>>, vector<16x128xf32>
    tpu.vector_store %arg4[%c0_5, %c0_6], %5 {strides = array<i32>} : memref<16x128xf32, #tpu.memory_space<vmem>>, vector<16x128xf32>,
    return
  }
  func.func @transform_0(%arg0: i32) -> (i32, i32) {
    %c0_i32 = arith.constant 0 : i32
    %c0_i32_0 = arith.constant 0 : i32
    return %arg0, %c0_i32 : i32, i32
  }
  func.func @transform_1(%arg0: i32) -> (i32, i32) {
    %c0_i32 = arith.constant 0 : i32
    %c0_i32_0 = arith.constant 0 : i32
    %c0_i32_1 = arith.constant 0 : i32
    return %c0_i32, %c0_i32_0 : i32, i32
  }
  func.func @transform_2(%arg0: i32) -> (i32, i32) {
    %c0_i32 = arith.constant 0 : i32
    %c0_i32_0 = arith.constant 0 : i32
    %c0_i32_1 = arith.constant 0 : i32
    return %c0_i32, %c0_i32_0 : i32, i32
  }
  func.func @transform_3(%arg0: i32) -> (i32, i32) {
    %c0_i32 = arith.constant 0 : i32
    %c0_i32_0 = arith.constant 0 : i32
    return %arg0, %c0_i32 : i32, i32
  }
}

module attributes {stable_mosaic.version = 11 : i64} {
  func.func @_gru_layer_kernel(%arg0: i32, %arg1: memref<8x2x512xf32, #tpu.memory_space<vmem>>, %arg2: memref<512x384xf32, #tpu.memory_space<vmem>>, %arg3: memref<1x384xf32, #tpu.memory_space<vmem>>, %arg4: memref<128x384xf32, #tpu.memory_space<vmem>>, %arg5: memref<1x128xf32, #tpu.memory_space<vmem>>, %arg6: memref<8x2x128xf32, #tpu.memory_space<vmem>>, %arg7: memref<2x128xf32, #tpu.memory_space<vmem>>, %arg8: memref<8x2x384xf32, #tpu.memory_space<vmem>>) attributes {dimension_semantics = [#tpu.dimension_semantics<arbitrary>], iteration_bounds = array<i64: 1>, scalar_prefetch = 0 : i64, scratch_operands = 2 : i64, tpu.core_type = #tpu.core_type<tc>, window_params = [{transform_indices = @transform_0, window_bounds = array<i64: 8, 2, 512>}, {pipeline_mode = #tpu.pipeline_mode<synchronous>, transform_indices = @transform_1, window_bounds = array<i64: 512, 384>}, {pipeline_mode = #tpu.pipeline_mode<synchronous>, transform_indices = @transform_2, window_bounds = array<i64: 1, 384>}, {pipeline_mode = #tpu.pipeline_mode<synchronous>, transform_indices = @transform_3, window_bounds = array<i64: 128, 384>}, {pipeline_mode = #tpu.pipeline_mode<synchronous>, transform_indices = @transform_4, window_bounds = array<i64: 1, 128>}, {transform_indices = @transform_5, window_bounds = array<i64: 8, 2, 128>}]} {
    %c0_i32 = arith.constant 0 : i32
    %0 = arith.cmpi eq, %arg0, %c0_i32 : i32
    %1 = arith.extui %0 : i1 to i32
    %c0_i32_0 = arith.constant 0 : i32
    %2 = arith.cmpi ne, %1, %c0_i32_0 : i32
    scf.if %2 {
      %cst_83 = arith.constant 0.000000e+00 : f32
      %298 = vector.broadcast %cst_83 : f32 to vector<2x128xf32>
      %c0_84 = arith.constant 0 : index
      %c0_85 = arith.constant 0 : index
      %299 = vector.load %arg7[%c0_84, %c0_85] : memref<2x128xf32, #tpu.memory_space<vmem>>, vector<2x128xf32>
      tpu.vector_store %arg7[%c0_84, %c0_85], %298 {strides = array<i32>} : memref<2x128xf32, #tpu.memory_space<vmem>>, vector<2x128xf32>,
    } else {
    }
    %c0 = arith.constant 0 : index
    %c0_1 = arith.constant 0 : index
    %c0_2 = arith.constant 0 : index
    %3 = vector.load %arg1[%c0, %c0_1, %c0_2] : memref<8x2x512xf32, #tpu.memory_space<vmem>>, vector<8x2x512xf32>
    %4 = vector.shape_cast %3 : vector<8x2x512xf32> to vector<16x512xf32>
    %c0_3 = arith.constant 0 : index
    %c0_4 = arith.constant 0 : index
    %5 = vector.load %arg2[%c0_3, %c0_4] : memref<512x384xf32, #tpu.memory_space<vmem>>, vector<512x384xf32>
    %cst = arith.constant dense<0.000000e+00> : vector<16x384xf32>
    %6 = tpu.matmul %4, %5, %cst {dimension_numbers = #tpu.dot_dimension_numbers<[1], [0], [0], [1], [0, 0, 1, 1], [], []>} : vector<16x512xf32>, vector<512x384xf32>, vector<16x384xf32> -> vector<16x384xf32>
    %c0_5 = arith.constant 0 : index
    %c0_6 = arith.constant 0 : index
    %7 = vector.load %arg3[%c0_5, %c0_6] : memref<1x384xf32, #tpu.memory_space<vmem>>, vector<1x384xf32>
    %8 = vector.broadcast %7 : vector<1x384xf32> to vector<16x384xf32>
    %9 = arith.addf %6, %8 : vector<16x384xf32>
    %10 = vector.shape_cast %9 : vector<16x384xf32> to vector<8x2x384xf32>
    %c0_7 = arith.constant 0 : index
    %c0_8 = arith.constant 0 : index
    %c0_9 = arith.constant 0 : index
    %11 = vector.load %arg8[%c0_7, %c0_8, %c0_9] : memref<8x2x384xf32, #tpu.memory_space<vmem>>, vector<8x2x384xf32>
    tpu.vector_store %arg8[%c0_7, %c0_8, %c0_9], %10 {strides = array<i32>} : memref<8x2x384xf32, #tpu.memory_space<vmem>>, vector<8x2x384xf32>,
    %c0_10 = arith.constant 0 : index
    %c0_11 = arith.constant 0 : index
    %12 = vector.load %arg4[%c0_10, %c0_11] : memref<128x384xf32, #tpu.memory_space<vmem>>, vector<128x384xf32>
    %c0_12 = arith.constant 0 : index
    %c0_13 = arith.constant 0 : index
    %13 = vector.load %arg5[%c0_12, %c0_13] : memref<1x128xf32, #tpu.memory_space<vmem>>, vector<1x128xf32>
    %14 = vector.shape_cast %13 : vector<1x128xf32> to vector<1x128xf32>
    %15 = vector.broadcast %14 : vector<1x128xf32> to vector<2x128xf32>
    %c0_14 = arith.constant 0 : index
    %c0_15 = arith.constant 0 : index
    %16 = vector.load %arg7[%c0_14, %c0_15] : memref<2x128xf32, #tpu.memory_space<vmem>>, vector<2x128xf32>
    %c0_i32_16 = arith.constant 0 : i32
    %cst_17 = arith.constant dense<0.000000e+00> : vector<2x384xf32>
    %17 = tpu.matmul %16, %12, %cst_17 {dimension_numbers = #tpu.dot_dimension_numbers<[1], [0], [0], [1], [0, 0, 1, 1], [], []>} : vector<2x128xf32>, vector<128x384xf32>, vector<2x384xf32> -> vector<2x384xf32>
    %18 = arith.index_cast %c0_i32_16 : i32 to index
    %c0_18 = arith.constant 0 : index
    %c0_19 = arith.constant 0 : index
    %19 = vector.load %arg8[%18, %c0_18, %c0_19] : memref<8x2x384xf32, #tpu.memory_space<vmem>>, vector<1x2x384xf32>
    %20 = vector.shape_cast %19 : vector<1x2x384xf32> to vector<2x384xf32>
    %21 = vector.extract_strided_slice %20 {offsets = [0, 0], sizes = [2, 128], strides = [1, 1]} : vector<2x384xf32> to vector<2x128xf32>
    %22 = vector.extract_strided_slice %17 {offsets = [0, 0], sizes = [2, 128], strides = [1, 1]} : vector<2x384xf32> to vector<2x128xf32>
    %23 = arith.addf %21, %22 : vector<2x128xf32>
    %24 = arith.negf %23 : vector<2x128xf32>
    %25 = math.exp %24 : vector<2x128xf32>
    %cst_20 = arith.constant 1.000000e+00 : f32
    %26 = vector.broadcast %cst_20 : f32 to vector<2x128xf32>
    %27 = arith.addf %26, %25 : vector<2x128xf32>
    %28 = arith.divf %26, %27 : vector<2x128xf32>
    %29 = vector.extract_strided_slice %20 {offsets = [0, 128], sizes = [2, 128], strides = [1, 1]} : vector<2x384xf32> to vector<2x128xf32>
    %30 = vector.extract_strided_slice %17 {offsets = [0, 128], sizes = [2, 128], strides = [1, 1]} : vector<2x384xf32> to vector<2x128xf32>
    %31 = arith.addf %29, %30 : vector<2x128xf32>
    %32 = arith.negf %31 : vector<2x128xf32>
    %33 = math.exp %32 : vector<2x128xf32>
    %cst_21 = arith.constant 1.000000e+00 : f32
    %34 = vector.broadcast %cst_21 : f32 to vector<2x128xf32>
    %35 = arith.addf %34, %33 : vector<2x128xf32>
    %36 = arith.divf %34, %35 : vector<2x128xf32>
    %37 = vector.extract_strided_slice %20 {offsets = [0, 256], sizes = [2, 128], strides = [1, 1]} : vector<2x384xf32> to vector<2x128xf32>
    %38 = vector.extract_strided_slice %17 {offsets = [0, 256], sizes = [2, 128], strides = [1, 1]} : vector<2x384xf32> to vector<2x128xf32>
    %39 = arith.addf %38, %15 : vector<2x128xf32>
    %40 = arith.mulf %28, %39 : vector<2x128xf32>
    %41 = arith.addf %37, %40 : vector<2x128xf32>
    %42 = math.tanh %41 : vector<2x128xf32>
    %cst_22 = arith.constant 1.000000e+00 : f32
    %43 = vector.broadcast %cst_22 : f32 to vector<2x128xf32>
    %44 = arith.subf %43, %36 : vector<2x128xf32>
    %45 = arith.mulf %44, %42 : vector<2x128xf32>
    %46 = arith.mulf %36, %16 : vector<2x128xf32>
    %47 = arith.addf %45, %46 : vector<2x128xf32>
    %48 = arith.index_cast %c0_i32_16 : i32 to index
    %c0_23 = arith.constant 0 : index
    %c0_24 = arith.constant 0 : index
    %49 = vector.load %arg6[%48, %c0_23, %c0_24] : memref<8x2x128xf32, #tpu.memory_space<vmem>>, vector<1x2x128xf32>
    %50 = vector.shape_cast %49 : vector<1x2x128xf32> to vector<2x128xf32>
    %51 = vector.shape_cast %47 : vector<2x128xf32> to vector<1x2x128xf32>
    tpu.vector_store %arg6[%48, %c0_23, %c0_24], %51 {strides = array<i32>} : memref<8x2x128xf32, #tpu.memory_space<vmem>>, vector<1x2x128xf32>,
    %c1_i32 = arith.constant 1 : i32
    %cst_25 = arith.constant dense<0.000000e+00> : vector<2x384xf32>
    %52 = tpu.matmul %47, %12, %cst_25 {dimension_numbers = #tpu.dot_dimension_numbers<[1], [0], [0], [1], [0, 0, 1, 1], [], []>} : vector<2x128xf32>, vector<128x384xf32>, vector<2x384xf32> -> vector<2x384xf32>
    %53 = arith.index_cast %c1_i32 : i32 to index
    %c0_26 = arith.constant 0 : index
    %c0_27 = arith.constant 0 : index
    %54 = vector.load %arg8[%53, %c0_26, %c0_27] : memref<8x2x384xf32, #tpu.memory_space<vmem>>, vector<1x2x384xf32>
    %55 = vector.shape_cast %54 : vector<1x2x384xf32> to vector<2x384xf32>
    %56 = vector.extract_strided_slice %55 {offsets = [0, 0], sizes = [2, 128], strides = [1, 1]} : vector<2x384xf32> to vector<2x128xf32>
    %57 = vector.extract_strided_slice %52 {offsets = [0, 0], sizes = [2, 128], strides = [1, 1]} : vector<2x384xf32> to vector<2x128xf32>
    %58 = arith.addf %56, %57 : vector<2x128xf32>
    %59 = arith.negf %58 : vector<2x128xf32>
    %60 = math.exp %59 : vector<2x128xf32>
    %cst_28 = arith.constant 1.000000e+00 : f32
    %61 = vector.broadcast %cst_28 : f32 to vector<2x128xf32>
    %62 = arith.addf %61, %60 : vector<2x128xf32>
    %63 = arith.divf %61, %62 : vector<2x128xf32>
    %64 = vector.extract_strided_slice %55 {offsets = [0, 128], sizes = [2, 128], strides = [1, 1]} : vector<2x384xf32> to vector<2x128xf32>
    %65 = vector.extract_strided_slice %52 {offsets = [0, 128], sizes = [2, 128], strides = [1, 1]} : vector<2x384xf32> to vector<2x128xf32>
    %66 = arith.addf %64, %65 : vector<2x128xf32>
    %67 = arith.negf %66 : vector<2x128xf32>
    %68 = math.exp %67 : vector<2x128xf32>
    %cst_29 = arith.constant 1.000000e+00 : f32
    %69 = vector.broadcast %cst_29 : f32 to vector<2x128xf32>
    %70 = arith.addf %69, %68 : vector<2x128xf32>
    %71 = arith.divf %69, %70 : vector<2x128xf32>
    %72 = vector.extract_strided_slice %55 {offsets = [0, 256], sizes = [2, 128], strides = [1, 1]} : vector<2x384xf32> to vector<2x128xf32>
    %73 = vector.extract_strided_slice %52 {offsets = [0, 256], sizes = [2, 128], strides = [1, 1]} : vector<2x384xf32> to vector<2x128xf32>
    %74 = arith.addf %73, %15 : vector<2x128xf32>
    %75 = arith.mulf %63, %74 : vector<2x128xf32>
    %76 = arith.addf %72, %75 : vector<2x128xf32>
    %77 = math.tanh %76 : vector<2x128xf32>
    %cst_30 = arith.constant 1.000000e+00 : f32
    %78 = vector.broadcast %cst_30 : f32 to vector<2x128xf32>
    %79 = arith.subf %78, %71 : vector<2x128xf32>
    %80 = arith.mulf %79, %77 : vector<2x128xf32>
    %81 = arith.mulf %71, %47 : vector<2x128xf32>
    %82 = arith.addf %80, %81 : vector<2x128xf32>
    %83 = arith.index_cast %c1_i32 : i32 to index
    %c0_31 = arith.constant 0 : index
    %c0_32 = arith.constant 0 : index
    %84 = vector.load %arg6[%83, %c0_31, %c0_32] : memref<8x2x128xf32, #tpu.memory_space<vmem>>, vector<1x2x128xf32>
    %85 = vector.shape_cast %84 : vector<1x2x128xf32> to vector<2x128xf32>
    %86 = vector.shape_cast %82 : vector<2x128xf32> to vector<1x2x128xf32>
    tpu.vector_store %arg6[%83, %c0_31, %c0_32], %86 {strides = array<i32>} : memref<8x2x128xf32, #tpu.memory_space<vmem>>, vector<1x2x128xf32>,
    %c2_i32 = arith.constant 2 : i32
    %cst_33 = arith.constant dense<0.000000e+00> : vector<2x384xf32>
    %87 = tpu.matmul %82, %12, %cst_33 {dimension_numbers = #tpu.dot_dimension_numbers<[1], [0], [0], [1], [0, 0, 1, 1], [], []>} : vector<2x128xf32>, vector<128x384xf32>, vector<2x384xf32> -> vector<2x384xf32>
    %88 = arith.index_cast %c2_i32 : i32 to index
    %c0_34 = arith.constant 0 : index
    %c0_35 = arith.constant 0 : index
    %89 = vector.load %arg8[%88, %c0_34, %c0_35] : memref<8x2x384xf32, #tpu.memory_space<vmem>>, vector<1x2x384xf32>
    %90 = vector.shape_cast %89 : vector<1x2x384xf32> to vector<2x384xf32>
    %91 = vector.extract_strided_slice %90 {offsets = [0, 0], sizes = [2, 128], strides = [1, 1]} : vector<2x384xf32> to vector<2x128xf32>
    %92 = vector.extract_strided_slice %87 {offsets = [0, 0], sizes = [2, 128], strides = [1, 1]} : vector<2x384xf32> to vector<2x128xf32>
    %93 = arith.addf %91, %92 : vector<2x128xf32>
    %94 = arith.negf %93 : vector<2x128xf32>
    %95 = math.exp %94 : vector<2x128xf32>
    %cst_36 = arith.constant 1.000000e+00 : f32
    %96 = vector.broadcast %cst_36 : f32 to vector<2x128xf32>
    %97 = arith.addf %96, %95 : vector<2x128xf32>
    %98 = arith.divf %96, %97 : vector<2x128xf32>
    %99 = vector.extract_strided_slice %90 {offsets = [0, 128], sizes = [2, 128], strides = [1, 1]} : vector<2x384xf32> to vector<2x128xf32>
    %100 = vector.extract_strided_slice %87 {offsets = [0, 128], sizes = [2, 128], strides = [1, 1]} : vector<2x384xf32> to vector<2x128xf32>
    %101 = arith.addf %99, %100 : vector<2x128xf32>
    %102 = arith.negf %101 : vector<2x128xf32>
    %103 = math.exp %102 : vector<2x128xf32>
    %cst_37 = arith.constant 1.000000e+00 : f32
    %104 = vector.broadcast %cst_37 : f32 to vector<2x128xf32>
    %105 = arith.addf %104, %103 : vector<2x128xf32>
    %106 = arith.divf %104, %105 : vector<2x128xf32>
    %107 = vector.extract_strided_slice %90 {offsets = [0, 256], sizes = [2, 128], strides = [1, 1]} : vector<2x384xf32> to vector<2x128xf32>
    %108 = vector.extract_strided_slice %87 {offsets = [0, 256], sizes = [2, 128], strides = [1, 1]} : vector<2x384xf32> to vector<2x128xf32>
    %109 = arith.addf %108, %15 : vector<2x128xf32>
    %110 = arith.mulf %98, %109 : vector<2x128xf32>
    %111 = arith.addf %107, %110 : vector<2x128xf32>
    %112 = math.tanh %111 : vector<2x128xf32>
    %cst_38 = arith.constant 1.000000e+00 : f32
    %113 = vector.broadcast %cst_38 : f32 to vector<2x128xf32>
    %114 = arith.subf %113, %106 : vector<2x128xf32>
    %115 = arith.mulf %114, %112 : vector<2x128xf32>
    %116 = arith.mulf %106, %82 : vector<2x128xf32>
    %117 = arith.addf %115, %116 : vector<2x128xf32>
    %118 = arith.index_cast %c2_i32 : i32 to index
    %c0_39 = arith.constant 0 : index
    %c0_40 = arith.constant 0 : index
    %119 = vector.load %arg6[%118, %c0_39, %c0_40] : memref<8x2x128xf32, #tpu.memory_space<vmem>>, vector<1x2x128xf32>
    %120 = vector.shape_cast %119 : vector<1x2x128xf32> to vector<2x128xf32>
    %121 = vector.shape_cast %117 : vector<2x128xf32> to vector<1x2x128xf32>
    tpu.vector_store %arg6[%118, %c0_39, %c0_40], %121 {strides = array<i32>} : memref<8x2x128xf32, #tpu.memory_space<vmem>>, vector<1x2x128xf32>,
    %c3_i32 = arith.constant 3 : i32
    %cst_41 = arith.constant dense<0.000000e+00> : vector<2x384xf32>
    %122 = tpu.matmul %117, %12, %cst_41 {dimension_numbers = #tpu.dot_dimension_numbers<[1], [0], [0], [1], [0, 0, 1, 1], [], []>} : vector<2x128xf32>, vector<128x384xf32>, vector<2x384xf32> -> vector<2x384xf32>
    %123 = arith.index_cast %c3_i32 : i32 to index
    %c0_42 = arith.constant 0 : index
    %c0_43 = arith.constant 0 : index
    %124 = vector.load %arg8[%123, %c0_42, %c0_43] : memref<8x2x384xf32, #tpu.memory_space<vmem>>, vector<1x2x384xf32>
    %125 = vector.shape_cast %124 : vector<1x2x384xf32> to vector<2x384xf32>
    %126 = vector.extract_strided_slice %125 {offsets = [0, 0], sizes = [2, 128], strides = [1, 1]} : vector<2x384xf32> to vector<2x128xf32>
    %127 = vector.extract_strided_slice %122 {offsets = [0, 0], sizes = [2, 128], strides = [1, 1]} : vector<2x384xf32> to vector<2x128xf32>
    %128 = arith.addf %126, %127 : vector<2x128xf32>
    %129 = arith.negf %128 : vector<2x128xf32>
    %130 = math.exp %129 : vector<2x128xf32>
    %cst_44 = arith.constant 1.000000e+00 : f32
    %131 = vector.broadcast %cst_44 : f32 to vector<2x128xf32>
    %132 = arith.addf %131, %130 : vector<2x128xf32>
    %133 = arith.divf %131, %132 : vector<2x128xf32>
    %134 = vector.extract_strided_slice %125 {offsets = [0, 128], sizes = [2, 128], strides = [1, 1]} : vector<2x384xf32> to vector<2x128xf32>
    %135 = vector.extract_strided_slice %122 {offsets = [0, 128], sizes = [2, 128], strides = [1, 1]} : vector<2x384xf32> to vector<2x128xf32>
    %136 = arith.addf %134, %135 : vector<2x128xf32>
    %137 = arith.negf %136 : vector<2x128xf32>
    %138 = math.exp %137 : vector<2x128xf32>
    %cst_45 = arith.constant 1.000000e+00 : f32
    %139 = vector.broadcast %cst_45 : f32 to vector<2x128xf32>
    %140 = arith.addf %139, %138 : vector<2x128xf32>
    %141 = arith.divf %139, %140 : vector<2x128xf32>
    %142 = vector.extract_strided_slice %125 {offsets = [0, 256], sizes = [2, 128], strides = [1, 1]} : vector<2x384xf32> to vector<2x128xf32>
    %143 = vector.extract_strided_slice %122 {offsets = [0, 256], sizes = [2, 128], strides = [1, 1]} : vector<2x384xf32> to vector<2x128xf32>
    %144 = arith.addf %143, %15 : vector<2x128xf32>
    %145 = arith.mulf %133, %144 : vector<2x128xf32>
    %146 = arith.addf %142, %145 : vector<2x128xf32>
    %147 = math.tanh %146 : vector<2x128xf32>
    %cst_46 = arith.constant 1.000000e+00 : f32
    %148 = vector.broadcast %cst_46 : f32 to vector<2x128xf32>
    %149 = arith.subf %148, %141 : vector<2x128xf32>
    %150 = arith.mulf %149, %147 : vector<2x128xf32>
    %151 = arith.mulf %141, %117 : vector<2x128xf32>
    %152 = arith.addf %150, %151 : vector<2x128xf32>
    %153 = arith.index_cast %c3_i32 : i32 to index
    %c0_47 = arith.constant 0 : index
    %c0_48 = arith.constant 0 : index
    %154 = vector.load %arg6[%153, %c0_47, %c0_48] : memref<8x2x128xf32, #tpu.memory_space<vmem>>, vector<1x2x128xf32>
    %155 = vector.shape_cast %154 : vector<1x2x128xf32> to vector<2x128xf32>
    %156 = vector.shape_cast %152 : vector<2x128xf32> to vector<1x2x128xf32>
    tpu.vector_store %arg6[%153, %c0_47, %c0_48], %156 {strides = array<i32>} : memref<8x2x128xf32, #tpu.memory_space<vmem>>, vector<1x2x128xf32>,
    %c4_i32 = arith.constant 4 : i32
    %cst_49 = arith.constant dense<0.000000e+00> : vector<2x384xf32>
    %157 = tpu.matmul %152, %12, %cst_49 {dimension_numbers = #tpu.dot_dimension_numbers<[1], [0], [0], [1], [0, 0, 1, 1], [], []>} : vector<2x128xf32>, vector<128x384xf32>, vector<2x384xf32> -> vector<2x384xf32>
    %158 = arith.index_cast %c4_i32 : i32 to index
    %c0_50 = arith.constant 0 : index
    %c0_51 = arith.constant 0 : index
    %159 = vector.load %arg8[%158, %c0_50, %c0_51] : memref<8x2x384xf32, #tpu.memory_space<vmem>>, vector<1x2x384xf32>
    %160 = vector.shape_cast %159 : vector<1x2x384xf32> to vector<2x384xf32>
    %161 = vector.extract_strided_slice %160 {offsets = [0, 0], sizes = [2, 128], strides = [1, 1]} : vector<2x384xf32> to vector<2x128xf32>
    %162 = vector.extract_strided_slice %157 {offsets = [0, 0], sizes = [2, 128], strides = [1, 1]} : vector<2x384xf32> to vector<2x128xf32>
    %163 = arith.addf %161, %162 : vector<2x128xf32>
    %164 = arith.negf %163 : vector<2x128xf32>
    %165 = math.exp %164 : vector<2x128xf32>
    %cst_52 = arith.constant 1.000000e+00 : f32
    %166 = vector.broadcast %cst_52 : f32 to vector<2x128xf32>
    %167 = arith.addf %166, %165 : vector<2x128xf32>
    %168 = arith.divf %166, %167 : vector<2x128xf32>
    %169 = vector.extract_strided_slice %160 {offsets = [0, 128], sizes = [2, 128], strides = [1, 1]} : vector<2x384xf32> to vector<2x128xf32>
    %170 = vector.extract_strided_slice %157 {offsets = [0, 128], sizes = [2, 128], strides = [1, 1]} : vector<2x384xf32> to vector<2x128xf32>
    %171 = arith.addf %169, %170 : vector<2x128xf32>
    %172 = arith.negf %171 : vector<2x128xf32>
    %173 = math.exp %172 : vector<2x128xf32>
    %cst_53 = arith.constant 1.000000e+00 : f32
    %174 = vector.broadcast %cst_53 : f32 to vector<2x128xf32>
    %175 = arith.addf %174, %173 : vector<2x128xf32>
    %176 = arith.divf %174, %175 : vector<2x128xf32>
    %177 = vector.extract_strided_slice %160 {offsets = [0, 256], sizes = [2, 128], strides = [1, 1]} : vector<2x384xf32> to vector<2x128xf32>
    %178 = vector.extract_strided_slice %157 {offsets = [0, 256], sizes = [2, 128], strides = [1, 1]} : vector<2x384xf32> to vector<2x128xf32>
    %179 = arith.addf %178, %15 : vector<2x128xf32>
    %180 = arith.mulf %168, %179 : vector<2x128xf32>
    %181 = arith.addf %177, %180 : vector<2x128xf32>
    %182 = math.tanh %181 : vector<2x128xf32>
    %cst_54 = arith.constant 1.000000e+00 : f32
    %183 = vector.broadcast %cst_54 : f32 to vector<2x128xf32>
    %184 = arith.subf %183, %176 : vector<2x128xf32>
    %185 = arith.mulf %184, %182 : vector<2x128xf32>
    %186 = arith.mulf %176, %152 : vector<2x128xf32>
    %187 = arith.addf %185, %186 : vector<2x128xf32>
    %188 = arith.index_cast %c4_i32 : i32 to index
    %c0_55 = arith.constant 0 : index
    %c0_56 = arith.constant 0 : index
    %189 = vector.load %arg6[%188, %c0_55, %c0_56] : memref<8x2x128xf32, #tpu.memory_space<vmem>>, vector<1x2x128xf32>
    %190 = vector.shape_cast %189 : vector<1x2x128xf32> to vector<2x128xf32>
    %191 = vector.shape_cast %187 : vector<2x128xf32> to vector<1x2x128xf32>
    tpu.vector_store %arg6[%188, %c0_55, %c0_56], %191 {strides = array<i32>} : memref<8x2x128xf32, #tpu.memory_space<vmem>>, vector<1x2x128xf32>,
    %c5_i32 = arith.constant 5 : i32
    %cst_57 = arith.constant dense<0.000000e+00> : vector<2x384xf32>
    %192 = tpu.matmul %187, %12, %cst_57 {dimension_numbers = #tpu.dot_dimension_numbers<[1], [0], [0], [1], [0, 0, 1, 1], [], []>} : vector<2x128xf32>, vector<128x384xf32>, vector<2x384xf32> -> vector<2x384xf32>
    %193 = arith.index_cast %c5_i32 : i32 to index
    %c0_58 = arith.constant 0 : index
    %c0_59 = arith.constant 0 : index
    %194 = vector.load %arg8[%193, %c0_58, %c0_59] : memref<8x2x384xf32, #tpu.memory_space<vmem>>, vector<1x2x384xf32>
    %195 = vector.shape_cast %194 : vector<1x2x384xf32> to vector<2x384xf32>
    %196 = vector.extract_strided_slice %195 {offsets = [0, 0], sizes = [2, 128], strides = [1, 1]} : vector<2x384xf32> to vector<2x128xf32>
    %197 = vector.extract_strided_slice %192 {offsets = [0, 0], sizes = [2, 128], strides = [1, 1]} : vector<2x384xf32> to vector<2x128xf32>
    %198 = arith.addf %196, %197 : vector<2x128xf32>
    %199 = arith.negf %198 : vector<2x128xf32>
    %200 = math.exp %199 : vector<2x128xf32>
    %cst_60 = arith.constant 1.000000e+00 : f32
    %201 = vector.broadcast %cst_60 : f32 to vector<2x128xf32>
    %202 = arith.addf %201, %200 : vector<2x128xf32>
    %203 = arith.divf %201, %202 : vector<2x128xf32>
    %204 = vector.extract_strided_slice %195 {offsets = [0, 128], sizes = [2, 128], strides = [1, 1]} : vector<2x384xf32> to vector<2x128xf32>
    %205 = vector.extract_strided_slice %192 {offsets = [0, 128], sizes = [2, 128], strides = [1, 1]} : vector<2x384xf32> to vector<2x128xf32>
    %206 = arith.addf %204, %205 : vector<2x128xf32>
    %207 = arith.negf %206 : vector<2x128xf32>
    %208 = math.exp %207 : vector<2x128xf32>
    %cst_61 = arith.constant 1.000000e+00 : f32
    %209 = vector.broadcast %cst_61 : f32 to vector<2x128xf32>
    %210 = arith.addf %209, %208 : vector<2x128xf32>
    %211 = arith.divf %209, %210 : vector<2x128xf32>
    %212 = vector.extract_strided_slice %195 {offsets = [0, 256], sizes = [2, 128], strides = [1, 1]} : vector<2x384xf32> to vector<2x128xf32>
    %213 = vector.extract_strided_slice %192 {offsets = [0, 256], sizes = [2, 128], strides = [1, 1]} : vector<2x384xf32> to vector<2x128xf32>
    %214 = arith.addf %213, %15 : vector<2x128xf32>
    %215 = arith.mulf %203, %214 : vector<2x128xf32>
    %216 = arith.addf %212, %215 : vector<2x128xf32>
    %217 = math.tanh %216 : vector<2x128xf32>
    %cst_62 = arith.constant 1.000000e+00 : f32
    %218 = vector.broadcast %cst_62 : f32 to vector<2x128xf32>
    %219 = arith.subf %218, %211 : vector<2x128xf32>
    %220 = arith.mulf %219, %217 : vector<2x128xf32>
    %221 = arith.mulf %211, %187 : vector<2x128xf32>
    %222 = arith.addf %220, %221 : vector<2x128xf32>
    %223 = arith.index_cast %c5_i32 : i32 to index
    %c0_63 = arith.constant 0 : index
    %c0_64 = arith.constant 0 : index
    %224 = vector.load %arg6[%223, %c0_63, %c0_64] : memref<8x2x128xf32, #tpu.memory_space<vmem>>, vector<1x2x128xf32>
    %225 = vector.shape_cast %224 : vector<1x2x128xf32> to vector<2x128xf32>
    %226 = vector.shape_cast %222 : vector<2x128xf32> to vector<1x2x128xf32>
    tpu.vector_store %arg6[%223, %c0_63, %c0_64], %226 {strides = array<i32>} : memref<8x2x128xf32, #tpu.memory_space<vmem>>, vector<1x2x128xf32>,
    %c6_i32 = arith.constant 6 : i32
    %cst_65 = arith.constant dense<0.000000e+00> : vector<2x384xf32>
    %227 = tpu.matmul %222, %12, %cst_65 {dimension_numbers = #tpu.dot_dimension_numbers<[1], [0], [0], [1], [0, 0, 1, 1], [], []>} : vector<2x128xf32>, vector<128x384xf32>, vector<2x384xf32> -> vector<2x384xf32>
    %228 = arith.index_cast %c6_i32 : i32 to index
    %c0_66 = arith.constant 0 : index
    %c0_67 = arith.constant 0 : index
    %229 = vector.load %arg8[%228, %c0_66, %c0_67] : memref<8x2x384xf32, #tpu.memory_space<vmem>>, vector<1x2x384xf32>
    %230 = vector.shape_cast %229 : vector<1x2x384xf32> to vector<2x384xf32>
    %231 = vector.extract_strided_slice %230 {offsets = [0, 0], sizes = [2, 128], strides = [1, 1]} : vector<2x384xf32> to vector<2x128xf32>
    %232 = vector.extract_strided_slice %227 {offsets = [0, 0], sizes = [2, 128], strides = [1, 1]} : vector<2x384xf32> to vector<2x128xf32>
    %233 = arith.addf %231, %232 : vector<2x128xf32>
    %234 = arith.negf %233 : vector<2x128xf32>
    %235 = math.exp %234 : vector<2x128xf32>
    %cst_68 = arith.constant 1.000000e+00 : f32
    %236 = vector.broadcast %cst_68 : f32 to vector<2x128xf32>
    %237 = arith.addf %236, %235 : vector<2x128xf32>
    %238 = arith.divf %236, %237 : vector<2x128xf32>
    %239 = vector.extract_strided_slice %230 {offsets = [0, 128], sizes = [2, 128], strides = [1, 1]} : vector<2x384xf32> to vector<2x128xf32>
    %240 = vector.extract_strided_slice %227 {offsets = [0, 128], sizes = [2, 128], strides = [1, 1]} : vector<2x384xf32> to vector<2x128xf32>
    %241 = arith.addf %239, %240 : vector<2x128xf32>
    %242 = arith.negf %241 : vector<2x128xf32>
    %243 = math.exp %242 : vector<2x128xf32>
    %cst_69 = arith.constant 1.000000e+00 : f32
    %244 = vector.broadcast %cst_69 : f32 to vector<2x128xf32>
    %245 = arith.addf %244, %243 : vector<2x128xf32>
    %246 = arith.divf %244, %245 : vector<2x128xf32>
    %247 = vector.extract_strided_slice %230 {offsets = [0, 256], sizes = [2, 128], strides = [1, 1]} : vector<2x384xf32> to vector<2x128xf32>
    %248 = vector.extract_strided_slice %227 {offsets = [0, 256], sizes = [2, 128], strides = [1, 1]} : vector<2x384xf32> to vector<2x128xf32>
    %249 = arith.addf %248, %15 : vector<2x128xf32>
    %250 = arith.mulf %238, %249 : vector<2x128xf32>
    %251 = arith.addf %247, %250 : vector<2x128xf32>
    %252 = math.tanh %251 : vector<2x128xf32>
    %cst_70 = arith.constant 1.000000e+00 : f32
    %253 = vector.broadcast %cst_70 : f32 to vector<2x128xf32>
    %254 = arith.subf %253, %246 : vector<2x128xf32>
    %255 = arith.mulf %254, %252 : vector<2x128xf32>
    %256 = arith.mulf %246, %222 : vector<2x128xf32>
    %257 = arith.addf %255, %256 : vector<2x128xf32>
    %258 = arith.index_cast %c6_i32 : i32 to index
    %c0_71 = arith.constant 0 : index
    %c0_72 = arith.constant 0 : index
    %259 = vector.load %arg6[%258, %c0_71, %c0_72] : memref<8x2x128xf32, #tpu.memory_space<vmem>>, vector<1x2x128xf32>
    %260 = vector.shape_cast %259 : vector<1x2x128xf32> to vector<2x128xf32>
    %261 = vector.shape_cast %257 : vector<2x128xf32> to vector<1x2x128xf32>
    tpu.vector_store %arg6[%258, %c0_71, %c0_72], %261 {strides = array<i32>} : memref<8x2x128xf32, #tpu.memory_space<vmem>>, vector<1x2x128xf32>,
    %c7_i32 = arith.constant 7 : i32
    %cst_73 = arith.constant dense<0.000000e+00> : vector<2x384xf32>
    %262 = tpu.matmul %257, %12, %cst_73 {dimension_numbers = #tpu.dot_dimension_numbers<[1], [0], [0], [1], [0, 0, 1, 1], [], []>} : vector<2x128xf32>, vector<128x384xf32>, vector<2x384xf32> -> vector<2x384xf32>
    %263 = arith.index_cast %c7_i32 : i32 to index
    %c0_74 = arith.constant 0 : index
    %c0_75 = arith.constant 0 : index
    %264 = vector.load %arg8[%263, %c0_74, %c0_75] : memref<8x2x384xf32, #tpu.memory_space<vmem>>, vector<1x2x384xf32>
    %265 = vector.shape_cast %264 : vector<1x2x384xf32> to vector<2x384xf32>
    %266 = vector.extract_strided_slice %265 {offsets = [0, 0], sizes = [2, 128], strides = [1, 1]} : vector<2x384xf32> to vector<2x128xf32>
    %267 = vector.extract_strided_slice %262 {offsets = [0, 0], sizes = [2, 128], strides = [1, 1]} : vector<2x384xf32> to vector<2x128xf32>
    %268 = arith.addf %266, %267 : vector<2x128xf32>
    %269 = arith.negf %268 : vector<2x128xf32>
    %270 = math.exp %269 : vector<2x128xf32>
    %cst_76 = arith.constant 1.000000e+00 : f32
    %271 = vector.broadcast %cst_76 : f32 to vector<2x128xf32>
    %272 = arith.addf %271, %270 : vector<2x128xf32>
    %273 = arith.divf %271, %272 : vector<2x128xf32>
    %274 = vector.extract_strided_slice %265 {offsets = [0, 128], sizes = [2, 128], strides = [1, 1]} : vector<2x384xf32> to vector<2x128xf32>
    %275 = vector.extract_strided_slice %262 {offsets = [0, 128], sizes = [2, 128], strides = [1, 1]} : vector<2x384xf32> to vector<2x128xf32>
    %276 = arith.addf %274, %275 : vector<2x128xf32>
    %277 = arith.negf %276 : vector<2x128xf32>
    %278 = math.exp %277 : vector<2x128xf32>
    %cst_77 = arith.constant 1.000000e+00 : f32
    %279 = vector.broadcast %cst_77 : f32 to vector<2x128xf32>
    %280 = arith.addf %279, %278 : vector<2x128xf32>
    %281 = arith.divf %279, %280 : vector<2x128xf32>
    %282 = vector.extract_strided_slice %265 {offsets = [0, 256], sizes = [2, 128], strides = [1, 1]} : vector<2x384xf32> to vector<2x128xf32>
    %283 = vector.extract_strided_slice %262 {offsets = [0, 256], sizes = [2, 128], strides = [1, 1]} : vector<2x384xf32> to vector<2x128xf32>
    %284 = arith.addf %283, %15 : vector<2x128xf32>
    %285 = arith.mulf %273, %284 : vector<2x128xf32>
    %286 = arith.addf %282, %285 : vector<2x128xf32>
    %287 = math.tanh %286 : vector<2x128xf32>
    %cst_78 = arith.constant 1.000000e+00 : f32
    %288 = vector.broadcast %cst_78 : f32 to vector<2x128xf32>
    %289 = arith.subf %288, %281 : vector<2x128xf32>
    %290 = arith.mulf %289, %287 : vector<2x128xf32>
    %291 = arith.mulf %281, %257 : vector<2x128xf32>
    %292 = arith.addf %290, %291 : vector<2x128xf32>
    %293 = arith.index_cast %c7_i32 : i32 to index
    %c0_79 = arith.constant 0 : index
    %c0_80 = arith.constant 0 : index
    %294 = vector.load %arg6[%293, %c0_79, %c0_80] : memref<8x2x128xf32, #tpu.memory_space<vmem>>, vector<1x2x128xf32>
    %295 = vector.shape_cast %294 : vector<1x2x128xf32> to vector<2x128xf32>
    %296 = vector.shape_cast %292 : vector<2x128xf32> to vector<1x2x128xf32>
    tpu.vector_store %arg6[%293, %c0_79, %c0_80], %296 {strides = array<i32>} : memref<8x2x128xf32, #tpu.memory_space<vmem>>, vector<1x2x128xf32>,
    %c8_i32 = arith.constant 8 : i32
    %c0_81 = arith.constant 0 : index
    %c0_82 = arith.constant 0 : index
    %297 = vector.load %arg7[%c0_81, %c0_82] : memref<2x128xf32, #tpu.memory_space<vmem>>, vector<2x128xf32>
    tpu.vector_store %arg7[%c0_81, %c0_82], %292 {strides = array<i32>} : memref<2x128xf32, #tpu.memory_space<vmem>>, vector<2x128xf32>,
    return
  }
  func.func @transform_0(%arg0: i32) -> (i32, i32, i32) {
    %c0_i32 = arith.constant 0 : i32
    %c0_i32_0 = arith.constant 0 : i32
    %c0_i32_1 = arith.constant 0 : i32
    return %arg0, %c0_i32, %c0_i32_0 : i32, i32, i32
  }
  func.func @transform_1(%arg0: i32) -> (i32, i32) {
    %c0_i32 = arith.constant 0 : i32
    %c0_i32_0 = arith.constant 0 : i32
    %c0_i32_1 = arith.constant 0 : i32
    return %c0_i32, %c0_i32_0 : i32, i32
  }
  func.func @transform_2(%arg0: i32) -> (i32, i32) {
    %c0_i32 = arith.constant 0 : i32
    %c0_i32_0 = arith.constant 0 : i32
    %c0_i32_1 = arith.constant 0 : i32
    return %c0_i32, %c0_i32_0 : i32, i32
  }
  func.func @transform_3(%arg0: i32) -> (i32, i32) {
    %c0_i32 = arith.constant 0 : i32
    %c0_i32_0 = arith.constant 0 : i32
    %c0_i32_1 = arith.constant 0 : i32
    return %c0_i32, %c0_i32_0 : i32, i32
  }
  func.func @transform_4(%arg0: i32) -> (i32, i32) {
    %c0_i32 = arith.constant 0 : i32
    %c0_i32_0 = arith.constant 0 : i32
    %c0_i32_1 = arith.constant 0 : i32
    return %c0_i32, %c0_i32_0 : i32, i32
  }
  func.func @transform_5(%arg0: i32) -> (i32, i32, i32) {
    %c0_i32 = arith.constant 0 : i32
    %c0_i32_0 = arith.constant 0 : i32
    %c0_i32_1 = arith.constant 0 : i32
    return %arg0, %c0_i32, %c0_i32_0 : i32, i32, i32
  }
}

module attributes {stable_mosaic.version = 11 : i64} {
  func.func @_gru_layer_kernel(%arg0: i32, %arg1: memref<8x2x128xf32, #tpu.memory_space<vmem>>, %arg2: memref<128x384xf32, #tpu.memory_space<vmem>>, %arg3: memref<1x384xf32, #tpu.memory_space<vmem>>, %arg4: memref<128x384xf32, #tpu.memory_space<vmem>>, %arg5: memref<1x128xf32, #tpu.memory_space<vmem>>, %arg6: memref<8x2x128xf32, #tpu.memory_space<vmem>>, %arg7: memref<2x128xf32, #tpu.memory_space<vmem>>, %arg8: memref<8x2x384xf32, #tpu.memory_space<vmem>>) attributes {dimension_semantics = [#tpu.dimension_semantics<arbitrary>], iteration_bounds = array<i64: 1>, scalar_prefetch = 0 : i64, scratch_operands = 2 : i64, tpu.core_type = #tpu.core_type<tc>, window_params = [{transform_indices = @transform_0, window_bounds = array<i64: 8, 2, 128>}, {pipeline_mode = #tpu.pipeline_mode<synchronous>, transform_indices = @transform_1, window_bounds = array<i64: 128, 384>}, {pipeline_mode = #tpu.pipeline_mode<synchronous>, transform_indices = @transform_2, window_bounds = array<i64: 1, 384>}, {pipeline_mode = #tpu.pipeline_mode<synchronous>, transform_indices = @transform_3, window_bounds = array<i64: 128, 384>}, {pipeline_mode = #tpu.pipeline_mode<synchronous>, transform_indices = @transform_4, window_bounds = array<i64: 1, 128>}, {transform_indices = @transform_5, window_bounds = array<i64: 8, 2, 128>}]} {
    %c0_i32 = arith.constant 0 : i32
    %0 = arith.cmpi eq, %arg0, %c0_i32 : i32
    %1 = arith.extui %0 : i1 to i32
    %c0_i32_0 = arith.constant 0 : i32
    %2 = arith.cmpi ne, %1, %c0_i32_0 : i32
    scf.if %2 {
      %cst_83 = arith.constant 0.000000e+00 : f32
      %298 = vector.broadcast %cst_83 : f32 to vector<2x128xf32>
      %c0_84 = arith.constant 0 : index
      %c0_85 = arith.constant 0 : index
      %299 = vector.load %arg7[%c0_84, %c0_85] : memref<2x128xf32, #tpu.memory_space<vmem>>, vector<2x128xf32>
      tpu.vector_store %arg7[%c0_84, %c0_85], %298 {strides = array<i32>} : memref<2x128xf32, #tpu.memory_space<vmem>>, vector<2x128xf32>,
    } else {
    }
    %c0 = arith.constant 0 : index
    %c0_1 = arith.constant 0 : index
    %c0_2 = arith.constant 0 : index
    %3 = vector.load %arg1[%c0, %c0_1, %c0_2] : memref<8x2x128xf32, #tpu.memory_space<vmem>>, vector<8x2x128xf32>
    %4 = vector.shape_cast %3 : vector<8x2x128xf32> to vector<16x128xf32>
    %c0_3 = arith.constant 0 : index
    %c0_4 = arith.constant 0 : index
    %5 = vector.load %arg2[%c0_3, %c0_4] : memref<128x384xf32, #tpu.memory_space<vmem>>, vector<128x384xf32>
    %cst = arith.constant dense<0.000000e+00> : vector<16x384xf32>
    %6 = tpu.matmul %4, %5, %cst {dimension_numbers = #tpu.dot_dimension_numbers<[1], [0], [0], [1], [0, 0, 1, 1], [], []>} : vector<16x128xf32>, vector<128x384xf32>, vector<16x384xf32> -> vector<16x384xf32>
    %c0_5 = arith.constant 0 : index
    %c0_6 = arith.constant 0 : index
    %7 = vector.load %arg3[%c0_5, %c0_6] : memref<1x384xf32, #tpu.memory_space<vmem>>, vector<1x384xf32>
    %8 = vector.broadcast %7 : vector<1x384xf32> to vector<16x384xf32>
    %9 = arith.addf %6, %8 : vector<16x384xf32>
    %10 = vector.shape_cast %9 : vector<16x384xf32> to vector<8x2x384xf32>
    %c0_7 = arith.constant 0 : index
    %c0_8 = arith.constant 0 : index
    %c0_9 = arith.constant 0 : index
    %11 = vector.load %arg8[%c0_7, %c0_8, %c0_9] : memref<8x2x384xf32, #tpu.memory_space<vmem>>, vector<8x2x384xf32>
    tpu.vector_store %arg8[%c0_7, %c0_8, %c0_9], %10 {strides = array<i32>} : memref<8x2x384xf32, #tpu.memory_space<vmem>>, vector<8x2x384xf32>,
    %c0_10 = arith.constant 0 : index
    %c0_11 = arith.constant 0 : index
    %12 = vector.load %arg4[%c0_10, %c0_11] : memref<128x384xf32, #tpu.memory_space<vmem>>, vector<128x384xf32>
    %c0_12 = arith.constant 0 : index
    %c0_13 = arith.constant 0 : index
    %13 = vector.load %arg5[%c0_12, %c0_13] : memref<1x128xf32, #tpu.memory_space<vmem>>, vector<1x128xf32>
    %14 = vector.shape_cast %13 : vector<1x128xf32> to vector<1x128xf32>
    %15 = vector.broadcast %14 : vector<1x128xf32> to vector<2x128xf32>
    %c0_14 = arith.constant 0 : index
    %c0_15 = arith.constant 0 : index
    %16 = vector.load %arg7[%c0_14, %c0_15] : memref<2x128xf32, #tpu.memory_space<vmem>>, vector<2x128xf32>
    %c0_i32_16 = arith.constant 0 : i32
    %cst_17 = arith.constant dense<0.000000e+00> : vector<2x384xf32>
    %17 = tpu.matmul %16, %12, %cst_17 {dimension_numbers = #tpu.dot_dimension_numbers<[1], [0], [0], [1], [0, 0, 1, 1], [], []>} : vector<2x128xf32>, vector<128x384xf32>, vector<2x384xf32> -> vector<2x384xf32>
    %18 = arith.index_cast %c0_i32_16 : i32 to index
    %c0_18 = arith.constant 0 : index
    %c0_19 = arith.constant 0 : index
    %19 = vector.load %arg8[%18, %c0_18, %c0_19] : memref<8x2x384xf32, #tpu.memory_space<vmem>>, vector<1x2x384xf32>
    %20 = vector.shape_cast %19 : vector<1x2x384xf32> to vector<2x384xf32>
    %21 = vector.extract_strided_slice %20 {offsets = [0, 0], sizes = [2, 128], strides = [1, 1]} : vector<2x384xf32> to vector<2x128xf32>
    %22 = vector.extract_strided_slice %17 {offsets = [0, 0], sizes = [2, 128], strides = [1, 1]} : vector<2x384xf32> to vector<2x128xf32>
    %23 = arith.addf %21, %22 : vector<2x128xf32>
    %24 = arith.negf %23 : vector<2x128xf32>
    %25 = math.exp %24 : vector<2x128xf32>
    %cst_20 = arith.constant 1.000000e+00 : f32
    %26 = vector.broadcast %cst_20 : f32 to vector<2x128xf32>
    %27 = arith.addf %26, %25 : vector<2x128xf32>
    %28 = arith.divf %26, %27 : vector<2x128xf32>
    %29 = vector.extract_strided_slice %20 {offsets = [0, 128], sizes = [2, 128], strides = [1, 1]} : vector<2x384xf32> to vector<2x128xf32>
    %30 = vector.extract_strided_slice %17 {offsets = [0, 128], sizes = [2, 128], strides = [1, 1]} : vector<2x384xf32> to vector<2x128xf32>
    %31 = arith.addf %29, %30 : vector<2x128xf32>
    %32 = arith.negf %31 : vector<2x128xf32>
    %33 = math.exp %32 : vector<2x128xf32>
    %cst_21 = arith.constant 1.000000e+00 : f32
    %34 = vector.broadcast %cst_21 : f32 to vector<2x128xf32>
    %35 = arith.addf %34, %33 : vector<2x128xf32>
    %36 = arith.divf %34, %35 : vector<2x128xf32>
    %37 = vector.extract_strided_slice %20 {offsets = [0, 256], sizes = [2, 128], strides = [1, 1]} : vector<2x384xf32> to vector<2x128xf32>
    %38 = vector.extract_strided_slice %17 {offsets = [0, 256], sizes = [2, 128], strides = [1, 1]} : vector<2x384xf32> to vector<2x128xf32>
    %39 = arith.addf %38, %15 : vector<2x128xf32>
    %40 = arith.mulf %28, %39 : vector<2x128xf32>
    %41 = arith.addf %37, %40 : vector<2x128xf32>
    %42 = math.tanh %41 : vector<2x128xf32>
    %cst_22 = arith.constant 1.000000e+00 : f32
    %43 = vector.broadcast %cst_22 : f32 to vector<2x128xf32>
    %44 = arith.subf %43, %36 : vector<2x128xf32>
    %45 = arith.mulf %44, %42 : vector<2x128xf32>
    %46 = arith.mulf %36, %16 : vector<2x128xf32>
    %47 = arith.addf %45, %46 : vector<2x128xf32>
    %48 = arith.index_cast %c0_i32_16 : i32 to index
    %c0_23 = arith.constant 0 : index
    %c0_24 = arith.constant 0 : index
    %49 = vector.load %arg6[%48, %c0_23, %c0_24] : memref<8x2x128xf32, #tpu.memory_space<vmem>>, vector<1x2x128xf32>
    %50 = vector.shape_cast %49 : vector<1x2x128xf32> to vector<2x128xf32>
    %51 = vector.shape_cast %47 : vector<2x128xf32> to vector<1x2x128xf32>
    tpu.vector_store %arg6[%48, %c0_23, %c0_24], %51 {strides = array<i32>} : memref<8x2x128xf32, #tpu.memory_space<vmem>>, vector<1x2x128xf32>,
    %c1_i32 = arith.constant 1 : i32
    %cst_25 = arith.constant dense<0.000000e+00> : vector<2x384xf32>
    %52 = tpu.matmul %47, %12, %cst_25 {dimension_numbers = #tpu.dot_dimension_numbers<[1], [0], [0], [1], [0, 0, 1, 1], [], []>} : vector<2x128xf32>, vector<128x384xf32>, vector<2x384xf32> -> vector<2x384xf32>
    %53 = arith.index_cast %c1_i32 : i32 to index
    %c0_26 = arith.constant 0 : index
    %c0_27 = arith.constant 0 : index
    %54 = vector.load %arg8[%53, %c0_26, %c0_27] : memref<8x2x384xf32, #tpu.memory_space<vmem>>, vector<1x2x384xf32>
    %55 = vector.shape_cast %54 : vector<1x2x384xf32> to vector<2x384xf32>
    %56 = vector.extract_strided_slice %55 {offsets = [0, 0], sizes = [2, 128], strides = [1, 1]} : vector<2x384xf32> to vector<2x128xf32>
    %57 = vector.extract_strided_slice %52 {offsets = [0, 0], sizes = [2, 128], strides = [1, 1]} : vector<2x384xf32> to vector<2x128xf32>
    %58 = arith.addf %56, %57 : vector<2x128xf32>
    %59 = arith.negf %58 : vector<2x128xf32>
    %60 = math.exp %59 : vector<2x128xf32>
    %cst_28 = arith.constant 1.000000e+00 : f32
    %61 = vector.broadcast %cst_28 : f32 to vector<2x128xf32>
    %62 = arith.addf %61, %60 : vector<2x128xf32>
    %63 = arith.divf %61, %62 : vector<2x128xf32>
    %64 = vector.extract_strided_slice %55 {offsets = [0, 128], sizes = [2, 128], strides = [1, 1]} : vector<2x384xf32> to vector<2x128xf32>
    %65 = vector.extract_strided_slice %52 {offsets = [0, 128], sizes = [2, 128], strides = [1, 1]} : vector<2x384xf32> to vector<2x128xf32>
    %66 = arith.addf %64, %65 : vector<2x128xf32>
    %67 = arith.negf %66 : vector<2x128xf32>
    %68 = math.exp %67 : vector<2x128xf32>
    %cst_29 = arith.constant 1.000000e+00 : f32
    %69 = vector.broadcast %cst_29 : f32 to vector<2x128xf32>
    %70 = arith.addf %69, %68 : vector<2x128xf32>
    %71 = arith.divf %69, %70 : vector<2x128xf32>
    %72 = vector.extract_strided_slice %55 {offsets = [0, 256], sizes = [2, 128], strides = [1, 1]} : vector<2x384xf32> to vector<2x128xf32>
    %73 = vector.extract_strided_slice %52 {offsets = [0, 256], sizes = [2, 128], strides = [1, 1]} : vector<2x384xf32> to vector<2x128xf32>
    %74 = arith.addf %73, %15 : vector<2x128xf32>
    %75 = arith.mulf %63, %74 : vector<2x128xf32>
    %76 = arith.addf %72, %75 : vector<2x128xf32>
    %77 = math.tanh %76 : vector<2x128xf32>
    %cst_30 = arith.constant 1.000000e+00 : f32
    %78 = vector.broadcast %cst_30 : f32 to vector<2x128xf32>
    %79 = arith.subf %78, %71 : vector<2x128xf32>
    %80 = arith.mulf %79, %77 : vector<2x128xf32>
    %81 = arith.mulf %71, %47 : vector<2x128xf32>
    %82 = arith.addf %80, %81 : vector<2x128xf32>
    %83 = arith.index_cast %c1_i32 : i32 to index
    %c0_31 = arith.constant 0 : index
    %c0_32 = arith.constant 0 : index
    %84 = vector.load %arg6[%83, %c0_31, %c0_32] : memref<8x2x128xf32, #tpu.memory_space<vmem>>, vector<1x2x128xf32>
    %85 = vector.shape_cast %84 : vector<1x2x128xf32> to vector<2x128xf32>
    %86 = vector.shape_cast %82 : vector<2x128xf32> to vector<1x2x128xf32>
    tpu.vector_store %arg6[%83, %c0_31, %c0_32], %86 {strides = array<i32>} : memref<8x2x128xf32, #tpu.memory_space<vmem>>, vector<1x2x128xf32>,
    %c2_i32 = arith.constant 2 : i32
    %cst_33 = arith.constant dense<0.000000e+00> : vector<2x384xf32>
    %87 = tpu.matmul %82, %12, %cst_33 {dimension_numbers = #tpu.dot_dimension_numbers<[1], [0], [0], [1], [0, 0, 1, 1], [], []>} : vector<2x128xf32>, vector<128x384xf32>, vector<2x384xf32> -> vector<2x384xf32>
    %88 = arith.index_cast %c2_i32 : i32 to index
    %c0_34 = arith.constant 0 : index
    %c0_35 = arith.constant 0 : index
    %89 = vector.load %arg8[%88, %c0_34, %c0_35] : memref<8x2x384xf32, #tpu.memory_space<vmem>>, vector<1x2x384xf32>
    %90 = vector.shape_cast %89 : vector<1x2x384xf32> to vector<2x384xf32>
    %91 = vector.extract_strided_slice %90 {offsets = [0, 0], sizes = [2, 128], strides = [1, 1]} : vector<2x384xf32> to vector<2x128xf32>
    %92 = vector.extract_strided_slice %87 {offsets = [0, 0], sizes = [2, 128], strides = [1, 1]} : vector<2x384xf32> to vector<2x128xf32>
    %93 = arith.addf %91, %92 : vector<2x128xf32>
    %94 = arith.negf %93 : vector<2x128xf32>
    %95 = math.exp %94 : vector<2x128xf32>
    %cst_36 = arith.constant 1.000000e+00 : f32
    %96 = vector.broadcast %cst_36 : f32 to vector<2x128xf32>
    %97 = arith.addf %96, %95 : vector<2x128xf32>
    %98 = arith.divf %96, %97 : vector<2x128xf32>
    %99 = vector.extract_strided_slice %90 {offsets = [0, 128], sizes = [2, 128], strides = [1, 1]} : vector<2x384xf32> to vector<2x128xf32>
    %100 = vector.extract_strided_slice %87 {offsets = [0, 128], sizes = [2, 128], strides = [1, 1]} : vector<2x384xf32> to vector<2x128xf32>
    %101 = arith.addf %99, %100 : vector<2x128xf32>
    %102 = arith.negf %101 : vector<2x128xf32>
    %103 = math.exp %102 : vector<2x128xf32>
    %cst_37 = arith.constant 1.000000e+00 : f32
    %104 = vector.broadcast %cst_37 : f32 to vector<2x128xf32>
    %105 = arith.addf %104, %103 : vector<2x128xf32>
    %106 = arith.divf %104, %105 : vector<2x128xf32>
    %107 = vector.extract_strided_slice %90 {offsets = [0, 256], sizes = [2, 128], strides = [1, 1]} : vector<2x384xf32> to vector<2x128xf32>
    %108 = vector.extract_strided_slice %87 {offsets = [0, 256], sizes = [2, 128], strides = [1, 1]} : vector<2x384xf32> to vector<2x128xf32>
    %109 = arith.addf %108, %15 : vector<2x128xf32>
    %110 = arith.mulf %98, %109 : vector<2x128xf32>
    %111 = arith.addf %107, %110 : vector<2x128xf32>
    %112 = math.tanh %111 : vector<2x128xf32>
    %cst_38 = arith.constant 1.000000e+00 : f32
    %113 = vector.broadcast %cst_38 : f32 to vector<2x128xf32>
    %114 = arith.subf %113, %106 : vector<2x128xf32>
    %115 = arith.mulf %114, %112 : vector<2x128xf32>
    %116 = arith.mulf %106, %82 : vector<2x128xf32>
    %117 = arith.addf %115, %116 : vector<2x128xf32>
    %118 = arith.index_cast %c2_i32 : i32 to index
    %c0_39 = arith.constant 0 : index
    %c0_40 = arith.constant 0 : index
    %119 = vector.load %arg6[%118, %c0_39, %c0_40] : memref<8x2x128xf32, #tpu.memory_space<vmem>>, vector<1x2x128xf32>
    %120 = vector.shape_cast %119 : vector<1x2x128xf32> to vector<2x128xf32>
    %121 = vector.shape_cast %117 : vector<2x128xf32> to vector<1x2x128xf32>
    tpu.vector_store %arg6[%118, %c0_39, %c0_40], %121 {strides = array<i32>} : memref<8x2x128xf32, #tpu.memory_space<vmem>>, vector<1x2x128xf32>,
    %c3_i32 = arith.constant 3 : i32
    %cst_41 = arith.constant dense<0.000000e+00> : vector<2x384xf32>
    %122 = tpu.matmul %117, %12, %cst_41 {dimension_numbers = #tpu.dot_dimension_numbers<[1], [0], [0], [1], [0, 0, 1, 1], [], []>} : vector<2x128xf32>, vector<128x384xf32>, vector<2x384xf32> -> vector<2x384xf32>
    %123 = arith.index_cast %c3_i32 : i32 to index
    %c0_42 = arith.constant 0 : index
    %c0_43 = arith.constant 0 : index
    %124 = vector.load %arg8[%123, %c0_42, %c0_43] : memref<8x2x384xf32, #tpu.memory_space<vmem>>, vector<1x2x384xf32>
    %125 = vector.shape_cast %124 : vector<1x2x384xf32> to vector<2x384xf32>
    %126 = vector.extract_strided_slice %125 {offsets = [0, 0], sizes = [2, 128], strides = [1, 1]} : vector<2x384xf32> to vector<2x128xf32>
    %127 = vector.extract_strided_slice %122 {offsets = [0, 0], sizes = [2, 128], strides = [1, 1]} : vector<2x384xf32> to vector<2x128xf32>
    %128 = arith.addf %126, %127 : vector<2x128xf32>
    %129 = arith.negf %128 : vector<2x128xf32>
    %130 = math.exp %129 : vector<2x128xf32>
    %cst_44 = arith.constant 1.000000e+00 : f32
    %131 = vector.broadcast %cst_44 : f32 to vector<2x128xf32>
    %132 = arith.addf %131, %130 : vector<2x128xf32>
    %133 = arith.divf %131, %132 : vector<2x128xf32>
    %134 = vector.extract_strided_slice %125 {offsets = [0, 128], sizes = [2, 128], strides = [1, 1]} : vector<2x384xf32> to vector<2x128xf32>
    %135 = vector.extract_strided_slice %122 {offsets = [0, 128], sizes = [2, 128], strides = [1, 1]} : vector<2x384xf32> to vector<2x128xf32>
    %136 = arith.addf %134, %135 : vector<2x128xf32>
    %137 = arith.negf %136 : vector<2x128xf32>
    %138 = math.exp %137 : vector<2x128xf32>
    %cst_45 = arith.constant 1.000000e+00 : f32
    %139 = vector.broadcast %cst_45 : f32 to vector<2x128xf32>
    %140 = arith.addf %139, %138 : vector<2x128xf32>
    %141 = arith.divf %139, %140 : vector<2x128xf32>
    %142 = vector.extract_strided_slice %125 {offsets = [0, 256], sizes = [2, 128], strides = [1, 1]} : vector<2x384xf32> to vector<2x128xf32>
    %143 = vector.extract_strided_slice %122 {offsets = [0, 256], sizes = [2, 128], strides = [1, 1]} : vector<2x384xf32> to vector<2x128xf32>
    %144 = arith.addf %143, %15 : vector<2x128xf32>
    %145 = arith.mulf %133, %144 : vector<2x128xf32>
    %146 = arith.addf %142, %145 : vector<2x128xf32>
    %147 = math.tanh %146 : vector<2x128xf32>
    %cst_46 = arith.constant 1.000000e+00 : f32
    %148 = vector.broadcast %cst_46 : f32 to vector<2x128xf32>
    %149 = arith.subf %148, %141 : vector<2x128xf32>
    %150 = arith.mulf %149, %147 : vector<2x128xf32>
    %151 = arith.mulf %141, %117 : vector<2x128xf32>
    %152 = arith.addf %150, %151 : vector<2x128xf32>
    %153 = arith.index_cast %c3_i32 : i32 to index
    %c0_47 = arith.constant 0 : index
    %c0_48 = arith.constant 0 : index
    %154 = vector.load %arg6[%153, %c0_47, %c0_48] : memref<8x2x128xf32, #tpu.memory_space<vmem>>, vector<1x2x128xf32>
    %155 = vector.shape_cast %154 : vector<1x2x128xf32> to vector<2x128xf32>
    %156 = vector.shape_cast %152 : vector<2x128xf32> to vector<1x2x128xf32>
    tpu.vector_store %arg6[%153, %c0_47, %c0_48], %156 {strides = array<i32>} : memref<8x2x128xf32, #tpu.memory_space<vmem>>, vector<1x2x128xf32>,
    %c4_i32 = arith.constant 4 : i32
    %cst_49 = arith.constant dense<0.000000e+00> : vector<2x384xf32>
    %157 = tpu.matmul %152, %12, %cst_49 {dimension_numbers = #tpu.dot_dimension_numbers<[1], [0], [0], [1], [0, 0, 1, 1], [], []>} : vector<2x128xf32>, vector<128x384xf32>, vector<2x384xf32> -> vector<2x384xf32>
    %158 = arith.index_cast %c4_i32 : i32 to index
    %c0_50 = arith.constant 0 : index
    %c0_51 = arith.constant 0 : index
    %159 = vector.load %arg8[%158, %c0_50, %c0_51] : memref<8x2x384xf32, #tpu.memory_space<vmem>>, vector<1x2x384xf32>
    %160 = vector.shape_cast %159 : vector<1x2x384xf32> to vector<2x384xf32>
    %161 = vector.extract_strided_slice %160 {offsets = [0, 0], sizes = [2, 128], strides = [1, 1]} : vector<2x384xf32> to vector<2x128xf32>
    %162 = vector.extract_strided_slice %157 {offsets = [0, 0], sizes = [2, 128], strides = [1, 1]} : vector<2x384xf32> to vector<2x128xf32>
    %163 = arith.addf %161, %162 : vector<2x128xf32>
    %164 = arith.negf %163 : vector<2x128xf32>
    %165 = math.exp %164 : vector<2x128xf32>
    %cst_52 = arith.constant 1.000000e+00 : f32
    %166 = vector.broadcast %cst_52 : f32 to vector<2x128xf32>
    %167 = arith.addf %166, %165 : vector<2x128xf32>
    %168 = arith.divf %166, %167 : vector<2x128xf32>
    %169 = vector.extract_strided_slice %160 {offsets = [0, 128], sizes = [2, 128], strides = [1, 1]} : vector<2x384xf32> to vector<2x128xf32>
    %170 = vector.extract_strided_slice %157 {offsets = [0, 128], sizes = [2, 128], strides = [1, 1]} : vector<2x384xf32> to vector<2x128xf32>
    %171 = arith.addf %169, %170 : vector<2x128xf32>
    %172 = arith.negf %171 : vector<2x128xf32>
    %173 = math.exp %172 : vector<2x128xf32>
    %cst_53 = arith.constant 1.000000e+00 : f32
    %174 = vector.broadcast %cst_53 : f32 to vector<2x128xf32>
    %175 = arith.addf %174, %173 : vector<2x128xf32>
    %176 = arith.divf %174, %175 : vector<2x128xf32>
    %177 = vector.extract_strided_slice %160 {offsets = [0, 256], sizes = [2, 128], strides = [1, 1]} : vector<2x384xf32> to vector<2x128xf32>
    %178 = vector.extract_strided_slice %157 {offsets = [0, 256], sizes = [2, 128], strides = [1, 1]} : vector<2x384xf32> to vector<2x128xf32>
    %179 = arith.addf %178, %15 : vector<2x128xf32>
    %180 = arith.mulf %168, %179 : vector<2x128xf32>
    %181 = arith.addf %177, %180 : vector<2x128xf32>
    %182 = math.tanh %181 : vector<2x128xf32>
    %cst_54 = arith.constant 1.000000e+00 : f32
    %183 = vector.broadcast %cst_54 : f32 to vector<2x128xf32>
    %184 = arith.subf %183, %176 : vector<2x128xf32>
    %185 = arith.mulf %184, %182 : vector<2x128xf32>
    %186 = arith.mulf %176, %152 : vector<2x128xf32>
    %187 = arith.addf %185, %186 : vector<2x128xf32>
    %188 = arith.index_cast %c4_i32 : i32 to index
    %c0_55 = arith.constant 0 : index
    %c0_56 = arith.constant 0 : index
    %189 = vector.load %arg6[%188, %c0_55, %c0_56] : memref<8x2x128xf32, #tpu.memory_space<vmem>>, vector<1x2x128xf32>
    %190 = vector.shape_cast %189 : vector<1x2x128xf32> to vector<2x128xf32>
    %191 = vector.shape_cast %187 : vector<2x128xf32> to vector<1x2x128xf32>
    tpu.vector_store %arg6[%188, %c0_55, %c0_56], %191 {strides = array<i32>} : memref<8x2x128xf32, #tpu.memory_space<vmem>>, vector<1x2x128xf32>,
    %c5_i32 = arith.constant 5 : i32
    %cst_57 = arith.constant dense<0.000000e+00> : vector<2x384xf32>
    %192 = tpu.matmul %187, %12, %cst_57 {dimension_numbers = #tpu.dot_dimension_numbers<[1], [0], [0], [1], [0, 0, 1, 1], [], []>} : vector<2x128xf32>, vector<128x384xf32>, vector<2x384xf32> -> vector<2x384xf32>
    %193 = arith.index_cast %c5_i32 : i32 to index
    %c0_58 = arith.constant 0 : index
    %c0_59 = arith.constant 0 : index
    %194 = vector.load %arg8[%193, %c0_58, %c0_59] : memref<8x2x384xf32, #tpu.memory_space<vmem>>, vector<1x2x384xf32>
    %195 = vector.shape_cast %194 : vector<1x2x384xf32> to vector<2x384xf32>
    %196 = vector.extract_strided_slice %195 {offsets = [0, 0], sizes = [2, 128], strides = [1, 1]} : vector<2x384xf32> to vector<2x128xf32>
    %197 = vector.extract_strided_slice %192 {offsets = [0, 0], sizes = [2, 128], strides = [1, 1]} : vector<2x384xf32> to vector<2x128xf32>
    %198 = arith.addf %196, %197 : vector<2x128xf32>
    %199 = arith.negf %198 : vector<2x128xf32>
    %200 = math.exp %199 : vector<2x128xf32>
    %cst_60 = arith.constant 1.000000e+00 : f32
    %201 = vector.broadcast %cst_60 : f32 to vector<2x128xf32>
    %202 = arith.addf %201, %200 : vector<2x128xf32>
    %203 = arith.divf %201, %202 : vector<2x128xf32>
    %204 = vector.extract_strided_slice %195 {offsets = [0, 128], sizes = [2, 128], strides = [1, 1]} : vector<2x384xf32> to vector<2x128xf32>
    %205 = vector.extract_strided_slice %192 {offsets = [0, 128], sizes = [2, 128], strides = [1, 1]} : vector<2x384xf32> to vector<2x128xf32>
    %206 = arith.addf %204, %205 : vector<2x128xf32>
    %207 = arith.negf %206 : vector<2x128xf32>
    %208 = math.exp %207 : vector<2x128xf32>
    %cst_61 = arith.constant 1.000000e+00 : f32
    %209 = vector.broadcast %cst_61 : f32 to vector<2x128xf32>
    %210 = arith.addf %209, %208 : vector<2x128xf32>
    %211 = arith.divf %209, %210 : vector<2x128xf32>
    %212 = vector.extract_strided_slice %195 {offsets = [0, 256], sizes = [2, 128], strides = [1, 1]} : vector<2x384xf32> to vector<2x128xf32>
    %213 = vector.extract_strided_slice %192 {offsets = [0, 256], sizes = [2, 128], strides = [1, 1]} : vector<2x384xf32> to vector<2x128xf32>
    %214 = arith.addf %213, %15 : vector<2x128xf32>
    %215 = arith.mulf %203, %214 : vector<2x128xf32>
    %216 = arith.addf %212, %215 : vector<2x128xf32>
    %217 = math.tanh %216 : vector<2x128xf32>
    %cst_62 = arith.constant 1.000000e+00 : f32
    %218 = vector.broadcast %cst_62 : f32 to vector<2x128xf32>
    %219 = arith.subf %218, %211 : vector<2x128xf32>
    %220 = arith.mulf %219, %217 : vector<2x128xf32>
    %221 = arith.mulf %211, %187 : vector<2x128xf32>
    %222 = arith.addf %220, %221 : vector<2x128xf32>
    %223 = arith.index_cast %c5_i32 : i32 to index
    %c0_63 = arith.constant 0 : index
    %c0_64 = arith.constant 0 : index
    %224 = vector.load %arg6[%223, %c0_63, %c0_64] : memref<8x2x128xf32, #tpu.memory_space<vmem>>, vector<1x2x128xf32>
    %225 = vector.shape_cast %224 : vector<1x2x128xf32> to vector<2x128xf32>
    %226 = vector.shape_cast %222 : vector<2x128xf32> to vector<1x2x128xf32>
    tpu.vector_store %arg6[%223, %c0_63, %c0_64], %226 {strides = array<i32>} : memref<8x2x128xf32, #tpu.memory_space<vmem>>, vector<1x2x128xf32>,
    %c6_i32 = arith.constant 6 : i32
    %cst_65 = arith.constant dense<0.000000e+00> : vector<2x384xf32>
    %227 = tpu.matmul %222, %12, %cst_65 {dimension_numbers = #tpu.dot_dimension_numbers<[1], [0], [0], [1], [0, 0, 1, 1], [], []>} : vector<2x128xf32>, vector<128x384xf32>, vector<2x384xf32> -> vector<2x384xf32>
    %228 = arith.index_cast %c6_i32 : i32 to index
    %c0_66 = arith.constant 0 : index
    %c0_67 = arith.constant 0 : index
    %229 = vector.load %arg8[%228, %c0_66, %c0_67] : memref<8x2x384xf32, #tpu.memory_space<vmem>>, vector<1x2x384xf32>
    %230 = vector.shape_cast %229 : vector<1x2x384xf32> to vector<2x384xf32>
    %231 = vector.extract_strided_slice %230 {offsets = [0, 0], sizes = [2, 128], strides = [1, 1]} : vector<2x384xf32> to vector<2x128xf32>
    %232 = vector.extract_strided_slice %227 {offsets = [0, 0], sizes = [2, 128], strides = [1, 1]} : vector<2x384xf32> to vector<2x128xf32>
    %233 = arith.addf %231, %232 : vector<2x128xf32>
    %234 = arith.negf %233 : vector<2x128xf32>
    %235 = math.exp %234 : vector<2x128xf32>
    %cst_68 = arith.constant 1.000000e+00 : f32
    %236 = vector.broadcast %cst_68 : f32 to vector<2x128xf32>
    %237 = arith.addf %236, %235 : vector<2x128xf32>
    %238 = arith.divf %236, %237 : vector<2x128xf32>
    %239 = vector.extract_strided_slice %230 {offsets = [0, 128], sizes = [2, 128], strides = [1, 1]} : vector<2x384xf32> to vector<2x128xf32>
    %240 = vector.extract_strided_slice %227 {offsets = [0, 128], sizes = [2, 128], strides = [1, 1]} : vector<2x384xf32> to vector<2x128xf32>
    %241 = arith.addf %239, %240 : vector<2x128xf32>
    %242 = arith.negf %241 : vector<2x128xf32>
    %243 = math.exp %242 : vector<2x128xf32>
    %cst_69 = arith.constant 1.000000e+00 : f32
    %244 = vector.broadcast %cst_69 : f32 to vector<2x128xf32>
    %245 = arith.addf %244, %243 : vector<2x128xf32>
    %246 = arith.divf %244, %245 : vector<2x128xf32>
    %247 = vector.extract_strided_slice %230 {offsets = [0, 256], sizes = [2, 128], strides = [1, 1]} : vector<2x384xf32> to vector<2x128xf32>
    %248 = vector.extract_strided_slice %227 {offsets = [0, 256], sizes = [2, 128], strides = [1, 1]} : vector<2x384xf32> to vector<2x128xf32>
    %249 = arith.addf %248, %15 : vector<2x128xf32>
    %250 = arith.mulf %238, %249 : vector<2x128xf32>
    %251 = arith.addf %247, %250 : vector<2x128xf32>
    %252 = math.tanh %251 : vector<2x128xf32>
    %cst_70 = arith.constant 1.000000e+00 : f32
    %253 = vector.broadcast %cst_70 : f32 to vector<2x128xf32>
    %254 = arith.subf %253, %246 : vector<2x128xf32>
    %255 = arith.mulf %254, %252 : vector<2x128xf32>
    %256 = arith.mulf %246, %222 : vector<2x128xf32>
    %257 = arith.addf %255, %256 : vector<2x128xf32>
    %258 = arith.index_cast %c6_i32 : i32 to index
    %c0_71 = arith.constant 0 : index
    %c0_72 = arith.constant 0 : index
    %259 = vector.load %arg6[%258, %c0_71, %c0_72] : memref<8x2x128xf32, #tpu.memory_space<vmem>>, vector<1x2x128xf32>
    %260 = vector.shape_cast %259 : vector<1x2x128xf32> to vector<2x128xf32>
    %261 = vector.shape_cast %257 : vector<2x128xf32> to vector<1x2x128xf32>
    tpu.vector_store %arg6[%258, %c0_71, %c0_72], %261 {strides = array<i32>} : memref<8x2x128xf32, #tpu.memory_space<vmem>>, vector<1x2x128xf32>,
    %c7_i32 = arith.constant 7 : i32
    %cst_73 = arith.constant dense<0.000000e+00> : vector<2x384xf32>
    %262 = tpu.matmul %257, %12, %cst_73 {dimension_numbers = #tpu.dot_dimension_numbers<[1], [0], [0], [1], [0, 0, 1, 1], [], []>} : vector<2x128xf32>, vector<128x384xf32>, vector<2x384xf32> -> vector<2x384xf32>
    %263 = arith.index_cast %c7_i32 : i32 to index
    %c0_74 = arith.constant 0 : index
    %c0_75 = arith.constant 0 : index
    %264 = vector.load %arg8[%263, %c0_74, %c0_75] : memref<8x2x384xf32, #tpu.memory_space<vmem>>, vector<1x2x384xf32>
    %265 = vector.shape_cast %264 : vector<1x2x384xf32> to vector<2x384xf32>
    %266 = vector.extract_strided_slice %265 {offsets = [0, 0], sizes = [2, 128], strides = [1, 1]} : vector<2x384xf32> to vector<2x128xf32>
    %267 = vector.extract_strided_slice %262 {offsets = [0, 0], sizes = [2, 128], strides = [1, 1]} : vector<2x384xf32> to vector<2x128xf32>
    %268 = arith.addf %266, %267 : vector<2x128xf32>
    %269 = arith.negf %268 : vector<2x128xf32>
    %270 = math.exp %269 : vector<2x128xf32>
    %cst_76 = arith.constant 1.000000e+00 : f32
    %271 = vector.broadcast %cst_76 : f32 to vector<2x128xf32>
    %272 = arith.addf %271, %270 : vector<2x128xf32>
    %273 = arith.divf %271, %272 : vector<2x128xf32>
    %274 = vector.extract_strided_slice %265 {offsets = [0, 128], sizes = [2, 128], strides = [1, 1]} : vector<2x384xf32> to vector<2x128xf32>
    %275 = vector.extract_strided_slice %262 {offsets = [0, 128], sizes = [2, 128], strides = [1, 1]} : vector<2x384xf32> to vector<2x128xf32>
    %276 = arith.addf %274, %275 : vector<2x128xf32>
    %277 = arith.negf %276 : vector<2x128xf32>
    %278 = math.exp %277 : vector<2x128xf32>
    %cst_77 = arith.constant 1.000000e+00 : f32
    %279 = vector.broadcast %cst_77 : f32 to vector<2x128xf32>
    %280 = arith.addf %279, %278 : vector<2x128xf32>
    %281 = arith.divf %279, %280 : vector<2x128xf32>
    %282 = vector.extract_strided_slice %265 {offsets = [0, 256], sizes = [2, 128], strides = [1, 1]} : vector<2x384xf32> to vector<2x128xf32>
    %283 = vector.extract_strided_slice %262 {offsets = [0, 256], sizes = [2, 128], strides = [1, 1]} : vector<2x384xf32> to vector<2x128xf32>
    %284 = arith.addf %283, %15 : vector<2x128xf32>
    %285 = arith.mulf %273, %284 : vector<2x128xf32>
    %286 = arith.addf %282, %285 : vector<2x128xf32>
    %287 = math.tanh %286 : vector<2x128xf32>
    %cst_78 = arith.constant 1.000000e+00 : f32
    %288 = vector.broadcast %cst_78 : f32 to vector<2x128xf32>
    %289 = arith.subf %288, %281 : vector<2x128xf32>
    %290 = arith.mulf %289, %287 : vector<2x128xf32>
    %291 = arith.mulf %281, %257 : vector<2x128xf32>
    %292 = arith.addf %290, %291 : vector<2x128xf32>
    %293 = arith.index_cast %c7_i32 : i32 to index
    %c0_79 = arith.constant 0 : index
    %c0_80 = arith.constant 0 : index
    %294 = vector.load %arg6[%293, %c0_79, %c0_80] : memref<8x2x128xf32, #tpu.memory_space<vmem>>, vector<1x2x128xf32>
    %295 = vector.shape_cast %294 : vector<1x2x128xf32> to vector<2x128xf32>
    %296 = vector.shape_cast %292 : vector<2x128xf32> to vector<1x2x128xf32>
    tpu.vector_store %arg6[%293, %c0_79, %c0_80], %296 {strides = array<i32>} : memref<8x2x128xf32, #tpu.memory_space<vmem>>, vector<1x2x128xf32>,
    %c8_i32 = arith.constant 8 : i32
    %c0_81 = arith.constant 0 : index
    %c0_82 = arith.constant 0 : index
    %297 = vector.load %arg7[%c0_81, %c0_82] : memref<2x128xf32, #tpu.memory_space<vmem>>, vector<2x128xf32>
    tpu.vector_store %arg7[%c0_81, %c0_82], %292 {strides = array<i32>} : memref<2x128xf32, #tpu.memory_space<vmem>>, vector<2x128xf32>,
    return
  }
  func.func @transform_0(%arg0: i32) -> (i32, i32, i32) {
    %c0_i32 = arith.constant 0 : i32
    %c0_i32_0 = arith.constant 0 : i32
    %c0_i32_1 = arith.constant 0 : i32
    return %arg0, %c0_i32, %c0_i32_0 : i32, i32, i32
  }
  func.func @transform_1(%arg0: i32) -> (i32, i32) {
    %c0_i32 = arith.constant 0 : i32
    %c0_i32_0 = arith.constant 0 : i32
    %c0_i32_1 = arith.constant 0 : i32
    return %c0_i32, %c0_i32_0 : i32, i32
  }
  func.func @transform_2(%arg0: i32) -> (i32, i32) {
    %c0_i32 = arith.constant 0 : i32
    %c0_i32_0 = arith.constant 0 : i32
    %c0_i32_1 = arith.constant 0 : i32
    return %c0_i32, %c0_i32_0 : i32, i32
  }
  func.func @transform_3(%arg0: i32) -> (i32, i32) {
    %c0_i32 = arith.constant 0 : i32
    %c0_i32_0 = arith.constant 0 : i32
    %c0_i32_1 = arith.constant 0 : i32
    return %c0_i32, %c0_i32_0 : i32, i32
  }
  func.func @transform_4(%arg0: i32) -> (i32, i32) {
    %c0_i32 = arith.constant 0 : i32
    %c0_i32_0 = arith.constant 0 : i32
    %c0_i32_1 = arith.constant 0 : i32
    return %c0_i32, %c0_i32_0 : i32, i32
  }
  func.func @transform_5(%arg0: i32) -> (i32, i32, i32) {
    %c0_i32 = arith.constant 0 : i32
    %c0_i32_0 = arith.constant 0 : i32
    %c0_i32_1 = arith.constant 0 : i32
    return %arg0, %c0_i32, %c0_i32_0 : i32, i32, i32
  }
}

</mosaic_0001>

<bundles_post_ra>
// kernel: rnn_forward.5
= control target key start
LH: loop header
LB: loop body
LE: loop exit
PB: predicated region body
PF: predicated region fallthrough
CT: control target
= control target key end

     0   :  { %s165_s1 = inlined_call_operand.vmem [shape: f32[128,128], index: 1, kind: input, shape index: {}]   ;;  %s166_s2 = inlined_call_operand.vmem [shape: f32[1,128], index: 2, kind: input, shape index: {}]   ;;  %s167_s0 = inlined_call_operand.vmem [shape: f32[16,128], index: 0, kind: input, shape index: {}]   ;;  %s168_s3 = inlined_call_operand.vmem [shape: f32[16,128], index: 3, kind: output, shape index: {}]  }
   0x1   :  { %v31_v0 = vld [vmem:[%s165_s1 + $0x78] sm:$0xff]  ;;  %v30_v1 = vld [vmem:[%s165_s1 + $0x70] sm:$0xff]  ;;  %v29_v2 = vld [vmem:[%s165_s1 + $0x68] sm:$0xff] }
   0x2   :  { %36 = vmatpush.msra.mxu0 %v31_v0  ;;  %65 = vmatpush.msra.mxu1 %v31_v0  ;;  %v28_v3 = vld [vmem:[%s165_s1 + $0x60] sm:$0xff]  ;;  %v27_v4 = vld [vmem:[%s165_s1 + $0x58] sm:$0xff]  ;;  %v26_v5 = vld [vmem:[%s165_s1 + $0x50] sm:$0xff] }
   0x3   :  { %v25_v6 = vld [vmem:[%s165_s1 + $0x48] sm:$0xff]  ;;  %v24_v7 = vld [vmem:[%s165_s1 + $0x40] sm:$0xff]  ;;  %v23_v8 = vld [vmem:[%s165_s1 + $0x38] sm:$0xff] }
   0x4   :  { %37 = vmatpush.msra.mxu0 %v30_v1  ;;  %66 = vmatpush.msra.mxu1 %v30_v1  ;;  %v22_v9 = vld [vmem:[%s165_s1 + $0x30] sm:$0xff]  ;;  %v21_v10 = vld [vmem:[%s165_s1 + $0x28] sm:$0xff]  ;;  %v20_v11 = vld [vmem:[%s165_s1 + $0x20] sm:$0xff] }
   0x5   :  { %v19_v12 = vld [vmem:[%s165_s1 + $0x18] sm:$0xff]  ;;  %v18_v13 = vld [vmem:[%s165_s1 + $0x10] sm:$0xff]  ;;  %v17_v14 = vld [vmem:[%s165_s1 + $0x8] sm:$0xff] }
   0x6   :  { %38 = vmatpush.msra.mxu0 %v29_v2  ;;  %67 = vmatpush.msra.mxu1 %v29_v2  ;;  %v16_v15 = vld [vmem:[%s165_s1] sm:$0xff]  ;;  %v15_v17 = vld [vmem:[%s167_s0 + $0x8] sm:$0xff] }
   0x7   :  { %v14_v16 = vld [vmem:[%s167_s0] sm:$0xff] }
   0x8   :  { %39 = vmatpush.msra.mxu0 %v28_v3  ;;  %68 = vmatpush.msra.mxu1 %v28_v3  ;;  %v81_v18 = vld [vmem:[%s166_s2] ss:$0 sm:$0xff] }
   0xa   :  { %40 = vmatpush.msra.mxu0 %v27_v4  ;;  %69 = vmatpush.msra.mxu1 %v27_v4 }
   0xc   :  { %41 = vmatpush.msra.mxu0 %v26_v5  ;;  %70 = vmatpush.msra.mxu1 %v26_v5 }
   0xe   :  { %42 = vmatpush.msra.mxu0 %v25_v6  ;;  %71 = vmatpush.msra.mxu1 %v25_v6 }
  0x10   :  { %43 = vmatpush.msra.mxu0 %v24_v7  ;;  %72 = vmatpush.msra.mxu1 %v24_v7 }
  0x12   :  { %44 = vmatpush.msra.mxu0 %v23_v8  ;;  %73 = vmatpush.msra.mxu1 %v23_v8 }
  0x14   :  { %45 = vmatpush.msra.mxu0 %v22_v9  ;;  %74 = vmatpush.msra.mxu1 %v22_v9 }
  0x16   :  { %46 = vmatpush.msra.mxu0 %v21_v10  ;;  %75 = vmatpush.msra.mxu1 %v21_v10 }
  0x18   :  { %47 = vmatpush.msra.mxu0 %v20_v11  ;;  %76 = vmatpush.msra.mxu1 %v20_v11 }
  0x1a   :  { %48 = vmatpush.msra.mxu0 %v19_v12  ;;  %77 = vmatpush.msra.mxu1 %v19_v12 }
  0x1c   :  { %49 = vmatpush.msra.mxu0 %v18_v13  ;;  %78 = vmatpush.msra.mxu1 %v18_v13 }
  0x1e   :  { %50 = vmatpush.msra.mxu0 %v17_v14  ;;  %79 = vmatpush.msra.mxu1 %v17_v14 }
  0x20   :  { %51 = vmatpush.msra.mxu0 %v16_v15  ;;  %80 = vmatpush.msra.mxu1 %v16_v15 }
  0x21   :  { %52 = vmatmul.f32.vlgmr.msra.gmra.mxu0 %v14_v16  ;;  %55 = vmatmul.f32.vlgmr.msra.gmra.mxu1 %v15_v17 }
  0x9e   :  { %v53_v19 = vpop.f32.mrf.mxu0  ;;  %v56_v20 = vpop.f32.mrf.mxu1 }
  0x9f   :  { %v54_v21 = vadd.f32 %v81_v18, %v53_v19  ;;  %v57_v22 = vadd.f32 %v81_v18, %v56_v20 }
  0xa1   :  { %59 = vst [vmem:[%s168_s3] sm:$0xff] %v54_v21 }
  0xa2   :  { %60 = vst [vmem:[%s168_s3 + $0x8] sm:$0xff] %v57_v22 }

// kernel: rnn_forward.4
= control target key start
LH: loop header
LB: loop body
LE: loop exit
PB: predicated region body
PF: predicated region fallthrough
CT: control target
= control target key end

     0   :  { %10 = vsyncpa [#allocation5], 0  ;;  %s2242_s0 = inlined_call_operand.vmem [shape: f32[8,2,128], index: 0, kind: input, shape index: {}]   ;;  %s2243_s1 = inlined_call_operand.hbm [shape: f32[128,384], index: 1, kind: input, shape index: {}]   ;;  %s2244_s2 = inlined_call_operand.vmem [shape: f32[1,384], index: 2, kind: input, shape index: {}]   ;;  %s2245_s3 = inlined_call_operand.hbm [shape: f32[128,384], index: 3, kind: input, shape index: {}]   ;;  %s2246_s4 = inlined_call_operand.hbm [shape: f32[1,128], index: 4, kind: input, shape index: {}]   ;;  %s2247_s5 = inlined_call_operand.vmem [shape: f32[8,2,128], index: 5, kind: output, shape index: {}]  }
   0x1   :  { %11 = vsyncpa [#allocation7], 0  ;;  %s33_s20 = sshll.u32 %s2245_s3, 4  ;;  %s1513_s21 = smov [#allocation6]   ;;  %s34_s20 = int_to_ptr.hbm [resolvable:$true] %s33_s20 }
   0x2   :  { %s35_s22 = sshll.u32 %s1513_s21, 4  ;;  %s18_s25 = sshll.u32 %s2243_s1, 4  ;;  %s36_s22 = int_to_ptr.vmem [resolvable:$true] %s35_s22  ;;  %s19_s25 = int_to_ptr.hbm [resolvable:$true] %s18_s25 }
   0x3   :  { %s1514_s26 = smov 384   ;;  %s1515_s27 = smov 24  }
   0x4   :  { %41 = dma.hbm_to_vmem [thread:$0]  %s34_s20, 6144, %s36_s22, [#allocation7], %s1514_s26, %s1514_s26, %s1515_s27  }
   0x5   :  { %s1516_s28 = smov [#allocation4]   ;;  %s47_s7 = sshll.u32 %s2246_s4, 4  ;;  %s48_s7 = int_to_ptr.hbm [resolvable:$true] %s47_s7 }
   0x6   :  { %s20_s29 = sshll.u32 %s1516_s28, 4  ;;  %s1517_s3 = smov [#allocation8]   ;;  %s21_s29 = int_to_ptr.vmem [resolvable:$true] %s20_s29 }
   0x7   :  { %26 = dma.hbm_to_vmem [thread:$0]  %s19_s25, 6144, %s21_s29, [#allocation5], %s1514_s26, %s1514_s26, %s1515_s27  }
   0x8   :  { %s49_s8 = sshll.u32 %s1517_s3, 4  ;;  %s50_s8 = int_to_ptr.vmem [resolvable:$true] %s49_s8 }
   0x9   :  { %52 = dma.hbm_to_vmem [thread:$0]  %s48_s7, 16, %s50_s8, [#allocation7]  }
   0xa   :  { %1509 = dma.done.wait [#allocation5], 6144  }
   0xb   :  { %1510 = vsyncadd [#allocation5], 4294961152 }
   0xc   :  { %1511 = dma.done.wait [#allocation7], 6160  }
   0xd   :  { %1512 = vsyncadd [#allocation7], 4294961136  ;;  %v123_v0 = vld [vmem:[#allocation4 + $0x168] sm:$0xff]  ;;  %v125_v1 = vld [vmem:[#allocation4 + $0x178] sm:$0xff]  ;;  %v1518_v11 = vmov 0.0   ;;  %vm240_vm0 = vcmask 1041408  }
   0xe   :  { %v120_v2 = vld [vmem:[#allocation4 + $0x150] sm:$0xff]  ;;  %161 = vmatpush.msra.mxu0 %v123_v0  ;;  %207 = vmatpush.msra.mxu2 %v125_v1  ;;  %v122_v3 = vld [vmem:[#allocation4 + $0x160] sm:$0xff]  ;;  %v117_v4 = vld [vmem:[#allocation4 + $0x138] sm:$0xff]  ;;  %69 = vst [vmem:[#allocation2] sm:$0x3] %v1518_v11  ;;  %vm244_vm1 = vcmask 1043458  }
   0xf   :  { %v119_v5 = vld [vmem:[#allocation4 + $0x148] sm:$0xff]  ;;  %v124_v6 = vld [vmem:[#allocation4 + $0x170] sm:$0xff]  ;;  %v121_v7 = vld [vmem:[#allocation4 + $0x158] sm:$0xff]  ;;  %vm249_vm2 = vcmask 1045508   ;;  %vm253_vm3 = vcmask 1045504   ;;  %vm242_vm4 = vcmask 1043456  }
  0x10   :  { %162 = vmatpush.msra.mxu0 %v120_v2  ;;  %208 = vmatpush.msra.mxu2 %v122_v3  ;;  %v114_v8 = vld [vmem:[#allocation4 + $0x120] sm:$0xff]  ;;  %v116_v9 = vld [vmem:[#allocation4 + $0x130] sm:$0xff]  ;;  %v111_v12 = vld [vmem:[#allocation4 + $0x108] sm:$0xff]  ;;  %vm246_vm5 = vcmask 1045506  }
  0x11   :  { %184 = vmatpush.msra.mxu1 %v124_v6  ;;  %v118_v10 = vld [vmem:[#allocation4 + $0x140] sm:$0xff]  ;;  %v113_v13 = vld [vmem:[#allocation4 + $0x118] sm:$0xff]  ;;  %v1558_v14 = vld [vmem:[#allocation6 + $0x168] sm:$0xff] }
  0x12   :  { %163 = vmatpush.msra.mxu0 %v117_v4  ;;  %209 = vmatpush.msra.mxu2 %v119_v5  ;;  %v115_v15 = vld [vmem:[#allocation4 + $0x128] sm:$0xff]  ;;  %v1560_v16 = vld [vmem:[#allocation6 + $0x150] sm:$0xff]  ;;  %v110_v18 = vld [vmem:[#allocation4 + $0x100] sm:$0xff] }
  0x13   :  { %185 = vmatpush.msra.mxu1 %v121_v7  ;;  %v108_v17 = vld [vmem:[#allocation4 + $0xf0] sm:$0xff]  ;;  %337 = vmatpush.msra.mxu3 %v1558_v14  ;;  %v1563_v20 = vld [vmem:[#allocation6 + $0x138] sm:$0xff]  ;;  %v107_v22 = vld [vmem:[#allocation4 + $0xe8] sm:$0xff] }
  0x14   :  { %164 = vmatpush.msra.mxu0 %v114_v8  ;;  %210 = vmatpush.msra.mxu2 %v116_v9  ;;  %v112_v19 = vld [vmem:[#allocation4 + $0x110] sm:$0xff]  ;;  %v105_v21 = vld [vmem:[#allocation4 + $0xd8] sm:$0xff]  ;;  %v1566_v24 = vld [vmem:[#allocation6 + $0x120] sm:$0xff] }
  0x15   :  { %186 = vmatpush.msra.mxu1 %v118_v10  ;;  %338 = vmatpush.msra.mxu3 %v1560_v16  ;;  %v109_v23 = vld [vmem:[#allocation4 + $0xf8] sm:$0xff]  ;;  %v102_v25 = vld [vmem:[#allocation4 + $0xc0] sm:$0xff]  ;;  %v104_v26 = vld [vmem:[#allocation4 + $0xd0] sm:$0xff] }
  0x16   :  { %165 = vmatpush.msra.mxu0 %v111_v12  ;;  %211 = vmatpush.msra.mxu2 %v113_v13  ;;  %v106_v27 = vld [vmem:[#allocation4 + $0xe0] sm:$0xff]  ;;  %v1569_v28 = vld [vmem:[#allocation6 + $0x108] sm:$0xff]  ;;  %v101_v30 = vld [vmem:[#allocation4 + $0xb8] sm:$0xff] }
  0x17   :  { %187 = vmatpush.msra.mxu1 %v115_v15  ;;  %339 = vmatpush.msra.mxu3 %v1563_v20  ;;  %v99_v29 = vld [vmem:[#allocation4 + $0xa8] sm:$0xff]  ;;  %v96_v31 = vld [vmem:[#allocation4 + $0x90] sm:$0xff]  ;;  %v98_v34 = vld [vmem:[#allocation4 + $0xa0] sm:$0xff] }
  0x18   :  { %166 = vmatpush.msra.mxu0 %v108_v17  ;;  %212 = vmatpush.msra.mxu2 %v110_v18  ;;  %v103_v32 = vld [vmem:[#allocation4 + $0xc8] sm:$0xff]  ;;  %v1572_v33 = vld [vmem:[#allocation6 + $0xf0] sm:$0xff]  ;;  %v93_v35 = vld [vmem:[#allocation4 + $0x78] sm:$0xff] }
  0x19   :  { %188 = vmatpush.msra.mxu1 %v112_v19  ;;  %340 = vmatpush.msra.mxu3 %v1566_v24  ;;  %v95_v36 = vld [vmem:[#allocation4 + $0x88] sm:$0xff]  ;;  %v100_v37 = vld [vmem:[#allocation4 + $0xb0] sm:$0xff]  ;;  %v97_v38 = vld [vmem:[#allocation4 + $0x98] sm:$0xff] }
  0x1a   :  { %167 = vmatpush.msra.mxu0 %v105_v21  ;;  %213 = vmatpush.msra.mxu2 %v107_v22  ;;  %v1575_v39 = vld [vmem:[#allocation6 + $0xd8] sm:$0xff]  ;;  %v1578_v40 = vld [vmem:[#allocation6 + $0xc0] sm:$0xff]  ;;  %v71_v42 = vld [vmem:[%s2242_s0 + $0x2] sm:$0x3] }
  0x1b   :  { %189 = vmatpush.msra.mxu1 %v109_v23  ;;  %341 = vmatpush.msra.mxu3 %v1569_v28  ;;  %v70_v41 = vld [vmem:[%s2242_s0] sm:$0x3]  ;;  %v72_v43 = vld [vmem:[%s2242_s0 + $0x4] sm:$0x3]  ;;  %v73_v44 = vld [vmem:[%s2242_s0 + $0x6] sm:$0x3] }
  0x1c   :  { %168 = vmatpush.msra.mxu0 %v102_v25  ;;  %214 = vmatpush.msra.mxu2 %v104_v26  ;;  %142 = vst [vmem:[#allocation1] ss:$4 sm:$0xff] %v70_v41  ;;  %v90_v45 = vld [vmem:[#allocation4 + $0x60] sm:$0xff]  ;;  %v92_v46 = vld [vmem:[#allocation4 + $0x70] sm:$0xff]  ;;  %v1593_v48 = vld [vmem:[#allocation6 + $0xa8] sm:$0xff] }
  0x1d   :  { %190 = vmatpush.msra.mxu1 %v106_v27  ;;  %342 = vmatpush.msra.mxu3 %v1572_v33  ;;  %144 = vst [vmem:[#allocation1 + $0x1] ss:$4 sm:$0xff] %v71_v42  ;;  %v94_v47 = vld [vmem:[#allocation4 + $0x80] sm:$0xff]  ;;  %v87_v49 = vld [vmem:[#allocation4 + $0x48] sm:$0xff]  ;;  %v89_v50 = vld [vmem:[#allocation4 + $0x58] sm:$0xff] }
  0x1e   :  { %169 = vmatpush.msra.mxu0 %v99_v29  ;;  %215 = vmatpush.msra.mxu2 %v101_v30  ;;  %146 = vst [vmem:[#allocation1 + $0x2] ss:$4 sm:$0xff] %v72_v43  ;;  %v91_v51 = vld [vmem:[#allocation4 + $0x68] sm:$0xff]  ;;  %v1596_v52 = vld [vmem:[#allocation6 + $0x90] sm:$0xff]  ;;  %v86_v54 = vld [vmem:[#allocation4 + $0x40] sm:$0xff] }
  0x1f   :  { %191 = vmatpush.msra.mxu1 %v103_v32  ;;  %343 = vmatpush.msra.mxu3 %v1575_v39  ;;  %148 = vst [vmem:[#allocation1 + $0x3] ss:$4 sm:$0xff] %v73_v44  ;;  %v84_v53 = vld [vmem:[#allocation4 + $0x30] sm:$0xff]  ;;  %v81_v55 = vld [vmem:[#allocation4 + $0x18] sm:$0xff]  ;;  %v83_v56 = vld [vmem:[#allocation4 + $0x28] sm:$0xff] }
  0x20   :  { %170 = vmatpush.msra.mxu0 %v96_v31  ;;  %216 = vmatpush.msra.mxu2 %v98_v34  ;;  %v88_v57 = vld [vmem:[#allocation4 + $0x50] sm:$0xff]  ;;  %v1599_v58 = vld [vmem:[#allocation6 + $0x78] sm:$0xff]  ;;  %v74_v59 = vld [vmem:[%s2242_s0 + $0x8] sm:$0x3] }
  0x21   :  { %192 = vmatpush.msra.mxu1 %v100_v37  ;;  %344 = vmatpush.msra.mxu3 %v1578_v40  ;;  %v75_v60 = vld [vmem:[%s2242_s0 + $0xa] sm:$0x3]  ;;  %v76_v61 = vld [vmem:[%s2242_s0 + $0xc] sm:$0x3]  ;;  %v85_v62 = vld [vmem:[#allocation4 + $0x38] sm:$0xff] }
  0x22   :  { %171 = vmatpush.msra.mxu0 %v93_v35  ;;  %217 = vmatpush.msra.mxu2 %v95_v36  ;;  %v1611_v63 = vld [vmem:[#allocation6 + $0x60] sm:$0xff]  ;;  %v77_v0 = vld [vmem:[%s2242_s0 + $0xe] sm:$0x3]  ;;  %150 = vst [vmem:[#allocation1 + $0x20] ss:$4 sm:$0xff] %v74_v59  ;;  %v1620_v6 = vld [vmem:[#allocation6 + $0x48] sm:$0xff] }
  0x23   :  { %193 = vmatpush.msra.mxu1 %v97_v38  ;;  %345 = vmatpush.msra.mxu3 %v1593_v48  ;;  %v78_v1 = vld [vmem:[#allocation4] sm:$0xff]  ;;  %v80_v2 = vld [vmem:[#allocation4 + $0x10] sm:$0xff]  ;;  %152 = vst [vmem:[#allocation1 + $0x21] ss:$4 sm:$0xff] %v75_v60  ;;  %v1622_v7 = vld [vmem:[#allocation6 + $0x158] sm:$0xff] }
  0x24   :  { %172 = vmatpush.msra.mxu0 %v90_v45  ;;  %218 = vmatpush.msra.mxu2 %v92_v46  ;;  %v1617_v4 = vld [vmem:[#allocation6 + $0x170] sm:$0xff]  ;;  %154 = vst [vmem:[#allocation1 + $0x22] ss:$4 sm:$0xff] %v76_v61  ;;  %v82_v5 = vld [vmem:[#allocation4 + $0x20] sm:$0xff]  ;;  %v79_v8 = vld [vmem:[#allocation4 + $0x8] sm:$0xff] }
  0x25   :  { %194 = vmatpush.msra.mxu1 %v94_v47  ;;  %346 = vmatpush.msra.mxu3 %v1596_v52  ;;  %156 = vst [vmem:[#allocation1 + $0x23] ss:$4 sm:$0xff] %v77_v0  ;;  %v1625_v9 = vld [vmem:[#allocation6 + $0x140] sm:$0xff]  ;;  %v1629_v10 = vld [vmem:[#allocation6 + $0x30] sm:$0xff]  ;;  %v1631_v11 = vld [vmem:[#allocation6 + $0x178] sm:$0xff] }
  0x26   :  { %173 = vmatpush.msra.mxu0 %v87_v49  ;;  %219 = vmatpush.msra.mxu2 %v89_v50  ;;  %v157_v3 = vld.sshfl [vmem:[#allocation1] sm:$0xff pattern:$0x73625140]  ;;  %2264 = vst [vmem:[#allocation11_spill] sm:$0xff] %v1629_v10  ;;  %v1637_v13 = vld [vmem:[#allocation6 + $0x18] sm:$0xff]  ;;  %v1642_v17 = vld [vmem:[#allocation6 + $0x110] sm:$0xff] }
  0x27   :  { %195 = vmatpush.msra.mxu1 %v91_v51  ;;  %347 = vmatpush.msra.mxu3 %v1599_v58  ;;  %v1634_v12 = vld [vmem:[#allocation6 + $0x128] sm:$0xff]  ;;  %2265 = vst [vmem:[#allocation12_spill] sm:$0xff] %v1637_v13  ;;  %v1639_v15 = vld [vmem:[#allocation6 + $0x160] sm:$0xff]  ;;  %v1652_v22 = vld [vmem:[#allocation6 + $0xf8] sm:$0xff] }
  0x28   :  { %174 = vmatpush.msra.mxu0 %v84_v53  ;;  %220 = vmatpush.msra.mxu2 %v86_v54  ;;  %v1646_v19 = vld [vmem:[#allocation6] sm:$0xff]  ;;  %v1648_v21 = vld [vmem:[#allocation6 + $0x148] sm:$0xff]  ;;  %v1658_v25 = vld [vmem:[#allocation6 + $0x130] sm:$0xff] }
  0x29   :  { %196 = vmatpush.msra.mxu1 %v88_v57  ;;  %348 = vmatpush.msra.mxu3 %v1611_v63  ;;  %2266 = vst [vmem:[#allocation13_spill] sm:$0xff] %v1646_v19  ;;  %v1654_v23 = vld [vmem:[#allocation2] sm:$0x3]  ;;  %v1661_v26 = vld [vmem:[#allocation6 + $0xe0] sm:$0xff]  ;;  %v1666_v27 = vld [vmem:[#allocation6 + $0x118] sm:$0xff] }
  0x2a   :  { %175 = vmatpush.msra.mxu0 %v81_v55  ;;  %221 = vmatpush.msra.mxu2 %v83_v56  ;;  %v1668_v29 = vld [vmem:[#allocation6 + $0xc8] sm:$0xff]  ;;  %v1672_v30 = vld [vmem:[#allocation6 + $0x100] sm:$0xff]  ;;  %v1674_v31 = vld [vmem:[#allocation6 + $0xb0] sm:$0xff] }
  0x2b   :  { %197 = vmatpush.msra.mxu1 %v85_v62  ;;  %349 = vmatpush.msra.mxu3 %v1620_v6  ;;  %v1679_v32 = vld [vmem:[#allocation6 + $0xe8] sm:$0xff]  ;;  %v1682_v34 = vld [vmem:[#allocation6 + $0x98] sm:$0xff]  ;;  %v1687_v35 = vld [vmem:[#allocation6 + $0xd0] sm:$0xff] }
  0x2c   :  { %176 = vmatpush.msra.mxu0 %v78_v1  ;;  %222 = vmatpush.msra.mxu2 %v80_v2  ;;  %v158_v18 = vld.sshfl [vmem:[#allocation1 + $0x20] sm:$0xff pattern:$0x73625140]  ;;  %v1695_v37 = vld [vmem:[#allocation6 + $0xb8] sm:$0xff]  ;;  %v1706_v42 = vld [vmem:[#allocation6 + $0x50] sm:$0xff] }
  0x2d   :  { %223 = vmatmul.f32.vlgmr.msra.gmra.mxu2 %v157_v3  ;;  %198 = vmatpush.msra.mxu1 %v82_v5  ;;  %v1690_v36 = vld [vmem:[#allocation6 + $0x80] sm:$0xff]  ;;  %v1698_v38 = vld [vmem:[#allocation6 + $0x68] sm:$0xff]  ;;  %v1714_v44 = vld [vmem:[#allocation6 + $0x38] sm:$0xff] }
  0x2e   :  { %357 = vmatpush.msrb.mxu0 %v1617_v4  ;;  %452 = vmatpush.msrb.mxu2 %v1558_v14  ;;  %v1703_v41 = vld [vmem:[#allocation6 + $0xa0] sm:$0xff]  ;;  %v1711_v43 = vld [vmem:[#allocation6 + $0x88] sm:$0xff]  ;;  %2267 = vst [vmem:[#allocation14_spill] sm:$0xff] %v1714_v44  ;;  %v1719_v45 = vld [vmem:[#allocation6 + $0x70] sm:$0xff] }
  0x2f   :  { %199 = vmatpush.msra.mxu1 %v79_v8  ;;  %177 = vmatmul.f32.vlgmr.msra.gmra.mxu0 %v157_v3  ;;  %v1722_v46 = vld [vmem:[#allocation6 + $0x20] sm:$0xff]  ;;  %v1727_v47 = vld [vmem:[#allocation6 + $0x58] sm:$0xff]  ;;  %v1730_v49 = vld [vmem:[#allocation6 + $0x8] sm:$0xff] }
  0x30   :  { %358 = vmatpush.msrb.mxu0 %v1622_v7  ;;  %200 = vmatmul.f32.vlgmr.msra.gmra.mxu1 %v157_v3  ;;  %2268 = vst [vmem:[#allocation15_spill] sm:$0xff] %v1722_v46  ;;  %v1735_v50 = vld [vmem:[#allocation6 + $0x40] sm:$0xff]  ;;  %v1741_v51 = vld [vmem:[#allocation6 + $0x28] sm:$0xff]  ;;  %v1746_v53 = vld [vmem:[#allocation6 + $0x10] sm:$0xff] }
  0x31   :  { %350 = vmatpush.msra.mxu3 %v1629_v10  ;;  %377 = vmatpush.msrb.mxu1 %v1631_v11  ;;  %2269 = vst [vmem:[#allocation16_spill] sm:$0xff] %v1730_v49  ;;  %v126_v54 = vld [vmem:[%s2244_s2] sm:$0x7] }
  0x32   :  { %359 = vmatpush.msrb.mxu0 %v1625_v9  ;;  %453 = vmatpush.msrb.mxu2 %v1560_v16  ;;  %2270 = vst [vmem:[#allocation17_spill] sm:$0xff] %v1741_v51  ;;  %v129_v55 = vperm.slane %v126_v54, 1  ;;  %v128_v56 = vperm.slane %v126_v54, 0  ;;  %v130_v57 = vperm.slane %v126_v54, 2 }
  0x33   :  { %351 = vmatpush.msra.mxu3 %v1637_v13  ;;  %378 = vmatpush.msrb.mxu1 %v1639_v15  ;;  %2271 = vst [vmem:[#allocation18_spill] sm:$0xff] %v1746_v53 }
  0x34   :  { %360 = vmatpush.msrb.mxu0 %v1634_v12  ;;  %454 = vmatpush.msrb.mxu2 %v1563_v20 }
  0x35   :  { %226 = vmatmul.f32.gmra.mxu2 %v158_v18  ;;  %352 = vmatpush.msra.mxu3 %v1646_v19 }
  0x36   :  { %361 = vmatpush.msrb.mxu0 %v1642_v17  ;;  %379 = vmatpush.msrb.mxu1 %v1648_v21 }
  0x37   :  { %353 = vmatmul.f32.vlgmr.msra.gmra.mxu3 %v1654_v23  ;;  %180 = vmatmul.f32.gmra.mxu0 %v158_v18 }
  0x38   :  { %362 = vmatpush.msrb.mxu0 %v1652_v22  ;;  %380 = vmatpush.msrb.mxu1 %v1658_v25 }
  0x39   :  { %203 = vmatmul.f32.gmra.mxu1 %v158_v18  ;;  %472 = vmatpush.msrb.mxu3 %v1617_v4 }
  0x3a   :  { %363 = vmatpush.msrb.mxu0 %v1661_v26  ;;  %381 = vmatpush.msrb.mxu1 %v1666_v27 }
  0x3b   :  { %473 = vmatpush.msrb.mxu3 %v1622_v7  ;;  %455 = vmatpush.msrb.mxu2 %v1566_v24 }
  0x3c   :  { %364 = vmatpush.msrb.mxu0 %v1668_v29  ;;  %382 = vmatpush.msrb.mxu1 %v1672_v30 }
  0x3d   :  { %474 = vmatpush.msrb.mxu3 %v1625_v9  ;;  %456 = vmatpush.msrb.mxu2 %v1569_v28 }
  0x3e   :  { %365 = vmatpush.msrb.mxu0 %v1674_v31  ;;  %383 = vmatpush.msrb.mxu1 %v1679_v32 }
  0x3f   :  { %475 = vmatpush.msrb.mxu3 %v1634_v12  ;;  %457 = vmatpush.msrb.mxu2 %v1572_v33 }
  0x40   :  { %366 = vmatpush.msrb.mxu0 %v1682_v34  ;;  %384 = vmatpush.msrb.mxu1 %v1687_v35 }
  0x41   :  { %476 = vmatpush.msrb.mxu3 %v1642_v17  ;;  %458 = vmatpush.msrb.mxu2 %v1575_v39 }
  0x42   :  { %367 = vmatpush.msrb.mxu0 %v1690_v36  ;;  %385 = vmatpush.msrb.mxu1 %v1695_v37 }
  0x43   :  { %477 = vmatpush.msrb.mxu3 %v1652_v22  ;;  %459 = vmatpush.msrb.mxu2 %v1578_v40 }
  0x44   :  { %368 = vmatpush.msrb.mxu0 %v1698_v38  ;;  %386 = vmatpush.msrb.mxu1 %v1703_v41 }
  0x45   :  { %478 = vmatpush.msrb.mxu3 %v1661_v26  ;;  %460 = vmatpush.msrb.mxu2 %v1593_v48 }
  0x46   :  { %369 = vmatpush.msrb.mxu0 %v1706_v42  ;;  %387 = vmatpush.msrb.mxu1 %v1711_v43 }
  0x47   :  { %479 = vmatpush.msrb.mxu3 %v1668_v29  ;;  %461 = vmatpush.msrb.mxu2 %v1596_v52 }
  0x48   :  { %370 = vmatpush.msrb.mxu0 %v1714_v44  ;;  %388 = vmatpush.msrb.mxu1 %v1719_v45 }
  0x49   :  { %480 = vmatpush.msrb.mxu3 %v1674_v31  ;;  %462 = vmatpush.msrb.mxu2 %v1599_v58 }
  0x4a   :  { %371 = vmatpush.msrb.mxu0 %v1722_v46  ;;  %389 = vmatpush.msrb.mxu1 %v1727_v47 }
  0x4b   :  { %481 = vmatpush.msrb.mxu3 %v1682_v34  ;;  %463 = vmatpush.msrb.mxu2 %v1611_v63 }
  0x4c   :  { %372 = vmatpush.msrb.mxu0 %v1730_v49  ;;  %390 = vmatpush.msrb.mxu1 %v1735_v50 }
  0x4d   :  { %373 = vmatmul.f32.vlgmr.msrb.gmra.mxu0 %v1654_v23  ;;  %482 = vmatpush.msrb.mxu3 %v1690_v36 }
  0x4e   :  { %492 = vmatpush.msra.mxu0 %v1631_v11  ;;  %391 = vmatpush.msrb.mxu1 %v1741_v51 }
  0x4f   :  { %464 = vmatpush.msrb.mxu2 %v1620_v6  ;;  %483 = vmatpush.msrb.mxu3 %v1698_v38 }
  0x50   :  { %493 = vmatpush.msra.mxu0 %v1639_v15  ;;  %392 = vmatpush.msrb.mxu1 %v1746_v53 }
  0x51   :  { %393 = vmatmul.f32.vlgmr.msrb.gmra.mxu1 %v1654_v23  ;;  %465 = vmatpush.msrb.mxu2 %v1629_v10 }
  0x52   :  { %494 = vmatpush.msra.mxu0 %v1648_v21  ;;  %569 = vmatpush.msra.mxu1 %v1558_v14 }
  0x53   :  { %484 = vmatpush.msrb.mxu3 %v1706_v42  ;;  %466 = vmatpush.msrb.mxu2 %v1637_v13 }
  0x54   :  { %495 = vmatpush.msra.mxu0 %v1658_v25  ;;  %570 = vmatpush.msra.mxu1 %v1560_v16 }
  0x55   :  { %485 = vmatpush.msrb.mxu3 %v1714_v44  ;;  %467 = vmatpush.msrb.mxu2 %v1646_v19 }
  0x56   :  { %496 = vmatpush.msra.mxu0 %v1666_v27  ;;  %571 = vmatpush.msra.mxu1 %v1563_v20 }
  0x57   :  { %589 = vmatpush.msra.mxu2 %v1617_v4  ;;  %486 = vmatpush.msrb.mxu3 %v1722_v46 }
  0x58   :  { %497 = vmatpush.msra.mxu0 %v1672_v30  ;;  %572 = vmatpush.msra.mxu1 %v1566_v24 }
  0x59   :  { %590 = vmatpush.msra.mxu2 %v1622_v7  ;;  %487 = vmatpush.msrb.mxu3 %v1730_v49 }
  0x5a   :  { %498 = vmatpush.msra.mxu0 %v1679_v32  ;;  %573 = vmatpush.msra.mxu1 %v1569_v28 }
  0x5b   :  { %609 = vmatpush.msra.mxu3 %v1631_v11  ;;  %591 = vmatpush.msra.mxu2 %v1625_v9 }
  0x5c   :  { %499 = vmatpush.msra.mxu0 %v1687_v35  ;;  %574 = vmatpush.msra.mxu1 %v1572_v33 }
  0x5d   :  { %610 = vmatpush.msra.mxu3 %v1639_v15  ;;  %592 = vmatpush.msra.mxu2 %v1634_v12 }
  0x5e   :  { %500 = vmatpush.msra.mxu0 %v1695_v37  ;;  %575 = vmatpush.msra.mxu1 %v1575_v39 }
  0x5f   :  { %611 = vmatpush.msra.mxu3 %v1648_v21  ;;  %593 = vmatpush.msra.mxu2 %v1642_v17 }
  0x60   :  { %501 = vmatpush.msra.mxu0 %v1703_v41  ;;  %576 = vmatpush.msra.mxu1 %v1578_v40 }
  0x61   :  { %612 = vmatpush.msra.mxu3 %v1658_v25  ;;  %594 = vmatpush.msra.mxu2 %v1652_v22 }
  0x62   :  { %502 = vmatpush.msra.mxu0 %v1711_v43  ;;  %577 = vmatpush.msra.mxu1 %v1593_v48 }
  0x63   :  { %613 = vmatpush.msra.mxu3 %v1666_v27  ;;  %595 = vmatpush.msra.mxu2 %v1661_v26 }
  0x64   :  { %503 = vmatpush.msra.mxu0 %v1719_v45  ;;  %578 = vmatpush.msra.mxu1 %v1596_v52 }
  0x65   :  { %614 = vmatpush.msra.mxu3 %v1672_v30  ;;  %596 = vmatpush.msra.mxu2 %v1668_v29 }
  0x66   :  { %504 = vmatpush.msra.mxu0 %v1727_v47  ;;  %579 = vmatpush.msra.mxu1 %v1599_v58 }
  0x67   :  { %615 = vmatpush.msra.mxu3 %v1679_v32  ;;  %597 = vmatpush.msra.mxu2 %v1674_v31 }
  0x68   :  { %505 = vmatpush.msra.mxu0 %v1735_v50  ;;  %580 = vmatpush.msra.mxu1 %v1611_v63 }
  0x69   :  { %616 = vmatpush.msra.mxu3 %v1687_v35  ;;  %598 = vmatpush.msra.mxu2 %v1682_v34 }
  0x6a   :  { %506 = vmatpush.msra.mxu0 %v1741_v51  ;;  %581 = vmatpush.msra.mxu1 %v1620_v6 }
  0x6b   :  { %617 = vmatpush.msra.mxu3 %v1695_v37  ;;  %599 = vmatpush.msra.mxu2 %v1690_v36 }
  0x6c   :  { %507 = vmatpush.msra.mxu0 %v1746_v53  ;;  %582 = vmatpush.msra.mxu1 %v1629_v10 }
  0x6d   :  { %618 = vmatpush.msra.mxu3 %v1703_v41  ;;  %600 = vmatpush.msra.mxu2 %v1698_v38 }
  0x6e   :  { %686 = vmatpush.msrb.mxu0 %v1558_v14  ;;  %583 = vmatpush.msra.mxu1 %v1637_v13 }
  0x6f   :  { %619 = vmatpush.msra.mxu3 %v1711_v43  ;;  %601 = vmatpush.msra.mxu2 %v1706_v42 }
  0x70   :  { %687 = vmatpush.msrb.mxu0 %v1560_v16  ;;  %584 = vmatpush.msra.mxu1 %v1646_v19 }
  0x71   :  { %620 = vmatpush.msra.mxu3 %v1719_v45  ;;  %602 = vmatpush.msra.mxu2 %v1714_v44 }
  0x72   :  { %688 = vmatpush.msrb.mxu0 %v1563_v20  ;;  %706 = vmatpush.msrb.mxu1 %v1617_v4 }
  0x73   :  { %621 = vmatpush.msra.mxu3 %v1727_v47  ;;  %603 = vmatpush.msra.mxu2 %v1722_v46 }
  0x74   :  { %689 = vmatpush.msrb.mxu0 %v1566_v24  ;;  %707 = vmatpush.msrb.mxu1 %v1622_v7 }
  0x75   :  { %622 = vmatpush.msra.mxu3 %v1735_v50  ;;  %604 = vmatpush.msra.mxu2 %v1730_v49 }
  0x76   :  { %690 = vmatpush.msrb.mxu0 %v1569_v28  ;;  %708 = vmatpush.msrb.mxu1 %v1625_v9 }
  0x77   :  { %623 = vmatpush.msra.mxu3 %v1741_v51 }
  0x78   :  { %691 = vmatpush.msrb.mxu0 %v1572_v33  ;;  %709 = vmatpush.msrb.mxu1 %v1634_v12 }
  0x79   :  { %624 = vmatpush.msra.mxu3 %v1746_v53 }
  0x7a   :  { %692 = vmatpush.msrb.mxu0 %v1575_v39  ;;  %710 = vmatpush.msrb.mxu1 %v1642_v17 }
  0x7c   :  { %693 = vmatpush.msrb.mxu0 %v1578_v40  ;;  %711 = vmatpush.msrb.mxu1 %v1652_v22 }
  0x7e   :  { %694 = vmatpush.msrb.mxu0 %v1593_v48  ;;  %712 = vmatpush.msrb.mxu1 %v1661_v26 }
  0x80   :  { %695 = vmatpush.msrb.mxu0 %v1596_v52  ;;  %713 = vmatpush.msrb.mxu1 %v1668_v29 }
  0x82   :  { %696 = vmatpush.msrb.mxu0 %v1599_v58  ;;  %714 = vmatpush.msrb.mxu1 %v1674_v31 }
  0x84   :  { %697 = vmatpush.msrb.mxu0 %v1611_v63  ;;  %715 = vmatpush.msrb.mxu1 %v1682_v34 }
  0x86   :  { %698 = vmatpush.msrb.mxu0 %v1620_v6  ;;  %716 = vmatpush.msrb.mxu1 %v1690_v36 }
  0x88   :  { %699 = vmatpush.msrb.mxu0 %v1629_v10  ;;  %717 = vmatpush.msrb.mxu1 %v1698_v38 }
  0x8a   :  { %700 = vmatpush.msrb.mxu0 %v1637_v13  ;;  %718 = vmatpush.msrb.mxu1 %v1706_v42 }
  0x8c   :  { %701 = vmatpush.msrb.mxu0 %v1646_v19  ;;  %719 = vmatpush.msrb.mxu1 %v1714_v44 }
  0x8e   :  { %720 = vmatpush.msrb.mxu1 %v1722_v46 }
  0x90   :  { %721 = vmatpush.msrb.mxu1 %v1730_v49 }
  0xac   :  { %v178_v59 = vpop.f32.mrf.mxu0 }
  0xad   :  { %v201_v60 = vpop.f32.mrf.mxu1  ;;  %v179_v62 = vadd.f32 %v178_v59, %v128_v56 }
  0xae   :  { %v202_v61 = vadd.f32 %v201_v60, %v129_v55 }
  0xb0   :  { %v224_v0 = vpop.f32.mrf.mxu2  ;;  %v236_v1 = vrot.slane %v202_v61, 6 }
  0xb1   :  { %v225_v2 = vadd.f32 %v224_v0, %v130_v57 }
  0xb2   :  { %v241_v5 = vsel %vm240_vm0, %v179_v62, %v236_v1  ;;  %v245_v8 = vsel %vm244_vm1, %v179_v62, %v236_v1  ;;  %v250_v18 = vsel %vm249_vm2, %v179_v62, %v236_v1  ;;  %v254_v54 = vsel %vm253_vm3, %v236_v1, %v179_v62 }
  0xb3   :  { %v237_v3 = vrot.slane %v225_v2, 4 }
  0xb4   :  { %v181_v0 = vpop.f32.mrf.mxu0 }
  0xb5   :  { %v243_v59 = vsel %vm242_vm4, %v241_v5, %v237_v3  ;;  %v247_v60 = vsel %vm246_vm5, %v245_v8, %v237_v3  ;;  %v251_v49 = vsel %vm242_vm4, %v237_v3, %v250_v18  ;;  %v255_v61 = vsel %vm246_vm5, %v237_v3, %v254_v54 }
  0xb6   :  { %v248_v19 = vrot.slane %v247_v60, 2  ;;  %v252_v53 = vrot.slane %v251_v49, 4  ;;  %v256_v2 = vrot.slane %v255_v61, 6  ;;  %276 = vst [vmem:[#allocation3] sm:$0x3f] %v243_v59  ;;  %v204_v46 = vpop.f32.mrf.mxu1  ;;  %v182_v51 = vadd.f32 %v181_v0, %v128_v56 }
  0xb7   :  { %v205_v13 = vadd.f32 %v204_v46, %v129_v55 }
  0xb8   :  { %277 = vst [vmem:[#allocation3 + $0x6] sm:$0x3f] %v248_v19  ;;  %v227_v44 = vpop.f32.mrf.mxu2 }
  0xb9   :  { %278 = vst [vmem:[#allocation3 + $0xc] sm:$0x3f] %v252_v53  ;;  %v238_v62 = vrot.slane %v205_v13, 6  ;;  %v228_v1 = vadd.f32 %v227_v44, %v130_v57 }
  0xba   :  { %279 = vst [vmem:[#allocation3 + $0x12] sm:$0x3f] %v256_v2  ;;  %v354_v5 = vpop.f32.mrf.mxu3 }
  0xbb   :  { %v239_v8 = vrot.slane %v228_v1, 4  ;;  %v257_v18 = vsel %vm240_vm0, %v182_v51, %v238_v62  ;;  %v259_v3 = vsel %vm244_vm1, %v182_v51, %v238_v62  ;;  %v262_v54 = vsel %vm249_vm2, %v182_v51, %v238_v62 }
  0xbc   :  { %v265_v49 = vsel %vm253_vm3, %v238_v62, %v182_v51 }
  0xbd   :  { %v397_v59 = vld [vmem:[#allocation3] sm:$0x3f]  ;;  %v258_v46 = vsel %vm242_vm4, %v257_v18, %v239_v8  ;;  %v260_v19 = vsel %vm246_vm5, %v259_v3, %v239_v8  ;;  %v263_v53 = vsel %vm242_vm4, %v239_v8, %v262_v54  ;;  %v266_v13 = vsel %vm246_vm5, %v239_v8, %v265_v49  ;;  %v1878_v3 = vld [vmem:[#allocation8] ss:$0 sm:$0xff] }
  0xbe   :  { %v398_v44 = vadd.f32 %v397_v59, %v354_v5  ;;  %v261_v55 = vrot.slane %v260_v19, 2  ;;  %v264_v56 = vrot.slane %v263_v53, 4  ;;  %280 = vst [vmem:[#allocation3 + $0x18] sm:$0x3f] %v258_v46  ;;  %v267_v57 = vrot.slane %v266_v13, 6 }
  0xbf   :  { %v419_v61 = vrot.slane %v397_v59, 2 }
  0xc0   :  { %v1278_v60 = vmul.f32 -1.442695, %v398_v44  ;;  %281 = vst [vmem:[#allocation3 + $0x1e] sm:$0x3f] %v261_v55 }
  0xc1   :  { %282 = vst [vmem:[#allocation3 + $0x24] sm:$0x3f] %v264_v56 }
  0xc2   :  { %1308 = vpow2.f32 %v1278_v60  ;;  %283 = vst [vmem:[#allocation3 + $0x2a] sm:$0x3f] %v267_v57 }
  0xc8   :  { %v1309_v51 = vpop.eup %1308 }
  0xc9   :  { %v402_v0 = vadd.f32 1.0, %v1309_v51 }
  0xca   :  { %v374_v2 = vpop.f32.mrf.mxu0 }
  0xcb   :  { %v421_v62 = vadd.f32 %v419_v61, %v374_v2  ;;  %1310 = vrcp.f32 %v402_v0  ;;  %v414_v19 = vand.u32 2147483648, %v402_v0  ;;  %v412_v13 = vand.u32 2147483647, %v402_v0 }
  0xcc   :  { %vm408_vm7 = vweird.f32 %v402_v0  ;;  %v443_v2 = vrot.slane %v397_v59, 4 }
  0xcd   :  { %v1279_v1 = vmul.f32 -1.442695, %v421_v62  ;;  %v415_v56 = vor.u32 1.1754944e-38, %v414_v19  ;;  %vm413_vm9 = vcmp.eq.f32.partialorder %v412_v13, 8.507059e+37 }
  0xce   :  { %v394_v46 = vpop.f32.mrf.mxu1 }
  0xcf   :  { %1312 = vpow2.f32 %v1279_v1  ;;  %v441_v55 = vadd.f32 %v1878_v3, %v394_v46 }
  0xd1   :  { %v1311_v18 = vpop.eup %1310 }
  0xd2   :  { %v404_v8 = vmul.f32 %v1311_v18, %v402_v0  ;;  %vm409_vm6 = vweird.f32 %v1311_v18 }
  0xd3   :  { %vm410_vm8 = vmor %vm408_vm7, %vm409_vm6 }
  0xd4   :  { %v405_v54 = vsub.f32 1.0, %v404_v8 }
  0xd5   :  { %v1313_v5 = vpop.eup %1312 }
  0xd6   :  { %v425_v49 = vadd.f32 1.0, %v1313_v5  ;;  %v406_v53 = vmul.f32 %v1311_v18, %v405_v54 }
  0xd8   :  { %1314 = vrcp.f32 %v425_v49  ;;  %v407_v44 = vadd.f32 %v1311_v18, %v406_v53  ;;  %v437_v5 = vand.u32 2147483648, %v425_v49  ;;  %v435_v10 = vand.u32 2147483647, %v425_v49 }
  0xd9   :  { %vm431_vm11 = vweird.f32 %v425_v49 }
  0xda   :  { %v411_v57 = vsel %vm410_vm8, %v1311_v18, %v407_v44  ;;  %v438_v0 = vor.u32 1.1754944e-38, %v437_v5  ;;  %vm436_vm13 = vcmp.eq.f32.partialorder %v435_v10, 8.507059e+37  ;;  %v513_v10 = vld [vmem:[#allocation3 + $0x6] sm:$0x3f] }
  0xdb   :  { %v416_v60 = vsel %vm413_vm9, %v415_v56, %v411_v57 }
  0xdc   :  { %v442_v51 = vmul.f32 %v441_v55, %v416_v60 }
  0xde   :  { %v1315_v61 = vpop.eup %1314  ;;  %v445_v1 = vadd.f32 %v443_v2, %v442_v51 }
  0xdf   :  { %v427_v62 = vmul.f32 %v1315_v61, %v425_v49  ;;  %vm432_vm10 = vweird.f32 %v1315_v61 }
  0xe0   :  { %1316 = vtanh.f32 %v445_v1  ;;  %vm433_vm12 = vmor %vm431_vm11, %vm432_vm10 }
  0xe1   :  { %v428_v8 = vsub.f32 1.0, %v427_v62 }
  0xe3   :  { %v429_v54 = vmul.f32 %v1315_v61, %v428_v8 }
  0xe5   :  { %v430_v53 = vadd.f32 %v1315_v61, %v429_v54 }
  0xe6   :  { %v1317_v13 = vpop.eup %1316 }
  0xe7   :  { %v434_v46 = vsel %vm433_vm12, %v1315_v61, %v430_v53 }
  0xe8   :  { %v439_v18 = vsel %vm436_vm13, %v438_v0, %v434_v46 }
  0xe9   :  { %v447_v19 = vsub.f32 1.0, %v439_v18  ;;  %v449_v59 = vmul.f32 %v439_v18, %v1654_v23  ;;  %v535_v23 = vrot.slane %v513_v10, 2 }
  0xeb   :  { %v448_v44 = vmul.f32 %v1317_v13, %v447_v19 }
  0xed   :  { %v1882_v55 = vadd.f32 %v449_v59, %v448_v44 }
  0xef   :  { %451 = vst [vmem:[%s2247_s5] sm:$0x3] %v1882_v55  ;;  %468 = vmatmul.f32.vlgmr.msrb.gmra.mxu2 %v1882_v55  ;;  %488 = vmatmul.f32.vlgmr.msrb.gmra.mxu3 %v1882_v55 }
  0xf0   :  { %508 = vmatmul.f32.vlgmr.msra.gmra.mxu0 %v1882_v55  ;;  %726 = vmatpush.msrb.mxu2 %v1631_v11 }
  0xf1   :  { %803 = vmatpush.msrb.mxu3 %v1558_v14  ;;  %823 = vmatpush.msra.mxu0 %v1617_v4  ;;  %v2272_v14 = vld [vmem:[#allocation11_spill] sm:$0xff] }
  0xf2   :  { %727 = vmatpush.msrb.mxu2 %v1639_v15 }
  0xf3   :  { %804 = vmatpush.msrb.mxu3 %v1560_v16  ;;  %824 = vmatpush.msra.mxu0 %v1622_v7  ;;  %v2273_v16 = vld [vmem:[#allocation14_spill] sm:$0xff] }
  0xf4   :  { %728 = vmatpush.msrb.mxu2 %v1648_v21 }
  0xf5   :  { %805 = vmatpush.msrb.mxu3 %v1563_v20  ;;  %825 = vmatpush.msra.mxu0 %v1625_v9  ;;  %v2274_v20 = vld [vmem:[#allocation17_spill] sm:$0xff] }
  0xf6   :  { %729 = vmatpush.msrb.mxu2 %v1658_v25 }
  0xf7   :  { %806 = vmatpush.msrb.mxu3 %v1566_v24  ;;  %826 = vmatpush.msra.mxu0 %v1634_v12  ;;  %v2275_v24 = vld [vmem:[#allocation12_spill] sm:$0xff] }
  0xf8   :  { %730 = vmatpush.msrb.mxu2 %v1666_v27 }
  0xf9   :  { %807 = vmatpush.msrb.mxu3 %v1569_v28  ;;  %827 = vmatpush.msra.mxu0 %v1642_v17  ;;  %v2276_v28 = vld [vmem:[#allocation15_spill] sm:$0xff] }
  0xfa   :  { %731 = vmatpush.msrb.mxu2 %v1672_v30 }
  0xfb   :  { %808 = vmatpush.msrb.mxu3 %v1572_v33  ;;  %828 = vmatpush.msra.mxu0 %v1652_v22  ;;  %v2277_v33 = vld [vmem:[#allocation18_spill] sm:$0xff] }
  0xfc   :  { %732 = vmatpush.msrb.mxu2 %v1679_v32 }
  0xfd   :  { %809 = vmatpush.msrb.mxu3 %v1575_v39  ;;  %829 = vmatpush.msra.mxu0 %v1661_v26  ;;  %v2278_v39 = vld [vmem:[#allocation13_spill] sm:$0xff] }
  0xfe   :  { %733 = vmatpush.msrb.mxu2 %v1687_v35 }
  0xff   :  { %810 = vmatpush.msrb.mxu3 %v1578_v40  ;;  %830 = vmatpush.msra.mxu0 %v1668_v29  ;;  %v2279_v40 = vld [vmem:[#allocation16_spill] sm:$0xff] }
 0x100   :  { %734 = vmatpush.msrb.mxu2 %v1695_v37 }
 0x101   :  { %811 = vmatpush.msrb.mxu3 %v1593_v48  ;;  %831 = vmatpush.msra.mxu0 %v1674_v31 }
 0x102   :  { %735 = vmatpush.msrb.mxu2 %v1703_v41 }
 0x103   :  { %812 = vmatpush.msrb.mxu3 %v1596_v52  ;;  %832 = vmatpush.msra.mxu0 %v1682_v34 }
 0x104   :  { %736 = vmatpush.msrb.mxu2 %v1711_v43 }
 0x105   :  { %813 = vmatpush.msrb.mxu3 %v1599_v58  ;;  %833 = vmatpush.msra.mxu0 %v1690_v36 }
 0x106   :  { %737 = vmatpush.msrb.mxu2 %v1719_v45 }
 0x107   :  { %814 = vmatpush.msrb.mxu3 %v1611_v63  ;;  %834 = vmatpush.msra.mxu0 %v1698_v38 }
 0x108   :  { %738 = vmatpush.msrb.mxu2 %v1727_v47 }
 0x109   :  { %815 = vmatpush.msrb.mxu3 %v1620_v6  ;;  %835 = vmatpush.msra.mxu0 %v1706_v42 }
 0x10a   :  { %739 = vmatpush.msrb.mxu2 %v1735_v50 }
 0x10b   :  { %816 = vmatpush.msrb.mxu3 %v2272_v14  ;;  %836 = vmatpush.msra.mxu0 %v2273_v16 }
 0x10c   :  { %740 = vmatpush.msrb.mxu2 %v2274_v20 }
 0x10d   :  { %817 = vmatpush.msrb.mxu3 %v2275_v24  ;;  %837 = vmatpush.msra.mxu0 %v2276_v28 }
 0x10e   :  { %741 = vmatpush.msrb.mxu2 %v2277_v33 }
 0x10f   :  { %818 = vmatpush.msrb.mxu3 %v2278_v39  ;;  %838 = vmatpush.msra.mxu0 %v2279_v40 }
 0x16d   :  { %v509_v59 = vpop.f32.mrf.mxu0 }
 0x172   :  { %v469_v49 = vpop.f32.mrf.mxu2  ;;  %v489_v56 = vpop.f32.mrf.mxu3 }
 0x173   :  { %v514_v57 = vadd.f32 %v513_v10, %v469_v49  ;;  %v537_v60 = vadd.f32 %v535_v23, %v489_v56 }
 0x175   :  { %v1280_v51 = vmul.f32 -1.442695, %v514_v57  ;;  %v1281_v61 = vmul.f32 -1.442695, %v537_v60  ;;  %v557_v57 = vadd.f32 %v1878_v3, %v509_v59 }
 0x177   :  { %1318 = vpow2.f32 %v1280_v51 }
 0x178   :  { %1320 = vpow2.f32 %v1281_v61 }
 0x17d   :  { %v1319_v2 = vpop.eup %1318 }
 0x17e   :  { %v1321_v62 = vpop.eup %1320  ;;  %v518_v1 = vadd.f32 1.0, %v1319_v2 }
 0x17f   :  { %v541_v8 = vadd.f32 1.0, %v1321_v62  ;;  %v559_v62 = vrot.slane %v513_v10, 4  ;;  %v1961_v10 = vld [vmem:[#allocation6 + $0x138] sm:$0xff] }
 0x180   :  { %1322 = vrcp.f32 %v518_v1  ;;  %v530_v18 = vand.u32 2147483648, %v518_v1  ;;  %v528_v44 = vand.u32 2147483647, %v518_v1  ;;  %vm524_vm15 = vweird.f32 %v518_v1 }
 0x181   :  { %1324 = vrcp.f32 %v541_v8  ;;  %vm547_vm3 = vweird.f32 %v541_v8 }
 0x182   :  { %v531_v56 = vor.u32 1.1754944e-38, %v530_v18  ;;  %vm529_vm1 = vcmp.eq.f32.partialorder %v528_v44, 8.507059e+37 }
 0x186   :  { %v1323_v5 = vpop.eup %1322 }
 0x187   :  { %v1325_v54 = vpop.eup %1324  ;;  %v520_v53 = vmul.f32 %v1323_v5, %v518_v1  ;;  %vm525_vm14 = vweird.f32 %v1323_v5 }
 0x188   :  { %v543_v0 = vmul.f32 %v1325_v54, %v541_v8  ;;  %vm526_vm0 = vmor %vm524_vm15, %vm525_vm14  ;;  %vm548_vm2 = vweird.f32 %v1325_v54 }
 0x189   :  { %v521_v46 = vsub.f32 1.0, %v520_v53  ;;  %v553_v53 = vand.u32 2147483648, %v541_v8  ;;  %vm549_vm4 = vmor %vm547_vm3, %vm548_vm2 }
 0x18a   :  { %v544_v19 = vsub.f32 1.0, %v543_v0  ;;  %v551_v0 = vand.u32 2147483647, %v541_v8 }
 0x18b   :  { %v522_v13 = vmul.f32 %v1323_v5, %v521_v46 }
 0x18c   :  { %v545_v23 = vmul.f32 %v1325_v54, %v544_v19  ;;  %v554_v19 = vor.u32 1.1754944e-38, %v553_v53  ;;  %vm552_vm5 = vcmp.eq.f32.partialorder %v551_v0, 8.507059e+37 }
 0x18d   :  { %v523_v49 = vadd.f32 %v1323_v5, %v522_v13 }
 0x18e   :  { %v546_v61 = vadd.f32 %v1325_v54, %v545_v23 }
 0x18f   :  { %v527_v60 = vsel %vm526_vm0, %v1323_v5, %v523_v49 }
 0x190   :  { %v532_v51 = vsel %vm529_vm1, %v531_v56, %v527_v60  ;;  %v550_v40 = vsel %vm549_vm4, %v1325_v54, %v546_v61 }
 0x191   :  { %v558_v2 = vmul.f32 %v557_v57, %v532_v51  ;;  %v555_v1 = vsel %vm552_vm5, %v554_v19, %v550_v40  ;;  %v1951_v40 = vld [vmem:[#allocation6 + $0x168] sm:$0xff] }
 0x192   :  { %v563_v18 = vsub.f32 1.0, %v555_v1  ;;  %v565_v5 = vmul.f32 %v555_v1, %v1882_v55  ;;  %v1956_v55 = vld [vmem:[#allocation6 + $0x150] sm:$0xff] }
 0x193   :  { %v561_v46 = vadd.f32 %v559_v62, %v558_v2 }
 0x195   :  { %1326 = vtanh.f32 %v561_v46 }
 0x19b   :  { %v1327_v13 = vpop.eup %1326 }
 0x19c   :  { %v564_v59 = vmul.f32 %v1327_v13, %v563_v18 }
 0x19e   :  { %v1941_v44 = vadd.f32 %v565_v5, %v564_v59 }
 0x1a0   :  { %1282 = vst [vmem:[%s2247_s5 + $0x2] sm:$0x3] %v1941_v44  ;;  %585 = vmatmul.f32.vlgmr.msra.gmra.mxu1 %v1941_v44  ;;  %605 = vmatmul.f32.vlgmr.msra.gmra.mxu2 %v1941_v44 }
 0x1a1   :  { %625 = vmatmul.f32.vlgmr.msra.gmra.mxu3 %v1941_v44  ;;  %843 = vmatpush.msra.mxu1 %v1631_v11  ;;  %v1966_v11 = vld [vmem:[#allocation6 + $0x120] sm:$0xff] }
 0x1a2   :  { %920 = vmatpush.msra.mxu2 %v1951_v40  ;;  %940 = vmatpush.msra.mxu3 %v1617_v4  ;;  %v1971_v4 = vld [vmem:[#allocation6 + $0x108] sm:$0xff] }
 0x1a3   :  { %844 = vmatpush.msra.mxu1 %v1639_v15 }
 0x1a4   :  { %921 = vmatpush.msra.mxu2 %v1956_v55  ;;  %941 = vmatpush.msra.mxu3 %v1622_v7  ;;  %v1976_v7 = vld [vmem:[#allocation6 + $0xf0] sm:$0xff] }
 0x1a5   :  { %845 = vmatpush.msra.mxu1 %v1648_v21 }
 0x1a6   :  { %922 = vmatpush.msra.mxu2 %v1961_v10  ;;  %942 = vmatpush.msra.mxu3 %v1625_v9  ;;  %v1981_v9 = vld [vmem:[#allocation6 + $0xd8] sm:$0xff] }
 0x1a7   :  { %846 = vmatpush.msra.mxu1 %v1658_v25 }
 0x1a8   :  { %923 = vmatpush.msra.mxu2 %v1966_v11  ;;  %943 = vmatpush.msra.mxu3 %v1634_v12  ;;  %v1986_v12 = vld [vmem:[#allocation6 + $0xc0] sm:$0xff] }
 0x1a9   :  { %847 = vmatpush.msra.mxu1 %v1666_v27 }
 0x1aa   :  { %924 = vmatpush.msra.mxu2 %v1971_v4  ;;  %944 = vmatpush.msra.mxu3 %v1642_v17 }
 0x1ab   :  { %848 = vmatpush.msra.mxu1 %v1672_v30 }
 0x1ac   :  { %925 = vmatpush.msra.mxu2 %v1976_v7  ;;  %945 = vmatpush.msra.mxu3 %v1652_v22 }
 0x1ad   :  { %849 = vmatpush.msra.mxu1 %v1679_v32 }
 0x1ae   :  { %926 = vmatpush.msra.mxu2 %v1981_v9  ;;  %946 = vmatpush.msra.mxu3 %v1661_v26 }
 0x1af   :  { %850 = vmatpush.msra.mxu1 %v1687_v35 }
 0x1b0   :  { %927 = vmatpush.msra.mxu2 %v1986_v12  ;;  %947 = vmatpush.msra.mxu3 %v1668_v29 }
 0x1b1   :  { %851 = vmatpush.msra.mxu1 %v1695_v37 }
 0x1b2   :  { %928 = vmatpush.msra.mxu2 %v1593_v48  ;;  %948 = vmatpush.msra.mxu3 %v1674_v31  ;;  %v2280_v48 = vld [vmem:[#allocation16_spill] sm:$0xff] }
 0x1b3   :  { %852 = vmatpush.msra.mxu1 %v1703_v41 }
 0x1b4   :  { %929 = vmatpush.msra.mxu2 %v1596_v52  ;;  %949 = vmatpush.msra.mxu3 %v1682_v34 }
 0x1b5   :  { %853 = vmatpush.msra.mxu1 %v1711_v43 }
 0x1b6   :  { %930 = vmatpush.msra.mxu2 %v1599_v58  ;;  %950 = vmatpush.msra.mxu3 %v1690_v36  ;;  %v630_v58 = vld [vmem:[#allocation3 + $0xc] sm:$0x3f] }
 0x1b7   :  { %854 = vmatpush.msra.mxu1 %v1719_v45  ;;  %v652_v15 = vrot.slane %v630_v58, 2  ;;  %v676_v60 = vrot.slane %v630_v58, 4 }
 0x1b8   :  { %931 = vmatpush.msra.mxu2 %v1611_v63  ;;  %951 = vmatpush.msra.mxu3 %v1698_v38 }
 0x1b9   :  { %855 = vmatpush.msra.mxu1 %v1727_v47 }
 0x1ba   :  { %932 = vmatpush.msra.mxu2 %v1620_v6  ;;  %952 = vmatpush.msra.mxu3 %v1706_v42 }
 0x1bb   :  { %856 = vmatpush.msra.mxu1 %v1735_v50 }
 0x1bc   :  { %933 = vmatpush.msra.mxu2 %v2272_v14  ;;  %953 = vmatpush.msra.mxu3 %v2273_v16 }
 0x1bd   :  { %857 = vmatpush.msra.mxu1 %v2274_v20 }
 0x1be   :  { %934 = vmatpush.msra.mxu2 %v2275_v24  ;;  %954 = vmatpush.msra.mxu3 %v2276_v28 }
 0x1bf   :  { %858 = vmatpush.msra.mxu1 %v2277_v33 }
 0x1c0   :  { %935 = vmatpush.msra.mxu2 %v2278_v39  ;;  %955 = vmatpush.msra.mxu3 %v2280_v48 }
 0x21d   :  { %v586_v52 = vpop.f32.mrf.mxu1 }
 0x21e   :  { %v631_v63 = vadd.f32 %v630_v58, %v586_v52 }
 0x220   :  { %v1283_v6 = vmul.f32 -1.442695, %v631_v63  ;;  %v2025_v63 = vld [vmem:[#allocation6 + $0x178] sm:$0xff] }
 0x222   :  { %1328 = vpow2.f32 %v1283_v6  ;;  %v2032_v6 = vld [vmem:[#allocation6 + $0x160] sm:$0xff] }
 0x223   :  { %v606_v17 = vpop.f32.mrf.mxu2 }
 0x224   :  { %v654_v21 = vadd.f32 %v652_v15, %v606_v17  ;;  %v626_v39 = vpop.f32.mrf.mxu3  ;;  %v2036_v15 = vld [vmem:[#allocation6 + $0x158] sm:$0xff]  ;;  %v2039_v17 = vld [vmem:[#allocation6 + $0x148] sm:$0xff] }
 0x225   :  { %v674_v57 = vadd.f32 %v1878_v3, %v626_v39  ;;  %v2111_v39 = vld [vmem:[#allocation6 + $0x30] sm:$0xff] }
 0x226   :  { %v1284_v22 = vmul.f32 -1.442695, %v654_v21  ;;  %v2043_v21 = vld [vmem:[#allocation6 + $0x140] sm:$0xff] }
 0x228   :  { %v1329_v25 = vpop.eup %1328  ;;  %1330 = vpow2.f32 %v1284_v22  ;;  %v2046_v22 = vld [vmem:[#allocation6 + $0x130] sm:$0xff] }
 0x229   :  { %v635_v26 = vadd.f32 1.0, %v1329_v25  ;;  %v2050_v25 = vld [vmem:[#allocation6 + $0x128] sm:$0xff] }
 0x22b   :  { %1332 = vrcp.f32 %v635_v26  ;;  %v647_v36 = vand.u32 2147483648, %v635_v26  ;;  %v645_v14 = vand.u32 2147483647, %v635_v26  ;;  %vm641_vm7 = vweird.f32 %v635_v26 }
 0x22d   :  { %v648_v23 = vor.u32 1.1754944e-38, %v647_v36  ;;  %vm646_vm9 = vcmp.eq.f32.partialorder %v645_v14, 8.507059e+37  ;;  %v2078_v36 = vld [vmem:[#allocation6 + $0xa8] sm:$0xff]  ;;  %v2095_v14 = vld [vmem:[#allocation6 + $0x80] sm:$0xff] }
 0x22e   :  { %v1331_v27 = vpop.eup %1330 }
 0x22f   :  { %v658_v29 = vadd.f32 1.0, %v1331_v27  ;;  %v2057_v27 = vld [vmem:[#allocation6 + $0x110] sm:$0xff] }
 0x231   :  { %v1333_v30 = vpop.eup %1332  ;;  %1334 = vrcp.f32 %v658_v29  ;;  %v670_v2 = vand.u32 2147483648, %v658_v29  ;;  %v668_v53 = vand.u32 2147483647, %v658_v29  ;;  %vm664_vm11 = vweird.f32 %v658_v29 }
 0x232   :  { %v637_v31 = vmul.f32 %v1333_v30, %v635_v26  ;;  %vm642_vm6 = vweird.f32 %v1333_v30  ;;  %v2053_v26 = vld [vmem:[#allocation6 + $0x118] sm:$0xff] }
 0x233   :  { %vm643_vm8 = vmor %vm641_vm7, %vm642_vm6  ;;  %v671_v19 = vor.u32 1.1754944e-38, %v670_v2  ;;  %vm669_vm13 = vcmp.eq.f32.partialorder %v668_v53, 8.507059e+37 }
 0x234   :  { %v638_v34 = vsub.f32 1.0, %v637_v31  ;;  %v2069_v31 = vld [vmem:[#allocation6 + $0xe0] sm:$0xff] }
 0x236   :  { %v639_v38 = vmul.f32 %v1333_v30, %v638_v34  ;;  %v2074_v34 = vld [vmem:[#allocation6 + $0xc8] sm:$0xff] }
 0x237   :  { %v1335_v24 = vpop.eup %1334 }
 0x238   :  { %v660_v8 = vmul.f32 %v1335_v24, %v658_v29  ;;  %v640_v54 = vadd.f32 %v1333_v30, %v639_v38  ;;  %vm665_vm10 = vweird.f32 %v1335_v24  ;;  %v2060_v29 = vld [vmem:[#allocation6 + $0x100] sm:$0xff]  ;;  %v2085_v38 = vld [vmem:[#allocation6 + $0x90] sm:$0xff] }
 0x239   :  { %vm666_vm12 = vmor %vm664_vm11, %vm665_vm10 }
 0x23a   :  { %v661_v49 = vsub.f32 1.0, %v660_v8  ;;  %v644_v56 = vsel %vm643_vm8, %v1333_v30, %v640_v54  ;;  %v2064_v30 = vld [vmem:[#allocation6 + $0xf8] sm:$0xff] }
 0x23b   :  { %v649_v51 = vsel %vm646_vm9, %v648_v23, %v644_v56 }
 0x23c   :  { %v662_v61 = vmul.f32 %v1335_v24, %v661_v49  ;;  %v675_v62 = vmul.f32 %v674_v57, %v649_v51 }
 0x23e   :  { %v663_v0 = vadd.f32 %v1335_v24, %v662_v61  ;;  %v678_v46 = vadd.f32 %v676_v60, %v675_v62 }
 0x240   :  { %v667_v1 = vsel %vm666_vm12, %v1335_v24, %v663_v0  ;;  %1336 = vtanh.f32 %v678_v46  ;;  %v2102_v24 = vld [vmem:[#allocation6 + $0x68] sm:$0xff] }
 0x241   :  { %v672_v18 = vsel %vm669_vm13, %v671_v19, %v667_v1 }
 0x242   :  { %v680_v13 = vsub.f32 1.0, %v672_v18  ;;  %v682_v52 = vmul.f32 %v672_v18, %v1941_v44  ;;  %v2029_v44 = vld [vmem:[#allocation6 + $0x170] sm:$0xff] }
 0x246   :  { %v1337_v59 = vpop.eup %1336 }
 0x247   :  { %v681_v5 = vmul.f32 %v1337_v59, %v680_v13 }
 0x249   :  { %v2016_v58 = vadd.f32 %v682_v52, %v681_v5 }
 0x24b   :  { %1285 = vst [vmem:[%s2247_s5 + $0x4] sm:$0x3] %v2016_v58  ;;  %702 = vmatmul.f32.vlgmr.msrb.gmra.mxu0 %v2016_v58  ;;  %722 = vmatmul.f32.vlgmr.msrb.gmra.mxu1 %v2016_v58 }
 0x24c   :  { %742 = vmatmul.f32.vlgmr.msrb.gmra.mxu2 %v2016_v58  ;;  %960 = vmatpush.msrb.mxu0 %v2025_v63 }
 0x24d   :  { %1037 = vmatpush.msrb.mxu1 %v1951_v40  ;;  %1057 = vmatpush.msrb.mxu2 %v2029_v44 }
 0x24e   :  { %961 = vmatpush.msrb.mxu0 %v2032_v6 }
 0x24f   :  { %1038 = vmatpush.msrb.mxu1 %v1956_v55  ;;  %1058 = vmatpush.msrb.mxu2 %v2036_v15 }
 0x250   :  { %962 = vmatpush.msrb.mxu0 %v2039_v17 }
 0x251   :  { %1039 = vmatpush.msrb.mxu1 %v1961_v10  ;;  %1059 = vmatpush.msrb.mxu2 %v2043_v21 }
 0x252   :  { %963 = vmatpush.msrb.mxu0 %v2046_v22 }
 0x253   :  { %1040 = vmatpush.msrb.mxu1 %v1966_v11  ;;  %1060 = vmatpush.msrb.mxu2 %v2050_v25 }
 0x254   :  { %964 = vmatpush.msrb.mxu0 %v2053_v26 }
 0x255   :  { %1041 = vmatpush.msrb.mxu1 %v1971_v4  ;;  %1061 = vmatpush.msrb.mxu2 %v2057_v27 }
 0x256   :  { %965 = vmatpush.msrb.mxu0 %v2060_v29 }
 0x257   :  { %1042 = vmatpush.msrb.mxu1 %v1976_v7  ;;  %1062 = vmatpush.msrb.mxu2 %v2064_v30 }
 0x258   :  { %966 = vmatpush.msrb.mxu0 %v1679_v32  ;;  %v2081_v32 = vld [vmem:[#allocation6 + $0xb0] sm:$0xff] }
 0x259   :  { %1043 = vmatpush.msrb.mxu1 %v1981_v9  ;;  %1063 = vmatpush.msrb.mxu2 %v2069_v31 }
 0x25a   :  { %967 = vmatpush.msrb.mxu0 %v1687_v35  ;;  %v2088_v35 = vld [vmem:[#allocation6 + $0x98] sm:$0xff] }
 0x25b   :  { %1044 = vmatpush.msrb.mxu1 %v1986_v12  ;;  %1064 = vmatpush.msrb.mxu2 %v2074_v34 }
 0x25c   :  { %968 = vmatpush.msrb.mxu0 %v1695_v37  ;;  %v2092_v37 = vld [vmem:[#allocation6 + $0x78] sm:$0xff] }
 0x25d   :  { %1045 = vmatpush.msrb.mxu1 %v2078_v36  ;;  %1065 = vmatpush.msrb.mxu2 %v2081_v32 }
 0x25e   :  { %969 = vmatpush.msrb.mxu0 %v1703_v41  ;;  %v2099_v41 = vld [vmem:[#allocation6 + $0x60] sm:$0xff] }
 0x25f   :  { %1046 = vmatpush.msrb.mxu1 %v2085_v38  ;;  %1066 = vmatpush.msrb.mxu2 %v2088_v35 }
 0x260   :  { %970 = vmatpush.msrb.mxu0 %v1711_v43  ;;  %v2106_v43 = vld [vmem:[#allocation6 + $0x48] sm:$0xff] }
 0x261   :  { %1047 = vmatpush.msrb.mxu1 %v2092_v37  ;;  %1067 = vmatpush.msrb.mxu2 %v2095_v14 }
 0x262   :  { %971 = vmatpush.msrb.mxu0 %v1719_v45  ;;  %v2116_v45 = vld [vmem:[#allocation6 + $0x18] sm:$0xff] }
 0x263   :  { %1048 = vmatpush.msrb.mxu1 %v2099_v41  ;;  %1068 = vmatpush.msrb.mxu2 %v2102_v24 }
 0x264   :  { %972 = vmatpush.msrb.mxu0 %v1727_v47  ;;  %v2121_v47 = vld [vmem:[#allocation6] sm:$0xff] }
 0x265   :  { %1049 = vmatpush.msrb.mxu1 %v2106_v43  ;;  %1069 = vmatpush.msrb.mxu2 %v1706_v42  ;;  %v747_v42 = vld [vmem:[#allocation3 + $0x12] sm:$0x3f] }
 0x266   :  { %973 = vmatpush.msrb.mxu0 %v1735_v50  ;;  %v769_v50 = vrot.slane %v747_v42, 2 }
 0x267   :  { %1050 = vmatpush.msrb.mxu1 %v2111_v39  ;;  %1070 = vmatpush.msrb.mxu2 %v2273_v16 }
 0x268   :  { %974 = vmatpush.msrb.mxu0 %v2274_v20 }
 0x269   :  { %1051 = vmatpush.msrb.mxu1 %v2116_v45  ;;  %1071 = vmatpush.msrb.mxu2 %v2276_v28 }
 0x26a   :  { %975 = vmatpush.msrb.mxu0 %v2277_v33 }
 0x26b   :  { %1052 = vmatpush.msrb.mxu1 %v2121_v47  ;;  %1072 = vmatpush.msrb.mxu2 %v2280_v48 }
 0x2c8   :  { %v703_v8 = vpop.f32.mrf.mxu0  ;;  %v723_v16 = vpop.f32.mrf.mxu1 }
 0x2c9   :  { %v748_v54 = vadd.f32 %v747_v42, %v703_v8  ;;  %v771_v20 = vadd.f32 %v769_v50, %v723_v16  ;;  %v793_v8 = vrot.slane %v747_v42, 4 }
 0x2cb   :  { %v1286_v23 = vmul.f32 -1.442695, %v748_v54  ;;  %v1287_v49 = vmul.f32 -1.442695, %v771_v20 }
 0x2cd   :  { %1338 = vpow2.f32 %v1286_v23 }
 0x2ce   :  { %1340 = vpow2.f32 %v1287_v49 }
 0x2cf   :  { %v743_v1 = vpop.f32.mrf.mxu2 }
 0x2d0   :  { %v791_v5 = vadd.f32 %v1878_v3, %v743_v1 }
 0x2d3   :  { %v1339_v56 = vpop.eup %1338 }
 0x2d4   :  { %v1341_v28 = vpop.eup %1340  ;;  %v752_v57 = vadd.f32 1.0, %v1339_v56 }
 0x2d5   :  { %v775_v33 = vadd.f32 1.0, %v1341_v28 }
 0x2d6   :  { %1342 = vrcp.f32 %v752_v57  ;;  %v764_v53 = vand.u32 2147483648, %v752_v57  ;;  %v762_v46 = vand.u32 2147483647, %v752_v57  ;;  %vm758_vm15 = vweird.f32 %v752_v57 }
 0x2d7   :  { %1344 = vrcp.f32 %v775_v33  ;;  %v787_v16 = vand.u32 2147483648, %v775_v33  ;;  %vm781_vm3 = vweird.f32 %v775_v33  ;;  %v785_v20 = vand.u32 2147483647, %v775_v33 }
 0x2d8   :  { %v765_v13 = vor.u32 1.1754944e-38, %v764_v53  ;;  %vm763_vm1 = vcmp.eq.f32.partialorder %v762_v46, 8.507059e+37 }
 0x2d9   :  { %v788_v56 = vor.u32 1.1754944e-38, %v787_v16  ;;  %vm786_vm5 = vcmp.eq.f32.partialorder %v785_v20, 8.507059e+37 }
 0x2dc   :  { %v1343_v60 = vpop.eup %1342 }
 0x2dd   :  { %v1345_v51 = vpop.eup %1344  ;;  %v754_v61 = vmul.f32 %v1343_v60, %v752_v57  ;;  %vm759_vm14 = vweird.f32 %v1343_v60 }
 0x2de   :  { %v777_v48 = vmul.f32 %v1345_v51, %v775_v33  ;;  %vm760_vm0 = vmor %vm758_vm15, %vm759_vm14  ;;  %vm782_vm2 = vweird.f32 %v1345_v51 }
 0x2df   :  { %v755_v2 = vsub.f32 1.0, %v754_v61  ;;  %vm783_vm4 = vmor %vm781_vm3, %vm782_vm2 }
 0x2e0   :  { %v778_v62 = vsub.f32 1.0, %v777_v48 }
 0x2e1   :  { %v756_v0 = vmul.f32 %v1343_v60, %v755_v2 }
 0x2e2   :  { %v779_v19 = vmul.f32 %v1345_v51, %v778_v62 }
 0x2e3   :  { %v757_v18 = vadd.f32 %v1343_v60, %v756_v0 }
 0x2e4   :  { %v780_v52 = vadd.f32 %v1345_v51, %v779_v19 }
 0x2e5   :  { %v761_v59 = vsel %vm760_vm0, %v1343_v60, %v757_v18 }
 0x2e6   :  { %v766_v50 = vsel %vm763_vm1, %v765_v13, %v761_v59  ;;  %v784_v49 = vsel %vm783_vm4, %v1345_v51, %v780_v52 }
 0x2e7   :  { %v792_v54 = vmul.f32 %v791_v5, %v766_v50  ;;  %v789_v28 = vsel %vm786_vm5, %v788_v56, %v784_v49 }
 0x2e8   :  { %v797_v57 = vsub.f32 1.0, %v789_v28  ;;  %v799_v48 = vmul.f32 %v789_v28, %v2016_v58  ;;  %v2188_v58 = vld [vmem:[#allocation6 + $0x40] sm:$0xff] }
 0x2e9   :  { %v795_v23 = vadd.f32 %v793_v8, %v792_v54 }
 0x2eb   :  { %1346 = vtanh.f32 %v795_v23 }
 0x2f1   :  { %v1347_v60 = vpop.eup %1346 }
 0x2f2   :  { %v798_v61 = vmul.f32 %v1347_v60, %v797_v57 }
 0x2f4   :  { %v2127_v2 = vadd.f32 %v799_v48, %v798_v61 }
 0x2f6   :  { %1288 = vst [vmem:[%s2247_s5 + $0x6] sm:$0x3] %v2127_v2  ;;  %819 = vmatmul.f32.vlgmr.msrb.gmra.mxu3 %v2127_v2  ;;  %839 = vmatmul.f32.vlgmr.msra.gmra.mxu0 %v2127_v2 }
 0x2f7   :  { %859 = vmatmul.f32.vlgmr.msra.gmra.mxu1 %v2127_v2  ;;  %1077 = vmatpush.msrb.mxu3 %v2025_v63 }
 0x2f8   :  { %1154 = vmatpush.msra.mxu0 %v1951_v40  ;;  %1174 = vmatpush.msra.mxu1 %v2029_v44  ;;  %v2154_v40 = vld [vmem:[#allocation6 + $0xe8] sm:$0xff]  ;;  %v1431_v44 = vld [vmem:[#allocation6 + $0x38] sm:$0xff] }
 0x2f9   :  { %1078 = vmatpush.msrb.mxu3 %v2032_v6 }
 0x2fa   :  { %1155 = vmatpush.msra.mxu0 %v1956_v55  ;;  %1175 = vmatpush.msra.mxu1 %v2036_v15  ;;  %v2159_v55 = vld [vmem:[#allocation6 + $0xd0] sm:$0xff]  ;;  %v2192_v15 = vld [vmem:[#allocation6 + $0x28] sm:$0xff] }
 0x2fb   :  { %1079 = vmatpush.msrb.mxu3 %v2039_v17 }
 0x2fc   :  { %1156 = vmatpush.msra.mxu0 %v1961_v10  ;;  %1176 = vmatpush.msra.mxu1 %v2043_v21  ;;  %v2164_v10 = vld [vmem:[#allocation6 + $0xb8] sm:$0xff]  ;;  %v1433_v21 = vld [vmem:[#allocation6 + $0x20] sm:$0xff] }
 0x2fd   :  { %1080 = vmatpush.msrb.mxu3 %v2046_v22 }
 0x2fe   :  { %1157 = vmatpush.msra.mxu0 %v1966_v11  ;;  %1177 = vmatpush.msra.mxu1 %v2050_v25  ;;  %v2169_v11 = vld [vmem:[#allocation6 + $0xa0] sm:$0xff]  ;;  %v2196_v25 = vld [vmem:[#allocation6 + $0x10] sm:$0xff] }
 0x2ff   :  { %1081 = vmatpush.msrb.mxu3 %v2053_v26 }
 0x300   :  { %1158 = vmatpush.msra.mxu0 %v1971_v4  ;;  %1178 = vmatpush.msra.mxu1 %v2057_v27  ;;  %v2174_v4 = vld [vmem:[#allocation6 + $0x88] sm:$0xff] }
 0x301   :  { %1082 = vmatpush.msrb.mxu3 %v2060_v29  ;;  %v1435_v27 = vld [vmem:[#allocation6 + $0x8] sm:$0xff] }
 0x302   :  { %1159 = vmatpush.msra.mxu0 %v1976_v7  ;;  %1179 = vmatpush.msra.mxu1 %v2064_v30  ;;  %v2179_v7 = vld [vmem:[#allocation6 + $0x70] sm:$0xff]  ;;  %v864_v30 = vld [vmem:[#allocation3 + $0x18] sm:$0x3f] }
 0x303   :  { %1083 = vmatpush.msrb.mxu3 %v2154_v40  ;;  %v910_v8 = vrot.slane %v864_v30, 4 }
 0x304   :  { %1160 = vmatpush.msra.mxu0 %v1981_v9  ;;  %1180 = vmatpush.msra.mxu1 %v2069_v31  ;;  %v2184_v9 = vld [vmem:[#allocation6 + $0x58] sm:$0xff]  ;;  %v886_v31 = vrot.slane %v864_v30, 2 }
 0x305   :  { %1084 = vmatpush.msrb.mxu3 %v2159_v55 }
 0x306   :  { %1161 = vmatpush.msra.mxu0 %v1986_v12  ;;  %1181 = vmatpush.msra.mxu1 %v2074_v34  ;;  %v1429_v12 = vld [vmem:[#allocation6 + $0x50] sm:$0xff] }
 0x307   :  { %1085 = vmatpush.msrb.mxu3 %v2164_v10 }
 0x308   :  { %1162 = vmatpush.msra.mxu0 %v2078_v36  ;;  %1182 = vmatpush.msra.mxu1 %v2081_v32 }
 0x309   :  { %1086 = vmatpush.msrb.mxu3 %v2169_v11 }
 0x30a   :  { %1163 = vmatpush.msra.mxu0 %v2085_v38  ;;  %1183 = vmatpush.msra.mxu1 %v2088_v35 }
 0x30b   :  { %1087 = vmatpush.msrb.mxu3 %v2174_v4 }
 0x30c   :  { %1164 = vmatpush.msra.mxu0 %v2092_v37  ;;  %1184 = vmatpush.msra.mxu1 %v2095_v14 }
 0x30d   :  { %1088 = vmatpush.msrb.mxu3 %v2179_v7 }
 0x30e   :  { %1165 = vmatpush.msra.mxu0 %v2099_v41  ;;  %1185 = vmatpush.msra.mxu1 %v2102_v24 }
 0x30f   :  { %1089 = vmatpush.msrb.mxu3 %v2184_v9 }
 0x310   :  { %1166 = vmatpush.msra.mxu0 %v2106_v43  ;;  %1186 = vmatpush.msra.mxu1 %v1429_v12 }
 0x311   :  { %1090 = vmatpush.msrb.mxu3 %v2188_v58 }
 0x312   :  { %1167 = vmatpush.msra.mxu0 %v2111_v39  ;;  %1187 = vmatpush.msra.mxu1 %v1431_v44 }
 0x313   :  { %1091 = vmatpush.msrb.mxu3 %v2192_v15 }
 0x314   :  { %1168 = vmatpush.msra.mxu0 %v2116_v45  ;;  %1188 = vmatpush.msra.mxu1 %v1433_v21 }
 0x315   :  { %1092 = vmatpush.msrb.mxu3 %v2196_v25 }
 0x316   :  { %1169 = vmatpush.msra.mxu0 %v2121_v47  ;;  %1189 = vmatpush.msra.mxu1 %v1435_v27 }
 0x373   :  { %v840_v34 = vpop.f32.mrf.mxu0 }
 0x374   :  { %v888_v36 = vadd.f32 %v886_v31, %v840_v34  ;;  %v860_v19 = vpop.f32.mrf.mxu1 }
 0x375   :  { %v908_v13 = vadd.f32 %v1878_v3, %v860_v19  ;;  %v1098_v19 = vld [vmem:[#allocation3 + $0x24] sm:$0x3f] }
 0x376   :  { %v1290_v32 = vmul.f32 -1.442695, %v888_v36  ;;  %v2227_v36 = vld [vmem:[#allocation8] ss:$0 sm:$0xff] }
 0x378   :  { %1348 = vpow2.f32 %v1290_v32 }
 0x379   :  { %v820_v38 = vpop.f32.mrf.mxu3 }
 0x37a   :  { %v865_v35 = vadd.f32 %v864_v30, %v820_v38 }
 0x37c   :  { %v1289_v37 = vmul.f32 -1.442695, %v865_v35 }
 0x37e   :  { %v1349_v14 = vpop.eup %1348  ;;  %1350 = vpow2.f32 %v1289_v37 }
 0x37f   :  { %v892_v41 = vadd.f32 1.0, %v1349_v14 }
 0x381   :  { %1352 = vrcp.f32 %v892_v41  ;;  %v904_v50 = vand.u32 2147483648, %v892_v41  ;;  %vm898_vm11 = vweird.f32 %v892_v41  ;;  %v902_v54 = vand.u32 2147483647, %v892_v41 }
 0x383   :  { %v905_v49 = vor.u32 1.1754944e-38, %v904_v50  ;;  %vm903_vm13 = vcmp.eq.f32.partialorder %v902_v54, 8.507059e+37 }
 0x384   :  { %v1351_v24 = vpop.eup %1350 }
 0x385   :  { %v869_v43 = vadd.f32 1.0, %v1351_v24 }
 0x387   :  { %1354 = vrcp.f32 %v869_v43  ;;  %v1353_v39 = vpop.eup %1352  ;;  %v881_v62 = vand.u32 2147483648, %v869_v43  ;;  %v879_v0 = vand.u32 2147483647, %v869_v43  ;;  %vm875_vm7 = vweird.f32 %v869_v43 }
 0x388   :  { %v894_v45 = vmul.f32 %v1353_v39, %v892_v41  ;;  %vm899_vm10 = vweird.f32 %v1353_v39 }
 0x389   :  { %v882_v18 = vor.u32 1.1754944e-38, %v881_v62  ;;  %vm880_vm9 = vcmp.eq.f32.partialorder %v879_v0, 8.507059e+37  ;;  %vm900_vm12 = vmor %vm898_vm11, %vm899_vm10 }
 0x38a   :  { %v895_v33 = vsub.f32 1.0, %v894_v45 }
 0x38c   :  { %v896_v46 = vmul.f32 %v1353_v39, %v895_v33 }
 0x38d   :  { %v1355_v47 = vpop.eup %1354 }
 0x38e   :  { %v871_v42 = vmul.f32 %v1355_v47, %v869_v43  ;;  %vm876_vm6 = vweird.f32 %v1355_v47  ;;  %v897_v5 = vadd.f32 %v1353_v39, %v896_v46 }
 0x38f   :  { %vm877_vm8 = vmor %vm875_vm7, %vm876_vm6 }
 0x390   :  { %v872_v51 = vsub.f32 1.0, %v871_v42  ;;  %v901_v23 = vsel %vm900_vm12, %v1353_v39, %v897_v5 }
 0x391   :  { %v906_v56 = vsel %vm903_vm13, %v905_v49, %v901_v23 }
 0x392   :  { %v873_v53 = vmul.f32 %v1355_v47, %v872_v51  ;;  %v914_v28 = vsub.f32 1.0, %v906_v56  ;;  %v916_v60 = vmul.f32 %v906_v56, %v2127_v2 }
 0x394   :  { %v874_v1 = vadd.f32 %v1355_v47, %v873_v53 }
 0x396   :  { %v878_v59 = vsel %vm877_vm8, %v1355_v47, %v874_v1 }
 0x397   :  { %v883_v52 = vsel %vm880_vm9, %v882_v18, %v878_v59 }
 0x398   :  { %v909_v16 = vmul.f32 %v908_v13, %v883_v52  ;;  %v1120_v13 = vrot.slane %v1098_v19, 2 }
 0x39a   :  { %v912_v20 = vadd.f32 %v910_v8, %v909_v16 }
 0x39c   :  { %1356 = vtanh.f32 %v912_v20 }
 0x3a2   :  { %v1357_v57 = vpop.eup %1356 }
 0x3a3   :  { %v915_v3 = vmul.f32 %v1357_v57, %v914_v28 }
 0x3a5   :  { %v2202_v61 = vadd.f32 %v916_v60, %v915_v3 }
 0x3a7   :  { %1291 = vst [vmem:[%s2247_s5 + $0x8] sm:$0x3] %v2202_v61  ;;  %936 = vmatmul.f32.vlgmr.msra.gmra.mxu2 %v2202_v61  ;;  %956 = vmatmul.f32.vlgmr.msra.gmra.mxu3 %v2202_v61 }
 0x3a8   :  { %976 = vmatmul.f32.vlgmr.msrb.gmra.mxu0 %v2202_v61  ;;  %1194 = vmatpush.msra.mxu2 %v2025_v63  ;;  %v981_v63 = vld [vmem:[#allocation3 + $0x1e] sm:$0x3f] }
 0x3a9   :  { %v1027_v41 = vrot.slane %v981_v63, 4 }
 0x3aa   :  { %1195 = vmatpush.msra.mxu2 %v2032_v6  ;;  %v1003_v6 = vrot.slane %v981_v63, 2 }
 0x3ac   :  { %1196 = vmatpush.msra.mxu2 %v2039_v17 }
 0x3ae   :  { %1197 = vmatpush.msra.mxu2 %v2046_v22 }
 0x3b0   :  { %1198 = vmatpush.msra.mxu2 %v2053_v26 }
 0x3b2   :  { %1199 = vmatpush.msra.mxu2 %v2060_v29 }
 0x3b4   :  { %1200 = vmatpush.msra.mxu2 %v2154_v40 }
 0x3b6   :  { %1201 = vmatpush.msra.mxu2 %v2159_v55 }
 0x3b8   :  { %1202 = vmatpush.msra.mxu2 %v2164_v10 }
 0x3ba   :  { %1203 = vmatpush.msra.mxu2 %v2169_v11 }
 0x3bc   :  { %1204 = vmatpush.msra.mxu2 %v2174_v4 }
 0x3be   :  { %1205 = vmatpush.msra.mxu2 %v2179_v7 }
 0x3c0   :  { %1206 = vmatpush.msra.mxu2 %v2184_v9 }
 0x3c2   :  { %1207 = vmatpush.msra.mxu2 %v2188_v58 }
 0x3c4   :  { %1208 = vmatpush.msra.mxu2 %v2192_v15 }
 0x3c6   :  { %1209 = vmatpush.msra.mxu2 %v2196_v25 }
 0x425   :  { %v977_v27 = vpop.f32.mrf.mxu0 }
 0x426   :  { %v1025_v32 = vadd.f32 %v2227_v36, %v977_v27  ;;  %v1215_v27 = vld [vmem:[#allocation3 + $0x2a] sm:$0x3f] }
 0x42a   :  { %v937_v17 = vpop.f32.mrf.mxu2  ;;  %v957_v22 = vpop.f32.mrf.mxu3 }
 0x42b   :  { %v982_v26 = vadd.f32 %v981_v63, %v937_v17  ;;  %v1005_v29 = vadd.f32 %v1003_v6, %v957_v22 }
 0x42d   :  { %v1292_v48 = vmul.f32 -1.442695, %v982_v26  ;;  %v1293_v2 = vmul.f32 -1.442695, %v1005_v29  ;;  %v1144_v29 = vrot.slane %v1098_v19, 4 }
 0x42f   :  { %1358 = vpow2.f32 %v1292_v48 }
 0x430   :  { %1360 = vpow2.f32 %v1293_v2 }
 0x435   :  { %v1359_v40 = vpop.eup %1358 }
 0x436   :  { %v1361_v55 = vpop.eup %1360  ;;  %v986_v10 = vadd.f32 1.0, %v1359_v40 }
 0x437   :  { %v1009_v11 = vadd.f32 1.0, %v1361_v55 }
 0x438   :  { %1362 = vrcp.f32 %v986_v10  ;;  %v998_v44 = vand.u32 2147483648, %v986_v10  ;;  %v996_v25 = vand.u32 2147483647, %v986_v10  ;;  %vm992_vm15 = vweird.f32 %v986_v10 }
 0x439   :  { %1364 = vrcp.f32 %v1009_v11  ;;  %v1021_v24 = vand.u32 2147483648, %v1009_v11  ;;  %vm1015_vm3 = vweird.f32 %v1009_v11  ;;  %v1019_v43 = vand.u32 2147483647, %v1009_v11 }
 0x43a   :  { %v999_v34 = vor.u32 1.1754944e-38, %v998_v44  ;;  %vm997_vm1 = vcmp.eq.f32.partialorder %v996_v25, 8.507059e+37 }
 0x43b   :  { %v1022_v47 = vor.u32 1.1754944e-38, %v1021_v24  ;;  %vm1020_vm5 = vcmp.eq.f32.partialorder %v1019_v43, 8.507059e+37 }
 0x43e   :  { %v1363_v4 = vpop.eup %1362 }
 0x43f   :  { %v1365_v7 = vpop.eup %1364  ;;  %v988_v9 = vmul.f32 %v1363_v4, %v986_v10  ;;  %vm993_vm14 = vweird.f32 %v1363_v4 }
 0x440   :  { %v1011_v12 = vmul.f32 %v1365_v7, %v1009_v11  ;;  %vm994_vm0 = vmor %vm992_vm15, %vm993_vm14  ;;  %vm1016_vm2 = vweird.f32 %v1365_v7 }
 0x441   :  { %v989_v58 = vsub.f32 1.0, %v988_v9  ;;  %vm1017_vm4 = vmor %vm1015_vm3, %vm1016_vm2 }
 0x442   :  { %v1012_v15 = vsub.f32 1.0, %v1011_v12 }
 0x443   :  { %v990_v21 = vmul.f32 %v1363_v4, %v989_v58 }
 0x444   :  { %v1013_v30 = vmul.f32 %v1365_v7, %v1012_v15 }
 0x445   :  { %v991_v31 = vadd.f32 %v1363_v4, %v990_v21 }
 0x446   :  { %v1014_v37 = vadd.f32 %v1365_v7, %v1013_v30  ;;  %v1237_v30 = vrot.slane %v1215_v27, 2 }
 0x447   :  { %v995_v38 = vsel %vm994_vm0, %v1363_v4, %v991_v31 }
 0x448   :  { %v1000_v35 = vsel %vm997_vm1, %v999_v34, %v995_v38  ;;  %v1018_v45 = vsel %vm1017_vm4, %v1365_v7, %v1014_v37 }
 0x449   :  { %v1026_v14 = vmul.f32 %v1025_v32, %v1000_v35  ;;  %v1023_v42 = vsel %vm1020_vm5, %v1022_v47, %v1018_v45 }
 0x44a   :  { %v1031_v33 = vsub.f32 1.0, %v1023_v42  ;;  %v1033_v53 = vmul.f32 %v1023_v42, %v2202_v61 }
 0x44b   :  { %v1029_v39 = vadd.f32 %v1027_v41, %v1026_v14 }
 0x44d   :  { %1366 = vtanh.f32 %v1029_v39 }
 0x453   :  { %v1367_v51 = vpop.eup %1366 }
 0x454   :  { %v1032_v62 = vmul.f32 %v1367_v51, %v1031_v33 }
 0x456   :  { %v1034_v0 = vadd.f32 %v1033_v53, %v1032_v62 }
 0x458   :  { %1294 = vst [vmem:[%s2247_s5 + $0xa] sm:$0x3] %v1034_v0  ;;  %1053 = vmatmul.f32.vlgmr.msrb.gmra.mxu1 %v1034_v0  ;;  %1073 = vmatmul.f32.vlgmr.msrb.gmra.mxu2 %v1034_v0 }
 0x459   :  { %1093 = vmatmul.f32.vlgmr.msrb.gmra.mxu3 %v1034_v0 }
 0x4d5   :  { %v1054_v46 = vpop.f32.mrf.mxu1 }
 0x4d6   :  { %v1099_v1 = vadd.f32 %v1098_v19, %v1054_v46 }
 0x4d8   :  { %v1295_v18 = vmul.f32 -1.442695, %v1099_v1 }
 0x4da   :  { %1368 = vpow2.f32 %v1295_v18 }
 0x4db   :  { %v1074_v59 = vpop.f32.mrf.mxu2 }
 0x4dc   :  { %v1122_v5 = vadd.f32 %v1120_v13, %v1074_v59  ;;  %v1094_v60 = vpop.f32.mrf.mxu3 }
 0x4dd   :  { %v1142_v26 = vadd.f32 %v2227_v36, %v1094_v60 }
 0x4de   :  { %v1296_v52 = vmul.f32 -1.442695, %v1122_v5 }
 0x4e0   :  { %v1369_v50 = vpop.eup %1368  ;;  %1370 = vpow2.f32 %v1296_v52 }
 0x4e1   :  { %v1103_v8 = vadd.f32 1.0, %v1369_v50  ;;  %v1261_v50 = vrot.slane %v1215_v27, 4 }
 0x4e3   :  { %1372 = vrcp.f32 %v1103_v8  ;;  %v1115_v56 = vand.u32 2147483648, %v1103_v8  ;;  %v1113_v57 = vand.u32 2147483647, %v1103_v8  ;;  %vm1109_vm7 = vweird.f32 %v1103_v8 }
 0x4e5   :  { %v1116_v6 = vor.u32 1.1754944e-38, %v1115_v56  ;;  %vm1114_vm9 = vcmp.eq.f32.partialorder %v1113_v57, 8.507059e+37 }
 0x4e6   :  { %v1371_v16 = vpop.eup %1370 }
 0x4e7   :  { %v1126_v54 = vadd.f32 1.0, %v1371_v16 }
 0x4e9   :  { %v1373_v20 = vpop.eup %1372  ;;  %1374 = vrcp.f32 %v1126_v54  ;;  %v1138_v40 = vand.u32 2147483648, %v1126_v54  ;;  %v1136_v10 = vand.u32 2147483647, %v1126_v54  ;;  %vm1132_vm11 = vweird.f32 %v1126_v54 }
 0x4ea   :  { %v1105_v23 = vmul.f32 %v1373_v20, %v1103_v8  ;;  %vm1110_vm6 = vweird.f32 %v1373_v20 }
 0x4eb   :  { %vm1111_vm8 = vmor %vm1109_vm7, %vm1110_vm6  ;;  %v1139_v7 = vor.u32 1.1754944e-38, %v1138_v40  ;;  %vm1137_vm13 = vcmp.eq.f32.partialorder %v1136_v10, 8.507059e+37 }
 0x4ec   :  { %v1106_v49 = vsub.f32 1.0, %v1105_v23 }
 0x4ee   :  { %v1107_v28 = vmul.f32 %v1373_v20, %v1106_v49 }
 0x4ef   :  { %v1375_v3 = vpop.eup %1374 }
 0x4f0   :  { %v1128_v61 = vmul.f32 %v1375_v3, %v1126_v54  ;;  %v1108_v63 = vadd.f32 %v1373_v20, %v1107_v28  ;;  %vm1133_vm10 = vweird.f32 %v1375_v3 }
 0x4f1   :  { %vm1134_vm12 = vmor %vm1132_vm11, %vm1133_vm10 }
 0x4f2   :  { %v1129_v17 = vsub.f32 1.0, %v1128_v61  ;;  %v1112_v22 = vsel %vm1111_vm8, %v1373_v20, %v1108_v63 }
 0x4f3   :  { %v1117_v48 = vsel %vm1114_vm9, %v1116_v6, %v1112_v22 }
 0x4f4   :  { %v1130_v2 = vmul.f32 %v1375_v3, %v1129_v17  ;;  %v1143_v55 = vmul.f32 %v1142_v26, %v1117_v48 }
 0x4f6   :  { %v1131_v11 = vadd.f32 %v1375_v3, %v1130_v2  ;;  %v1146_v4 = vadd.f32 %v1144_v29, %v1143_v55 }
 0x4f8   :  { %v1135_v9 = vsel %vm1134_vm12, %v1375_v3, %v1131_v11  ;;  %1376 = vtanh.f32 %v1146_v4 }
 0x4f9   :  { %v1140_v12 = vsel %vm1137_vm13, %v1139_v7, %v1135_v9 }
 0x4fa   :  { %v1148_v58 = vsub.f32 1.0, %v1140_v12  ;;  %v1150_v21 = vmul.f32 %v1140_v12, %v1034_v0 }
 0x4fe   :  { %v1377_v44 = vpop.eup %1376 }
 0x4ff   :  { %v1149_v15 = vmul.f32 %v1377_v44, %v1148_v58 }
 0x501   :  { %v1151_v25 = vadd.f32 %v1150_v21, %v1149_v15 }
 0x503   :  { %1297 = vst [vmem:[%s2247_s5 + $0xc] sm:$0x3] %v1151_v25  ;;  %1170 = vmatmul.f32.vlgmr.msra.gmra.mxu0 %v1151_v25  ;;  %1190 = vmatmul.f32.vlgmr.msra.gmra.mxu1 %v1151_v25 }
 0x504   :  { %1210 = vmatmul.f32.vlgmr.msra.gmra.mxu2 %v1151_v25 }
 0x580   :  { %v1171_v31 = vpop.f32.mrf.mxu0  ;;  %v1191_v34 = vpop.f32.mrf.mxu1 }
 0x581   :  { %v1216_v32 = vadd.f32 %v1215_v27, %v1171_v31  ;;  %v1239_v38 = vadd.f32 %v1237_v30, %v1191_v34 }
 0x583   :  { %v1298_v35 = vmul.f32 -1.442695, %v1216_v32  ;;  %v1299_v37 = vmul.f32 -1.442695, %v1239_v38 }
 0x585   :  { %1378 = vpow2.f32 %v1298_v35 }
 0x586   :  { %1380 = vpow2.f32 %v1299_v37 }
 0x587   :  { %v1211_v19 = vpop.f32.mrf.mxu2 }
 0x588   :  { %v1259_v59 = vadd.f32 %v2227_v36, %v1211_v19 }
 0x58b   :  { %v1379_v14 = vpop.eup %1378 }
 0x58c   :  { %v1381_v41 = vpop.eup %1380  ;;  %v1220_v24 = vadd.f32 1.0, %v1379_v14 }
 0x58d   :  { %v1243_v43 = vadd.f32 1.0, %v1381_v41 }
 0x58e   :  { %1382 = vrcp.f32 %v1220_v24  ;;  %v1232_v62 = vand.u32 2147483648, %v1220_v24  ;;  %v1230_v0 = vand.u32 2147483647, %v1220_v24  ;;  %vm1226_vm15 = vweird.f32 %v1220_v24 }
 0x58f   :  { %1384 = vrcp.f32 %v1243_v43  ;;  %v1255_v8 = vand.u32 2147483648, %v1243_v43  ;;  %vm1249_vm3 = vweird.f32 %v1243_v43  ;;  %v1253_v54 = vand.u32 2147483647, %v1243_v43 }
 0x590   :  { %v1233_v18 = vor.u32 1.1754944e-38, %v1232_v62  ;;  %vm1231_vm1 = vcmp.eq.f32.partialorder %v1230_v0, 8.507059e+37 }
 0x591   :  { %v1256_v49 = vor.u32 1.1754944e-38, %v1255_v8  ;;  %vm1254_vm5 = vcmp.eq.f32.partialorder %v1253_v54, 8.507059e+37 }
 0x594   :  { %v1383_v39 = vpop.eup %1382 }
 0x595   :  { %v1385_v45 = vpop.eup %1384  ;;  %v1222_v47 = vmul.f32 %v1383_v39, %v1220_v24  ;;  %vm1227_vm14 = vweird.f32 %v1383_v39 }
 0x596   :  { %v1245_v42 = vmul.f32 %v1385_v45, %v1243_v43  ;;  %vm1228_vm0 = vmor %vm1226_vm15, %vm1227_vm14  ;;  %vm1250_vm2 = vweird.f32 %v1385_v45 }
 0x597   :  { %v1223_v33 = vsub.f32 1.0, %v1222_v47  ;;  %vm1251_vm4 = vmor %vm1249_vm3, %vm1250_vm2 }
 0x598   :  { %v1246_v51 = vsub.f32 1.0, %v1245_v42 }
 0x599   :  { %v1224_v53 = vmul.f32 %v1383_v39, %v1223_v33 }
 0x59a   :  { %v1247_v46 = vmul.f32 %v1385_v45, %v1246_v51 }
 0x59b   :  { %v1225_v1 = vadd.f32 %v1383_v39, %v1224_v53 }
 0x59c   :  { %v1248_v5 = vadd.f32 %v1385_v45, %v1247_v46 }
 0x59d   :  { %v1229_v13 = vsel %vm1228_vm0, %v1383_v39, %v1225_v1 }
 0x59e   :  { %v1234_v52 = vsel %vm1231_vm1, %v1233_v18, %v1229_v13  ;;  %v1252_v23 = vsel %vm1251_vm4, %v1385_v45, %v1248_v5 }
 0x59f   :  { %v1260_v16 = vmul.f32 %v1259_v59, %v1234_v52  ;;  %v1257_v56 = vsel %vm1254_vm5, %v1256_v49, %v1252_v23 }
 0x5a0   :  { %v1265_v28 = vsub.f32 1.0, %v1257_v56  ;;  %v1267_v60 = vmul.f32 %v1257_v56, %v1151_v25 }
 0x5a1   :  { %v1263_v20 = vadd.f32 %v1261_v50, %v1260_v16 }
 0x5a3   :  { %1386 = vtanh.f32 %v1263_v20 }
 0x5a9   :  { %v1387_v57 = vpop.eup %1386 }
 0x5aa   :  { %v1266_v3 = vmul.f32 %v1387_v57, %v1265_v28 }
 0x5ac   :  { %v1268_v36 = vadd.f32 %v1267_v60, %v1266_v3 }
 0x5ae   :  { %1300 = vst [vmem:[%s2247_s5 + $0xe] sm:$0x3] %v1268_v36 }
 0x5af   :  { %1271 = vst [vmem:[#allocation2] sm:$0x3] %v1268_v36 }
 0x5b0   :  { %1276 = vsyncpa [#allocation5], 1 }
 0x5b1   :  { %1277 = vsyncpa [#allocation7], 1 }

// kernel: rnn_forward.3
= control target key start
LH: loop header
LB: loop body
LE: loop exit
PB: predicated region body
PF: predicated region fallthrough
CT: control target
= control target key end

     0   :  { %10 = vsyncpa [#allocation5], 0  ;;  %s2660_s0 = inlined_call_operand.vmem [shape: f32[8,2,512], index: 0, kind: input, shape index: {}]   ;;  %s2661_s1 = inlined_call_operand.hbm [shape: f32[512,384], index: 1, kind: input, shape index: {}]   ;;  %s2662_s2 = inlined_call_operand.vmem [shape: f32[1,384], index: 2, kind: input, shape index: {}]   ;;  %s2663_s3 = inlined_call_operand.hbm [shape: f32[128,384], index: 3, kind: input, shape index: {}]   ;;  %s2664_s4 = inlined_call_operand.hbm [shape: f32[1,128], index: 4, kind: input, shape index: {}]   ;;  %s2665_s5 = inlined_call_operand.vmem [shape: f32[8,2,128], index: 5, kind: output, shape index: {}]  }
   0x1   :  { %11 = vsyncpa [#allocation7], 0  ;;  %s33_s20 = sshll.u32 %s2663_s3, 4  ;;  %s1876_s21 = smov [#allocation6]   ;;  %s34_s20 = int_to_ptr.hbm [resolvable:$true] %s33_s20 }
   0x2   :  { %s35_s22 = sshll.u32 %s1876_s21, 4  ;;  %s18_s25 = sshll.u32 %s2661_s1, 4  ;;  %s36_s22 = int_to_ptr.vmem [resolvable:$true] %s35_s22  ;;  %s19_s25 = int_to_ptr.hbm [resolvable:$true] %s18_s25 }
   0x3   :  { %s1877_s26 = smov 384   ;;  %s1878_s27 = smov 24  }
   0x4   :  { %41 = dma.hbm_to_vmem [thread:$0]  %s34_s20, 6144, %s36_s22, [#allocation7], %s1877_s26, %s1877_s26, %s1878_s27  }
   0x5   :  { %s1879_s28 = smov [#allocation4]   ;;  %s47_s7 = sshll.u32 %s2664_s4, 4  ;;  %s48_s7 = int_to_ptr.hbm [resolvable:$true] %s47_s7 }
   0x6   :  { %s20_s29 = sshll.u32 %s1879_s28, 4  ;;  %s1880_s3 = smov [#allocation8]   ;;  %s21_s29 = int_to_ptr.vmem [resolvable:$true] %s20_s29 }
   0x7   :  { %26 = dma.hbm_to_vmem [thread:$0]  %s19_s25, 24576, %s21_s29, [#allocation5], %s1877_s26, %s1877_s26, %s1878_s27  }
   0x8   :  { %s49_s8 = sshll.u32 %s1880_s3, 4  ;;  %s50_s8 = int_to_ptr.vmem [resolvable:$true] %s49_s8 }
   0x9   :  { %52 = dma.hbm_to_vmem [thread:$0]  %s48_s7, 16, %s50_s8, [#allocation7]  }
   0xa   :  { %1872 = dma.done.wait [#allocation5], 24576  }
   0xb   :  { %1873 = vsyncadd [#allocation5], 4294942720 }
   0xc   :  { %1874 = dma.done.wait [#allocation7], 6160  }
   0xd   :  { %1875 = vsyncadd [#allocation7], 4294961136  ;;  %v123_v0 = vld [vmem:[#allocation4 + $0x168] sm:$0xff]  ;;  %v120_v3 = vld [vmem:[#allocation4 + $0x150] sm:$0xff]  ;;  %vm603_vm0 = vcmask 1041408   ;;  %vm607_vm1 = vcmask 1043458  }
   0xe   :  { %v171_v1 = vld [vmem:[#allocation4 + $0x2e8] sm:$0xff]  ;;  %317 = vmatpush.msra.mxu0 %v123_v0  ;;  %v168_v4 = vld [vmem:[#allocation4 + $0x2d0] sm:$0xff]  ;;  %v117_v7 = vld [vmem:[#allocation4 + $0x138] sm:$0xff]  ;;  %vm612_vm2 = vcmask 1045508   ;;  %vm616_vm3 = vcmask 1045504   ;;  %vm605_vm4 = vcmask 1043456  }
   0xf   :  { %v219_v2 = vld [vmem:[#allocation4 + $0x468] sm:$0xff]  ;;  %340 = vmatpush.msra.mxu1 %v171_v1  ;;  %v216_v5 = vld [vmem:[#allocation4 + $0x450] sm:$0xff]  ;;  %v165_v8 = vld [vmem:[#allocation4 + $0x2b8] sm:$0xff]  ;;  %vm609_vm5 = vcmask 1045506  }
  0x10   :  { %363 = vmatpush.msra.mxu2 %v219_v2  ;;  %v267_v6 = vld [vmem:[#allocation4 + $0x5e8] sm:$0xff]  ;;  %318 = vmatpush.msra.mxu0 %v120_v3  ;;  %v213_v9 = vld [vmem:[#allocation4 + $0x438] sm:$0xff]  ;;  %v264_v10 = vld [vmem:[#allocation4 + $0x5d0] sm:$0xff] }
  0x11   :  { %341 = vmatpush.msra.mxu1 %v168_v4  ;;  %386 = vmatpush.msra.mxu3 %v267_v6  ;;  %v114_v11 = vld [vmem:[#allocation4 + $0x120] sm:$0xff]  ;;  %v261_v14 = vld [vmem:[#allocation4 + $0x5b8] sm:$0xff]  ;;  %v111_v15 = vld [vmem:[#allocation4 + $0x108] sm:$0xff] }
  0x12   :  { %364 = vmatpush.msra.mxu2 %v216_v5  ;;  %v162_v12 = vld [vmem:[#allocation4 + $0x2a0] sm:$0xff]  ;;  %319 = vmatpush.msra.mxu0 %v117_v7  ;;  %v159_v16 = vld [vmem:[#allocation4 + $0x288] sm:$0xff]  ;;  %v108_v19 = vld [vmem:[#allocation4 + $0xf0] sm:$0xff] }
  0x13   :  { %342 = vmatpush.msra.mxu1 %v165_v8  ;;  %v210_v13 = vld [vmem:[#allocation4 + $0x420] sm:$0xff]  ;;  %387 = vmatpush.msra.mxu3 %v264_v10  ;;  %v207_v17 = vld [vmem:[#allocation4 + $0x408] sm:$0xff]  ;;  %v156_v20 = vld [vmem:[#allocation4 + $0x270] sm:$0xff] }
  0x14   :  { %365 = vmatpush.msra.mxu2 %v213_v9  ;;  %320 = vmatpush.msra.mxu0 %v114_v11  ;;  %v258_v18 = vld [vmem:[#allocation4 + $0x5a0] sm:$0xff]  ;;  %v204_v21 = vld [vmem:[#allocation4 + $0x3f0] sm:$0xff]  ;;  %v255_v22 = vld [vmem:[#allocation4 + $0x588] sm:$0xff] }
  0x15   :  { %343 = vmatpush.msra.mxu1 %v162_v12  ;;  %388 = vmatpush.msra.mxu3 %v261_v14  ;;  %v105_v23 = vld [vmem:[#allocation4 + $0xd8] sm:$0xff]  ;;  %v252_v26 = vld [vmem:[#allocation4 + $0x570] sm:$0xff]  ;;  %v102_v27 = vld [vmem:[#allocation4 + $0xc0] sm:$0xff] }
  0x16   :  { %366 = vmatpush.msra.mxu2 %v210_v13  ;;  %321 = vmatpush.msra.mxu0 %v111_v15  ;;  %v153_v24 = vld [vmem:[#allocation4 + $0x258] sm:$0xff]  ;;  %v150_v28 = vld [vmem:[#allocation4 + $0x240] sm:$0xff]  ;;  %v99_v31 = vld [vmem:[#allocation4 + $0xa8] sm:$0xff] }
  0x17   :  { %344 = vmatpush.msra.mxu1 %v159_v16  ;;  %389 = vmatpush.msra.mxu3 %v258_v18  ;;  %v201_v25 = vld [vmem:[#allocation4 + $0x3d8] sm:$0xff]  ;;  %v198_v29 = vld [vmem:[#allocation4 + $0x3c0] sm:$0xff]  ;;  %v147_v32 = vld [vmem:[#allocation4 + $0x228] sm:$0xff] }
  0x18   :  { %367 = vmatpush.msra.mxu2 %v207_v17  ;;  %322 = vmatpush.msra.mxu0 %v108_v19  ;;  %v249_v30 = vld [vmem:[#allocation4 + $0x558] sm:$0xff]  ;;  %v195_v33 = vld [vmem:[#allocation4 + $0x3a8] sm:$0xff]  ;;  %v246_v34 = vld [vmem:[#allocation4 + $0x540] sm:$0xff] }
  0x19   :  { %345 = vmatpush.msra.mxu1 %v156_v20  ;;  %390 = vmatpush.msra.mxu3 %v255_v22  ;;  %v96_v35 = vld [vmem:[#allocation4 + $0x90] sm:$0xff]  ;;  %v243_v38 = vld [vmem:[#allocation4 + $0x528] sm:$0xff]  ;;  %v93_v39 = vld [vmem:[#allocation4 + $0x78] sm:$0xff] }
  0x1a   :  { %368 = vmatpush.msra.mxu2 %v204_v21  ;;  %323 = vmatpush.msra.mxu0 %v105_v23  ;;  %v144_v36 = vld [vmem:[#allocation4 + $0x210] sm:$0xff]  ;;  %v141_v40 = vld [vmem:[#allocation4 + $0x1f8] sm:$0xff]  ;;  %v90_v43 = vld [vmem:[#allocation4 + $0x60] sm:$0xff] }
  0x1b   :  { %346 = vmatpush.msra.mxu1 %v153_v24  ;;  %391 = vmatpush.msra.mxu3 %v252_v26  ;;  %v192_v37 = vld [vmem:[#allocation4 + $0x390] sm:$0xff]  ;;  %v189_v41 = vld [vmem:[#allocation4 + $0x378] sm:$0xff]  ;;  %v138_v44 = vld [vmem:[#allocation4 + $0x1e0] sm:$0xff] }
  0x1c   :  { %369 = vmatpush.msra.mxu2 %v201_v25  ;;  %324 = vmatpush.msra.mxu0 %v102_v27  ;;  %v240_v42 = vld [vmem:[#allocation4 + $0x510] sm:$0xff]  ;;  %v186_v45 = vld [vmem:[#allocation4 + $0x360] sm:$0xff]  ;;  %v237_v46 = vld [vmem:[#allocation4 + $0x4f8] sm:$0xff] }
  0x1d   :  { %347 = vmatpush.msra.mxu1 %v150_v28  ;;  %392 = vmatpush.msra.mxu3 %v249_v30  ;;  %v87_v47 = vld [vmem:[#allocation4 + $0x48] sm:$0xff]  ;;  %v234_v50 = vld [vmem:[#allocation4 + $0x4e0] sm:$0xff]  ;;  %v84_v51 = vld [vmem:[#allocation4 + $0x30] sm:$0xff] }
  0x1e   :  { %370 = vmatpush.msra.mxu2 %v198_v29  ;;  %325 = vmatpush.msra.mxu0 %v99_v31  ;;  %v135_v48 = vld [vmem:[#allocation4 + $0x1c8] sm:$0xff]  ;;  %v132_v52 = vld [vmem:[#allocation4 + $0x1b0] sm:$0xff]  ;;  %v81_v55 = vld [vmem:[#allocation4 + $0x18] sm:$0xff] }
  0x1f   :  { %348 = vmatpush.msra.mxu1 %v147_v32  ;;  %393 = vmatpush.msra.mxu3 %v246_v34  ;;  %v183_v49 = vld [vmem:[#allocation4 + $0x348] sm:$0xff]  ;;  %v180_v53 = vld [vmem:[#allocation4 + $0x330] sm:$0xff]  ;;  %v129_v56 = vld [vmem:[#allocation4 + $0x198] sm:$0xff] }
  0x20   :  { %371 = vmatpush.msra.mxu2 %v195_v33  ;;  %326 = vmatpush.msra.mxu0 %v96_v35  ;;  %v231_v54 = vld [vmem:[#allocation4 + $0x4c8] sm:$0xff]  ;;  %v177_v57 = vld [vmem:[#allocation4 + $0x318] sm:$0xff]  ;;  %v228_v58 = vld [vmem:[#allocation4 + $0x4b0] sm:$0xff] }
  0x21   :  { %349 = vmatpush.msra.mxu1 %v144_v36  ;;  %394 = vmatpush.msra.mxu3 %v243_v38  ;;  %v78_v59 = vld [vmem:[#allocation4] sm:$0xff]  ;;  %v225_v62 = vld [vmem:[#allocation4 + $0x498] sm:$0xff]  ;;  %v124_v63 = vld [vmem:[#allocation4 + $0x170] sm:$0xff] }
  0x22   :  { %372 = vmatpush.msra.mxu2 %v192_v37  ;;  %327 = vmatpush.msra.mxu0 %v93_v39  ;;  %v126_v60 = vld [vmem:[#allocation4 + $0x180] sm:$0xff]  ;;  %v172_v0 = vld [vmem:[#allocation4 + $0x2f0] sm:$0xff]  ;;  %v121_v3 = vld [vmem:[#allocation4 + $0x158] sm:$0xff] }
  0x23   :  { %350 = vmatpush.msra.mxu1 %v141_v40  ;;  %395 = vmatpush.msra.mxu3 %v240_v42  ;;  %v174_v61 = vld [vmem:[#allocation4 + $0x300] sm:$0xff]  ;;  %v220_v1 = vld [vmem:[#allocation4 + $0x470] sm:$0xff]  ;;  %v169_v4 = vld [vmem:[#allocation4 + $0x2d8] sm:$0xff] }
  0x24   :  { %373 = vmatpush.msra.mxu2 %v189_v41  ;;  %328 = vmatpush.msra.mxu0 %v90_v43  ;;  %v222_v2 = vld [vmem:[#allocation4 + $0x480] sm:$0xff]  ;;  %v71_v6 = vld [vmem:[%s2660_s0 + $0x8] sm:$0xff]  ;;  %v72_v7 = vld [vmem:[%s2660_s0 + $0x10] sm:$0xff] }
  0x25   :  { %351 = vmatpush.msra.mxu1 %v138_v44  ;;  %396 = vmatpush.msra.mxu3 %v237_v46  ;;  %v70_v5 = vld [vmem:[%s2660_s0] sm:$0xff]  ;;  %v73_v8 = vld [vmem:[%s2660_s0 + $0x18] sm:$0xff]  ;;  %v268_v10 = vld [vmem:[#allocation4 + $0x5f0] sm:$0xff]  ;;  %288 = vst [vmem:[#allocation1 + $0x1] ss:$4 sm:$0xff] %v71_v6 }
  0x26   :  { %374 = vmatpush.msra.mxu2 %v186_v45  ;;  %329 = vmatpush.msra.mxu0 %v87_v47  ;;  %286 = vst [vmem:[#allocation1] ss:$4 sm:$0xff] %v70_v5  ;;  %v217_v9 = vld [vmem:[#allocation4 + $0x458] sm:$0xff]  ;;  %v118_v11 = vld [vmem:[#allocation4 + $0x140] sm:$0xff]  ;;  %v115_v15 = vld [vmem:[#allocation4 + $0x128] sm:$0xff] }
  0x27   :  { %352 = vmatpush.msra.mxu1 %v135_v48  ;;  %397 = vmatpush.msra.mxu3 %v234_v50  ;;  %v166_v12 = vld [vmem:[#allocation4 + $0x2c0] sm:$0xff]  ;;  %290 = vst [vmem:[#allocation1 + $0x2] ss:$4 sm:$0xff] %v72_v7  ;;  %v265_v14 = vld [vmem:[#allocation4 + $0x5d8] sm:$0xff]  ;;  %v163_v16 = vld [vmem:[#allocation4 + $0x2a8] sm:$0xff] }
  0x28   :  { %375 = vmatpush.msra.mxu2 %v183_v49  ;;  %330 = vmatpush.msra.mxu0 %v84_v51  ;;  %v214_v13 = vld [vmem:[#allocation4 + $0x440] sm:$0xff]  ;;  %292 = vst [vmem:[#allocation1 + $0x3] ss:$4 sm:$0xff] %v73_v8  ;;  %v211_v17 = vld [vmem:[#allocation4 + $0x428] sm:$0xff]  ;;  %v112_v19 = vld [vmem:[#allocation4 + $0x110] sm:$0xff] }
  0x29   :  { %353 = vmatpush.msra.mxu1 %v132_v52  ;;  %398 = vmatpush.msra.mxu3 %v231_v54  ;;  %v262_v18 = vld [vmem:[#allocation4 + $0x5c0] sm:$0xff]  ;;  %v160_v20 = vld [vmem:[#allocation4 + $0x290] sm:$0xff]  ;;  %v259_v24 = vld [vmem:[#allocation4 + $0x5a8] sm:$0xff] }
  0x2a   :  { %376 = vmatpush.msra.mxu2 %v180_v53  ;;  %331 = vmatpush.msra.mxu0 %v81_v55  ;;  %v74_v21 = vld [vmem:[%s2660_s0 + $0x20] sm:$0xff]  ;;  %v75_v22 = vld [vmem:[%s2660_s0 + $0x28] sm:$0xff]  ;;  %v76_v25 = vld [vmem:[%s2660_s0 + $0x30] sm:$0xff] }
  0x2b   :  { %354 = vmatpush.msra.mxu1 %v129_v56  ;;  %399 = vmatpush.msra.mxu3 %v228_v58  ;;  %v208_v23 = vld [vmem:[#allocation4 + $0x410] sm:$0xff]  ;;  %294 = vst [vmem:[#allocation1 + $0x20] ss:$4 sm:$0xff] %v74_v21  ;;  %v109_v26 = vld [vmem:[#allocation4 + $0xf8] sm:$0xff]  ;;  %v106_v31 = vld [vmem:[#allocation4 + $0xe0] sm:$0xff] }
  0x2c   :  { %377 = vmatpush.msra.mxu2 %v177_v57  ;;  %332 = vmatpush.msra.mxu0 %v78_v59  ;;  %v157_v27 = vld [vmem:[#allocation4 + $0x278] sm:$0xff]  ;;  %296 = vst [vmem:[#allocation1 + $0x21] ss:$4 sm:$0xff] %v75_v22  ;;  %v256_v29 = vld [vmem:[#allocation4 + $0x590] sm:$0xff]  ;;  %v154_v32 = vld [vmem:[#allocation4 + $0x260] sm:$0xff] }
  0x2d   :  { %355 = vmatpush.msra.mxu1 %v126_v60  ;;  %400 = vmatpush.msra.mxu3 %v225_v62  ;;  %v205_v28 = vld [vmem:[#allocation4 + $0x3f8] sm:$0xff]  ;;  %298 = vst [vmem:[#allocation1 + $0x22] ss:$4 sm:$0xff] %v76_v25  ;;  %v202_v33 = vld [vmem:[#allocation4 + $0x3e0] sm:$0xff]  ;;  %v103_v35 = vld [vmem:[#allocation4 + $0xc8] sm:$0xff] }
  0x2e   :  { %378 = vmatpush.msra.mxu2 %v174_v61  ;;  %409 = vmatpush.msrb.mxu0 %v124_v63  ;;  %v77_v30 = vld [vmem:[%s2660_s0 + $0x38] sm:$0xff]  ;;  %v151_v36 = vld [vmem:[#allocation4 + $0x248] sm:$0xff]  ;;  %v100_v40 = vld [vmem:[#allocation4 + $0xb0] sm:$0xff] }
  0x2f   :  { %432 = vmatpush.msrb.mxu1 %v172_v0  ;;  %401 = vmatpush.msra.mxu3 %v222_v2  ;;  %v253_v34 = vld [vmem:[#allocation4 + $0x578] sm:$0xff]  ;;  %300 = vst [vmem:[#allocation1 + $0x23] ss:$4 sm:$0xff] %v77_v30  ;;  %v199_v37 = vld [vmem:[#allocation4 + $0x3c8] sm:$0xff]  ;;  %v250_v38 = vld [vmem:[#allocation4 + $0x560] sm:$0xff] }
  0x30   :  { %455 = vmatpush.msrb.mxu2 %v220_v1  ;;  %410 = vmatpush.msrb.mxu0 %v121_v3  ;;  %v1945_v39 = vld.sshfl [vmem:[#allocation1 + $0x10] sm:$0xff pattern:$0x73625140]  ;;  %v247_v43 = vld [vmem:[#allocation4 + $0x548] sm:$0xff]  ;;  %v94_v51 = vld [vmem:[#allocation4 + $0x80] sm:$0xff] }
  0x31   :  { %433 = vmatpush.msrb.mxu1 %v169_v4  ;;  %478 = vmatpush.msrb.mxu3 %v268_v10  ;;  %v148_v41 = vld [vmem:[#allocation4 + $0x230] sm:$0xff]  ;;  %v1947_v44 = vld.sshfl [vmem:[#allocation1] sm:$0xff pattern:$0x73625140]  ;;  %v97_v46 = vld [vmem:[#allocation4 + $0x98] sm:$0xff] }
  0x32   :  { %456 = vmatpush.msrb.mxu2 %v217_v9  ;;  %411 = vmatpush.msrb.mxu0 %v118_v11  ;;  %v196_v42 = vld [vmem:[#allocation4 + $0x3b0] sm:$0xff]  ;;  %v1950_v45 = vld.sshfl [vmem:[#allocation1 + $0x18] sm:$0xff pattern:$0x73625140]  ;;  %v91_v55 = vld [vmem:[#allocation4 + $0x68] sm:$0xff] }
  0x33   :  { %434 = vmatpush.msrb.mxu1 %v166_v12  ;;  %479 = vmatpush.msrb.mxu3 %v265_v14  ;;  %v145_v47 = vld [vmem:[#allocation4 + $0x218] sm:$0xff]  ;;  %v244_v49 = vld [vmem:[#allocation4 + $0x530] sm:$0xff]  ;;  %v142_v52 = vld [vmem:[#allocation4 + $0x200] sm:$0xff] }
  0x34   :  { %457 = vmatpush.msrb.mxu2 %v214_v13  ;;  %412 = vmatpush.msrb.mxu0 %v115_v15  ;;  %v193_v48 = vld [vmem:[#allocation4 + $0x398] sm:$0xff]  ;;  %v1953_v50 = vld.sshfl [vmem:[#allocation1 + $0x8] sm:$0xff pattern:$0x73625140]  ;;  %v190_v53 = vld [vmem:[#allocation4 + $0x380] sm:$0xff] }
  0x35   :  { %435 = vmatpush.msrb.mxu1 %v163_v16  ;;  %480 = vmatpush.msrb.mxu3 %v262_v18  ;;  %v241_v54 = vld [vmem:[#allocation4 + $0x518] sm:$0xff]  ;;  %v139_v56 = vld [vmem:[#allocation4 + $0x1e8] sm:$0xff]  ;;  %v238_v58 = vld [vmem:[#allocation4 + $0x500] sm:$0xff] }
  0x36   :  { %458 = vmatpush.msrb.mxu2 %v211_v17  ;;  %413 = vmatpush.msrb.mxu0 %v112_v19  ;;  %v187_v57 = vld [vmem:[#allocation4 + $0x368] sm:$0xff]  ;;  %v1957_v59 = vld.sshfl [vmem:[#allocation1 + $0x30] sm:$0xff pattern:$0x73625140]  ;;  %v82_v7 = vld [vmem:[#allocation4 + $0x20] sm:$0xff] }
  0x37   :  { %436 = vmatpush.msrb.mxu1 %v160_v20  ;;  %481 = vmatpush.msrb.mxu3 %v259_v24  ;;  %v88_v60 = vld [vmem:[#allocation4 + $0x50] sm:$0xff]  ;;  %v235_v63 = vld [vmem:[#allocation4 + $0x4e8] sm:$0xff]  ;;  %v1962_v1 = vld.sshfl [vmem:[#allocation1 + $0x38] sm:$0xff pattern:$0x73625140] }
  0x38   :  { %459 = vmatpush.msrb.mxu2 %v208_v23  ;;  %414 = vmatpush.msrb.mxu0 %v109_v26  ;;  %v136_v61 = vld [vmem:[#allocation4 + $0x1d0] sm:$0xff]  ;;  %v1959_v0 = vld.sshfl [vmem:[#allocation1 + $0x20] sm:$0xff pattern:$0x73625140]  ;;  %v85_v2 = vld [vmem:[#allocation4 + $0x38] sm:$0xff] }
  0x39   :  { %437 = vmatpush.msrb.mxu1 %v157_v27  ;;  %482 = vmatpush.msrb.mxu3 %v256_v29  ;;  %v184_v62 = vld [vmem:[#allocation4 + $0x350] sm:$0xff]  ;;  %v133_v3 = vld [vmem:[#allocation4 + $0x1b8] sm:$0xff]  ;;  %v130_v8 = vld [vmem:[#allocation4 + $0x1a0] sm:$0xff] }
  0x3a   :  { %460 = vmatpush.msrb.mxu2 %v205_v28  ;;  %415 = vmatpush.msrb.mxu0 %v106_v31  ;;  %v181_v4 = vld [vmem:[#allocation4 + $0x338] sm:$0xff]  ;;  %v232_v5 = vld [vmem:[#allocation4 + $0x4d0] sm:$0xff]  ;;  %v178_v9 = vld [vmem:[#allocation4 + $0x320] sm:$0xff] }
  0x3b   :  { %438 = vmatpush.msrb.mxu1 %v154_v32  ;;  %483 = vmatpush.msrb.mxu3 %v253_v34  ;;  %v1965_v6 = vld.sshfl [vmem:[#allocation1 + $0x28] sm:$0xff pattern:$0x73625140]  ;;  %v229_v10 = vld [vmem:[#allocation4 + $0x4b8] sm:$0xff]  ;;  %v226_v14 = vld [vmem:[#allocation4 + $0x4a0] sm:$0xff] }
  0x3c   :  { %461 = vmatpush.msrb.mxu2 %v202_v33  ;;  %416 = vmatpush.msrb.mxu0 %v103_v35  ;;  %v79_v11 = vld [vmem:[#allocation4 + $0x8] sm:$0xff]  ;;  %v125_v15 = vld [vmem:[#allocation4 + $0x178] sm:$0xff]  ;;  %v122_v19 = vld [vmem:[#allocation4 + $0x160] sm:$0xff] }
  0x3d   :  { %439 = vmatpush.msrb.mxu1 %v151_v36  ;;  %484 = vmatpush.msrb.mxu3 %v250_v38  ;;  %v127_v12 = vld [vmem:[#allocation4 + $0x188] sm:$0xff]  ;;  %v173_v16 = vld [vmem:[#allocation4 + $0x2f8] sm:$0xff]  ;;  %v170_v20 = vld [vmem:[#allocation4 + $0x2e0] sm:$0xff] }
  0x3e   :  { %462 = vmatpush.msrb.mxu2 %v199_v37  ;;  %417 = vmatpush.msrb.mxu0 %v100_v40  ;;  %v175_v13 = vld [vmem:[#allocation4 + $0x308] sm:$0xff]  ;;  %v221_v17 = vld [vmem:[#allocation4 + $0x478] sm:$0xff]  ;;  %v218_v21 = vld [vmem:[#allocation4 + $0x460] sm:$0xff] }
  0x3f   :  { %379 = vmatmul.f32.vlgmr.msra.gmra.mxu2 %v1945_v39  ;;  %440 = vmatpush.msrb.mxu1 %v148_v41  ;;  %v223_v18 = vld [vmem:[#allocation4 + $0x488] sm:$0xff]  ;;  %v269_v22 = vld [vmem:[#allocation4 + $0x5f8] sm:$0xff]  ;;  %v266_v26 = vld [vmem:[#allocation4 + $0x5e0] sm:$0xff] }
  0x40   :  { %463 = vmatpush.msrb.mxu2 %v196_v42  ;;  %485 = vmatpush.msrb.mxu3 %v247_v43  ;;  %v119_v23 = vld [vmem:[#allocation4 + $0x148] sm:$0xff]  ;;  %v116_v27 = vld [vmem:[#allocation4 + $0x130] sm:$0xff]  ;;  %v113_v31 = vld [vmem:[#allocation4 + $0x118] sm:$0xff] }
  0x41   :  { %333 = vmatmul.f32.vlgmr.msra.gmra.mxu0 %v1947_v44  ;;  %402 = vmatmul.f32.vlgmr.msra.gmra.mxu3 %v1950_v45  ;;  %v167_v24 = vld [vmem:[#allocation4 + $0x2c8] sm:$0xff]  ;;  %v164_v28 = vld [vmem:[#allocation4 + $0x2b0] sm:$0xff]  ;;  %v161_v32 = vld [vmem:[#allocation4 + $0x298] sm:$0xff] }
  0x42   :  { %418 = vmatpush.msrb.mxu0 %v97_v46  ;;  %441 = vmatpush.msrb.mxu1 %v145_v47  ;;  %v215_v25 = vld [vmem:[#allocation4 + $0x448] sm:$0xff]  ;;  %v212_v29 = vld [vmem:[#allocation4 + $0x430] sm:$0xff]  ;;  %v209_v33 = vld [vmem:[#allocation4 + $0x418] sm:$0xff] }
  0x43   :  { %464 = vmatpush.msrb.mxu2 %v193_v48  ;;  %486 = vmatpush.msrb.mxu3 %v244_v49  ;;  %v263_v30 = vld [vmem:[#allocation4 + $0x5c8] sm:$0xff]  ;;  %v260_v34 = vld [vmem:[#allocation4 + $0x5b0] sm:$0xff]  ;;  %v110_v35 = vld [vmem:[#allocation4 + $0x100] sm:$0xff] }
  0x44   :  { %356 = vmatmul.f32.vlgmr.msra.gmra.mxu1 %v1953_v50  ;;  %419 = vmatpush.msrb.mxu0 %v94_v51  ;;  %v158_v36 = vld [vmem:[#allocation4 + $0x280] sm:$0xff]  ;;  %v257_v38 = vld [vmem:[#allocation4 + $0x598] sm:$0xff]  ;;  %v107_v40 = vld [vmem:[#allocation4 + $0xe8] sm:$0xff] }
  0x45   :  { %442 = vmatpush.msrb.mxu1 %v142_v52  ;;  %465 = vmatpush.msrb.mxu2 %v190_v53  ;;  %v206_v37 = vld [vmem:[#allocation4 + $0x400] sm:$0xff]  ;;  %v155_v41 = vld [vmem:[#allocation4 + $0x268] sm:$0xff]  ;;  %v104_v46 = vld [vmem:[#allocation4 + $0xd0] sm:$0xff] }
  0x46   :  { %487 = vmatpush.msrb.mxu3 %v241_v54  ;;  %420 = vmatpush.msrb.mxu0 %v91_v55  ;;  %v203_v42 = vld [vmem:[#allocation4 + $0x3e8] sm:$0xff]  ;;  %v254_v43 = vld [vmem:[#allocation4 + $0x580] sm:$0xff]  ;;  %v152_v47 = vld [vmem:[#allocation4 + $0x250] sm:$0xff] }
  0x47   :  { %443 = vmatpush.msrb.mxu1 %v139_v56  ;;  %466 = vmatpush.msrb.mxu2 %v187_v57  ;;  %v200_v48 = vld [vmem:[#allocation4 + $0x3d0] sm:$0xff]  ;;  %v251_v49 = vld [vmem:[#allocation4 + $0x568] sm:$0xff]  ;;  %v101_v51 = vld [vmem:[#allocation4 + $0xb8] sm:$0xff] }
  0x48   :  { %488 = vmatpush.msrb.mxu3 %v238_v58  ;;  %382 = vmatmul.f32.gmra.mxu2 %v1957_v59  ;;  %v149_v52 = vld [vmem:[#allocation4 + $0x238] sm:$0xff]  ;;  %v248_v54 = vld [vmem:[#allocation4 + $0x550] sm:$0xff]  ;;  %v98_v55 = vld [vmem:[#allocation4 + $0xa0] sm:$0xff] }
  0x49   :  { %421 = vmatpush.msrb.mxu0 %v88_v60  ;;  %444 = vmatpush.msrb.mxu1 %v136_v61  ;;  %v197_v53 = vld [vmem:[#allocation4 + $0x3b8] sm:$0xff]  ;;  %v146_v56 = vld [vmem:[#allocation4 + $0x220] sm:$0xff]  ;;  %v95_v60 = vld [vmem:[#allocation4 + $0x88] sm:$0xff] }
  0x4a   :  { %467 = vmatpush.msrb.mxu2 %v184_v62  ;;  %489 = vmatpush.msrb.mxu3 %v235_v63  ;;  %v194_v57 = vld [vmem:[#allocation4 + $0x3a0] sm:$0xff]  ;;  %v245_v58 = vld [vmem:[#allocation4 + $0x538] sm:$0xff]  ;;  %v143_v61 = vld [vmem:[#allocation4 + $0x208] sm:$0xff] }
  0x4b   :  { %336 = vmatmul.f32.gmra.mxu0 %v1959_v0  ;;  %405 = vmatmul.f32.gmra.mxu3 %v1962_v1  ;;  %v191_v62 = vld [vmem:[#allocation4 + $0x388] sm:$0xff]  ;;  %v242_v63 = vld [vmem:[#allocation4 + $0x520] sm:$0xff] }
  0x4c   :  { %422 = vmatpush.msrb.mxu0 %v85_v2  ;;  %445 = vmatpush.msrb.mxu1 %v133_v3  ;;  %v92_v2 = vld [vmem:[#allocation4 + $0x70] sm:$0xff] }
  0x4d   :  { %468 = vmatpush.msrb.mxu2 %v181_v4  ;;  %490 = vmatpush.msrb.mxu3 %v232_v5  ;;  %v140_v3 = vld [vmem:[#allocation4 + $0x1f0] sm:$0xff]  ;;  %v239_v5 = vld [vmem:[#allocation4 + $0x508] sm:$0xff] }
  0x4e   :  { %359 = vmatmul.f32.gmra.mxu1 %v1965_v6  ;;  %423 = vmatpush.msrb.mxu0 %v82_v7  ;;  %v188_v4 = vld [vmem:[#allocation4 + $0x370] sm:$0xff]  ;;  %v89_v7 = vld [vmem:[#allocation4 + $0x58] sm:$0xff] }
  0x4f   :  { %446 = vmatpush.msrb.mxu1 %v130_v8  ;;  %469 = vmatpush.msrb.mxu2 %v178_v9  ;;  %v137_v8 = vld [vmem:[#allocation4 + $0x1d8] sm:$0xff] }
  0x50   :  { %491 = vmatpush.msrb.mxu3 %v229_v10  ;;  %424 = vmatpush.msrb.mxu0 %v79_v11  ;;  %v185_v9 = vld [vmem:[#allocation4 + $0x358] sm:$0xff]  ;;  %v236_v10 = vld [vmem:[#allocation4 + $0x4f0] sm:$0xff]  ;;  %v86_v11 = vld [vmem:[#allocation4 + $0x40] sm:$0xff] }
  0x51   :  { %447 = vmatpush.msrb.mxu1 %v127_v12  ;;  %470 = vmatpush.msrb.mxu2 %v175_v13  ;;  %v134_v12 = vld [vmem:[#allocation4 + $0x1c0] sm:$0xff] }
  0x52   :  { %492 = vmatpush.msrb.mxu3 %v226_v14  ;;  %471 = vmatmul.f32.vlgmr.msrb.gmra.mxu2 %v1945_v39  ;;  %v182_v13 = vld [vmem:[#allocation4 + $0x340] sm:$0xff]  ;;  %v233_v14 = vld [vmem:[#allocation4 + $0x4d8] sm:$0xff] }
  0x53   :  { %501 = vmatpush.msra.mxu0 %v125_v15  ;;  %524 = vmatpush.msra.mxu1 %v173_v16  ;;  %v1881_v15 = vmov 0.0   ;;  %v83_v16 = vld [vmem:[#allocation4 + $0x28] sm:$0xff] }
  0x54   :  { %547 = vmatpush.msra.mxu2 %v221_v17  ;;  %493 = vmatpush.msrb.mxu3 %v223_v18  ;;  %69 = vst [vmem:[#allocation2] sm:$0x3] %v1881_v15  ;;  %v131_v17 = vld [vmem:[#allocation4 + $0x1a8] sm:$0xff] }
  0x55   :  { %425 = vmatmul.f32.vlgmr.msrb.gmra.mxu0 %v1947_v44  ;;  %494 = vmatmul.f32.vlgmr.msrb.gmra.mxu3 %v1950_v45  ;;  %v179_v18 = vld [vmem:[#allocation4 + $0x328] sm:$0xff] }
  0x56   :  { %502 = vmatpush.msra.mxu0 %v122_v19  ;;  %525 = vmatpush.msra.mxu1 %v170_v20  ;;  %v230_v19 = vld [vmem:[#allocation4 + $0x4c0] sm:$0xff]  ;;  %v80_v20 = vld [vmem:[#allocation4 + $0x10] sm:$0xff] }
  0x57   :  { %548 = vmatpush.msra.mxu2 %v218_v21  ;;  %570 = vmatpush.msra.mxu3 %v269_v22  ;;  %v128_v21 = vld [vmem:[#allocation4 + $0x190] sm:$0xff] }
  0x58   :  { %448 = vmatmul.f32.vlgmr.msrb.gmra.mxu1 %v1953_v50  ;;  %503 = vmatpush.msra.mxu0 %v119_v23  ;;  %v176_v22 = vld [vmem:[#allocation4 + $0x310] sm:$0xff]  ;;  %v227_v23 = vld [vmem:[#allocation4 + $0x4a8] sm:$0xff] }
  0x59   :  { %526 = vmatpush.msra.mxu1 %v167_v24  ;;  %549 = vmatpush.msra.mxu2 %v215_v25  ;;  %v1977_v24 = vld [vmem:[#allocation6 + $0x168] sm:$0xff]  ;;  %v1979_v25 = vld [vmem:[#allocation6 + $0x170] sm:$0xff] }
  0x5a   :  { %571 = vmatpush.msra.mxu3 %v266_v26  ;;  %504 = vmatpush.msra.mxu0 %v116_v27  ;;  %v224_v26 = vld [vmem:[#allocation4 + $0x490] sm:$0xff] }
  0x5b   :  { %527 = vmatpush.msra.mxu1 %v164_v28  ;;  %550 = vmatpush.msra.mxu2 %v212_v29  ;;  %v1983_v27 = vld [vmem:[#allocation6 + $0x150] sm:$0xff]  ;;  %v1985_v28 = vld [vmem:[#allocation6 + $0x158] sm:$0xff] }
  0x5c   :  { %572 = vmatpush.msra.mxu3 %v263_v30  ;;  %505 = vmatpush.msra.mxu0 %v113_v31  ;;  %v1988_v29 = vld [vmem:[#allocation6 + $0x178] sm:$0xff]  ;;  %v1994_v31 = vld [vmem:[#allocation6 + $0x140] sm:$0xff] }
  0x5d   :  { %528 = vmatpush.msra.mxu1 %v161_v32  ;;  %551 = vmatpush.msra.mxu2 %v209_v33  ;;  %v1992_v30 = vld [vmem:[#allocation6 + $0x138] sm:$0xff]  ;;  %v2001_v32 = vld [vmem:[#allocation6 + $0x120] sm:$0xff]  ;;  %v2003_v33 = vld [vmem:[#allocation6 + $0x128] sm:$0xff] }
  0x5e   :  { %573 = vmatpush.msra.mxu3 %v260_v34  ;;  %506 = vmatpush.msra.mxu0 %v110_v35  ;;  %v2019_v34 = vld [vmem:[#allocation6 + $0xf8] sm:$0xff]  ;;  %v2024_v35 = vld [vmem:[#allocation6 + $0x148] sm:$0xff] }
  0x5f   :  { %529 = vmatpush.msra.mxu1 %v158_v36  ;;  %552 = vmatpush.msra.mxu2 %v206_v37  ;;  %v2028_v36 = vld [vmem:[#allocation6 + $0xd8] sm:$0xff]  ;;  %v2030_v37 = vld [vmem:[#allocation6 + $0xe0] sm:$0xff] }
  0x60   :  { %574 = vmatpush.msra.mxu3 %v257_v38  ;;  %507 = vmatpush.msra.mxu0 %v107_v40  ;;  %v2037_v38 = vld [vmem:[#allocation6 + $0xc0] sm:$0xff]  ;;  %v2039_v40 = vld [vmem:[#allocation6 + $0xc8] sm:$0xff] }
  0x61   :  { %530 = vmatpush.msra.mxu1 %v155_v41  ;;  %553 = vmatpush.msra.mxu2 %v203_v42  ;;  %v2048_v41 = vld [vmem:[#allocation6 + $0xb0] sm:$0xff] }
  0x62   :  { %575 = vmatpush.msra.mxu3 %v254_v43  ;;  %508 = vmatpush.msra.mxu0 %v104_v46  ;;  %v2056_v42 = vld [vmem:[#allocation6 + $0x90] sm:$0xff]  ;;  %v2058_v43 = vld [vmem:[#allocation6 + $0x98] sm:$0xff]  ;;  %v2064_v46 = vld [vmem:[#allocation6 + $0xe8] sm:$0xff] }
  0x63   :  { %531 = vmatpush.msra.mxu1 %v152_v47  ;;  %554 = vmatpush.msra.mxu2 %v200_v48  ;;  %2720 = vst [vmem:[#allocation11_spill] sm:$0xff] %v2056_v42  ;;  %v2066_v47 = vld [vmem:[#allocation6 + $0x78] sm:$0xff]  ;;  %v2068_v48 = vld [vmem:[#allocation6 + $0x80] sm:$0xff] }
  0x64   :  { %576 = vmatpush.msra.mxu3 %v251_v49  ;;  %474 = vmatmul.f32.gmra.mxu2 %v1957_v59  ;;  %2721 = vst [vmem:[#allocation12_spill] sm:$0xff] %v2058_v43  ;;  %v2074_v49 = vld [vmem:[#allocation6 + $0xd0] sm:$0xff] }
  0x65   :  { %509 = vmatpush.msra.mxu0 %v101_v51  ;;  %532 = vmatpush.msra.mxu1 %v149_v52  ;;  %2722 = vst [vmem:[#allocation13_spill] sm:$0xff] %v2066_v47  ;;  %v2076_v51 = vld [vmem:[#allocation6 + $0x60] sm:$0xff]  ;;  %v2078_v52 = vld [vmem:[#allocation6 + $0x68] sm:$0xff] }
  0x66   :  { %555 = vmatpush.msra.mxu2 %v197_v53  ;;  %577 = vmatpush.msra.mxu3 %v248_v54  ;;  %2723 = vst [vmem:[#allocation14_spill] sm:$0xff] %v2068_v48  ;;  %v2084_v53 = vld [vmem:[#allocation6 + $0xb8] sm:$0xff]  ;;  %v2086_v54 = vld [vmem:[#allocation6 + $0x48] sm:$0xff] }
  0x67   :  { %428 = vmatmul.f32.gmra.mxu0 %v1959_v0  ;;  %497 = vmatmul.f32.gmra.mxu3 %v1962_v1  ;;  %2724 = vst [vmem:[#allocation15_spill] sm:$0xff] %v2076_v51 }
  0x68   :  { %510 = vmatpush.msra.mxu0 %v98_v55  ;;  %533 = vmatpush.msra.mxu1 %v146_v56  ;;  %2725 = vst [vmem:[#allocation16_spill] sm:$0xff] %v2078_v52  ;;  %v2088_v55 = vld [vmem:[#allocation6 + $0x50] sm:$0xff]  ;;  %v2094_v56 = vld [vmem:[#allocation6 + $0xa0] sm:$0xff] }
  0x69   :  { %556 = vmatpush.msra.mxu2 %v194_v57  ;;  %578 = vmatpush.msra.mxu3 %v245_v58  ;;  %2726 = vst [vmem:[#allocation17_spill] sm:$0xff] %v2086_v54  ;;  %v2096_v57 = vld [vmem:[#allocation6 + $0x30] sm:$0xff]  ;;  %v2098_v58 = vld [vmem:[#allocation6 + $0x38] sm:$0xff] }
  0x6a   :  { %451 = vmatmul.f32.gmra.mxu1 %v1965_v6  ;;  %511 = vmatpush.msra.mxu0 %v95_v60  ;;  %2727 = vst [vmem:[#allocation18_spill] sm:$0xff] %v2088_v55  ;;  %v2104_v60 = vld [vmem:[#allocation6 + $0x88] sm:$0xff] }
  0x6b   :  { %534 = vmatpush.msra.mxu1 %v143_v61  ;;  %557 = vmatpush.msra.mxu2 %v191_v62  ;;  %2728 = vst [vmem:[#allocation19_spill] sm:$0xff] %v2094_v56  ;;  %v2106_v61 = vld [vmem:[#allocation6 + $0x18] sm:$0xff]  ;;  %v2108_v62 = vld [vmem:[#allocation6 + $0x20] sm:$0xff] }
  0x6c   :  { %579 = vmatpush.msra.mxu3 %v242_v63  ;;  %512 = vmatpush.msra.mxu0 %v92_v2  ;;  %2729 = vst [vmem:[#allocation20_spill] sm:$0xff] %v2096_v57  ;;  %v2114_v63 = vld [vmem:[#allocation6 + $0x70] sm:$0xff]  ;;  %v2116_v2 = vld [vmem:[#allocation6] sm:$0xff] }
  0x6d   :  { %535 = vmatpush.msra.mxu1 %v140_v3  ;;  %558 = vmatpush.msra.mxu2 %v188_v4  ;;  %2730 = vst [vmem:[#allocation21_spill] sm:$0xff] %v2098_v58  ;;  %v2118_v3 = vld [vmem:[#allocation6 + $0x8] sm:$0xff] }
  0x6e   :  { %580 = vmatpush.msra.mxu3 %v239_v5  ;;  %513 = vmatpush.msra.mxu0 %v89_v7  ;;  %2731 = vst [vmem:[#allocation22_spill] sm:$0xff] %v2104_v60  ;;  %v2124_v4 = vld [vmem:[#allocation2] sm:$0x3]  ;;  %v2127_v5 = vld [vmem:[#allocation6 + $0x58] sm:$0xff]  ;;  %v2134_v7 = vld [vmem:[#allocation6 + $0x40] sm:$0xff] }
  0x6f   :  { %536 = vmatpush.msra.mxu1 %v137_v8  ;;  %559 = vmatpush.msra.mxu2 %v185_v9  ;;  %2732 = vst [vmem:[#allocation23_spill] sm:$0xff] %v2106_v61  ;;  %v2138_v8 = vld [vmem:[#allocation6 + $0x28] sm:$0xff]  ;;  %v2144_v9 = vld [vmem:[#allocation6 + $0x10] sm:$0xff] }
  0x70   :  { %581 = vmatpush.msra.mxu3 %v236_v10  ;;  %514 = vmatpush.msra.mxu0 %v86_v11  ;;  %2733 = vst [vmem:[#allocation24_spill] sm:$0xff] %v2108_v62 }
  0x71   :  { %537 = vmatpush.msra.mxu1 %v134_v12  ;;  %560 = vmatpush.msra.mxu2 %v182_v13  ;;  %2734 = vst [vmem:[#allocation25_spill] sm:$0xff] %v2114_v63 }
  0x72   :  { %582 = vmatpush.msra.mxu3 %v233_v14  ;;  %515 = vmatpush.msra.mxu0 %v83_v16  ;;  %2735 = vst [vmem:[#allocation26_spill] sm:$0xff] %v2116_v2 }
  0x73   :  { %538 = vmatpush.msra.mxu1 %v131_v17  ;;  %561 = vmatpush.msra.mxu2 %v179_v18  ;;  %2736 = vst [vmem:[#allocation27_spill] sm:$0xff] %v2118_v3  ;;  %v270_v18 = vld [vmem:[%s2662_s2] sm:$0x7] }
  0x74   :  { %583 = vmatpush.msra.mxu3 %v230_v19  ;;  %516 = vmatpush.msra.mxu0 %v80_v20  ;;  %2737 = vst [vmem:[#allocation28_spill] sm:$0xff] %v2127_v5  ;;  %v273_v20 = vperm.slane %v270_v18, 1 }
  0x75   :  { %539 = vmatpush.msra.mxu1 %v128_v21  ;;  %562 = vmatpush.msra.mxu2 %v176_v22  ;;  %2738 = vst [vmem:[#allocation29_spill] sm:$0xff] %v2134_v7 }
  0x76   :  { %584 = vmatpush.msra.mxu3 %v227_v23  ;;  %563 = vmatmul.f32.vlgmr.msra.gmra.mxu2 %v1945_v39  ;;  %v1998_v39 = vld [vmem:[#allocation6 + $0x160] sm:$0xff]  ;;  %2739 = vst [vmem:[#allocation30_spill] sm:$0xff] %v2138_v8 }
  0x77   :  { %700 = vmatpush.msrb.mxu0 %v1977_v24  ;;  %720 = vmatpush.msrb.mxu1 %v1979_v25  ;;  %2740 = vst [vmem:[#allocation31_spill] sm:$0xff] %v2144_v9 }
  0x78   :  { %585 = vmatpush.msra.mxu3 %v224_v26  ;;  %517 = vmatmul.f32.vlgmr.msra.gmra.mxu0 %v1947_v44  ;;  %v2008_v44 = vld [vmem:[#allocation6 + $0x108] sm:$0xff] }
  0x79   :  { %586 = vmatmul.f32.vlgmr.msra.gmra.mxu3 %v1950_v45  ;;  %701 = vmatpush.msrb.mxu0 %v1983_v27  ;;  %v2010_v45 = vld [vmem:[#allocation6 + $0x110] sm:$0xff] }
  0x7a   :  { %721 = vmatpush.msrb.mxu1 %v1985_v28  ;;  %740 = vmatpush.msrb.mxu2 %v1988_v29 }
  0x7b   :  { %540 = vmatmul.f32.vlgmr.msra.gmra.mxu1 %v1953_v50  ;;  %702 = vmatpush.msrb.mxu0 %v1992_v30  ;;  %v2017_v50 = vld [vmem:[#allocation6 + $0xf0] sm:$0xff] }
  0x7c   :  { %722 = vmatpush.msrb.mxu1 %v1994_v31  ;;  %741 = vmatpush.msrb.mxu2 %v1998_v39 }
  0x7d   :  { %815 = vmatpush.msrb.mxu3 %v1977_v24  ;;  %703 = vmatpush.msrb.mxu0 %v2001_v32 }
  0x7e   :  { %723 = vmatpush.msrb.mxu1 %v2003_v33  ;;  %566 = vmatmul.f32.gmra.mxu2 %v1957_v59  ;;  %v2034_v59 = vld [vmem:[#allocation6 + $0x130] sm:$0xff] }
  0x7f   :  { %816 = vmatpush.msrb.mxu3 %v1983_v27  ;;  %704 = vmatpush.msrb.mxu0 %v2008_v44 }
  0x80   :  { %724 = vmatpush.msrb.mxu1 %v2010_v45  ;;  %520 = vmatmul.f32.gmra.mxu0 %v1959_v0  ;;  %v2044_v0 = vld [vmem:[#allocation6 + $0x118] sm:$0xff] }
  0x81   :  { %589 = vmatmul.f32.gmra.mxu3 %v1962_v1  ;;  %705 = vmatpush.msrb.mxu0 %v2017_v50  ;;  %v2046_v1 = vld [vmem:[#allocation6 + $0xa8] sm:$0xff] }
  0x82   :  { %725 = vmatpush.msrb.mxu1 %v2019_v34  ;;  %742 = vmatpush.msrb.mxu2 %v2024_v35 }
  0x83   :  { %543 = vmatmul.f32.gmra.mxu1 %v1965_v6  ;;  %706 = vmatpush.msrb.mxu0 %v2028_v36  ;;  %v2054_v6 = vld [vmem:[#allocation6 + $0x100] sm:$0xff] }
  0x84   :  { %726 = vmatpush.msrb.mxu1 %v2030_v37  ;;  %743 = vmatpush.msrb.mxu2 %v2034_v59 }
  0x85   :  { %817 = vmatpush.msrb.mxu3 %v1992_v30  ;;  %707 = vmatpush.msrb.mxu0 %v2037_v38 }
  0x86   :  { %727 = vmatpush.msrb.mxu1 %v2039_v40  ;;  %744 = vmatpush.msrb.mxu2 %v2044_v0 }
  0x87   :  { %818 = vmatpush.msrb.mxu3 %v2001_v32  ;;  %708 = vmatpush.msrb.mxu0 %v2046_v1 }
  0x88   :  { %728 = vmatpush.msrb.mxu1 %v2048_v41  ;;  %745 = vmatpush.msrb.mxu2 %v2054_v6 }
  0x89   :  { %819 = vmatpush.msrb.mxu3 %v2008_v44  ;;  %709 = vmatpush.msrb.mxu0 %v2056_v42 }
  0x8a   :  { %729 = vmatpush.msrb.mxu1 %v2058_v43  ;;  %746 = vmatpush.msrb.mxu2 %v2064_v46 }
  0x8b   :  { %820 = vmatpush.msrb.mxu3 %v2017_v50  ;;  %710 = vmatpush.msrb.mxu0 %v2066_v47 }
  0x8c   :  { %730 = vmatpush.msrb.mxu1 %v2068_v48  ;;  %747 = vmatpush.msrb.mxu2 %v2074_v49 }
  0x8d   :  { %821 = vmatpush.msrb.mxu3 %v2028_v36  ;;  %711 = vmatpush.msrb.mxu0 %v2076_v51 }
  0x8e   :  { %731 = vmatpush.msrb.mxu1 %v2078_v52  ;;  %748 = vmatpush.msrb.mxu2 %v2084_v53 }
  0x8f   :  { %822 = vmatpush.msrb.mxu3 %v2037_v38  ;;  %712 = vmatpush.msrb.mxu0 %v2086_v54 }
  0x90   :  { %732 = vmatpush.msrb.mxu1 %v2088_v55  ;;  %749 = vmatpush.msrb.mxu2 %v2094_v56 }
  0x91   :  { %823 = vmatpush.msrb.mxu3 %v2046_v1  ;;  %713 = vmatpush.msrb.mxu0 %v2096_v57 }
  0x92   :  { %733 = vmatpush.msrb.mxu1 %v2098_v58  ;;  %750 = vmatpush.msrb.mxu2 %v2104_v60 }
  0x93   :  { %824 = vmatpush.msrb.mxu3 %v2056_v42  ;;  %714 = vmatpush.msrb.mxu0 %v2106_v61 }
  0x94   :  { %734 = vmatpush.msrb.mxu1 %v2108_v62  ;;  %751 = vmatpush.msrb.mxu2 %v2114_v63 }
  0x95   :  { %825 = vmatpush.msrb.mxu3 %v2066_v47  ;;  %715 = vmatpush.msrb.mxu0 %v2116_v2 }
  0x96   :  { %735 = vmatpush.msrb.mxu1 %v2118_v3  ;;  %716 = vmatmul.f32.vlgmr.msrb.gmra.mxu0 %v2124_v4 }
  0x97   :  { %736 = vmatmul.f32.vlgmr.msrb.gmra.mxu1 %v2124_v4  ;;  %752 = vmatpush.msrb.mxu2 %v2127_v5 }
  0x98   :  { %835 = vmatpush.msra.mxu0 %v1979_v25  ;;  %855 = vmatpush.msra.mxu1 %v1988_v29 }
  0x99   :  { %826 = vmatpush.msrb.mxu3 %v2076_v51  ;;  %753 = vmatpush.msrb.mxu2 %v2134_v7 }
  0x9a   :  { %836 = vmatpush.msra.mxu0 %v1985_v28  ;;  %856 = vmatpush.msra.mxu1 %v1998_v39 }
  0x9b   :  { %827 = vmatpush.msrb.mxu3 %v2086_v54  ;;  %754 = vmatpush.msrb.mxu2 %v2138_v8 }
  0x9c   :  { %837 = vmatpush.msra.mxu0 %v1994_v31  ;;  %857 = vmatpush.msra.mxu1 %v2024_v35 }
  0x9d   :  { %828 = vmatpush.msrb.mxu3 %v2096_v57  ;;  %755 = vmatpush.msrb.mxu2 %v2144_v9 }
  0x9e   :  { %838 = vmatpush.msra.mxu0 %v2003_v33  ;;  %756 = vmatmul.f32.vlgmr.msrb.gmra.mxu2 %v2124_v4 }
  0x9f   :  { %858 = vmatpush.msra.mxu1 %v2034_v59  ;;  %829 = vmatpush.msrb.mxu3 %v2106_v61 }
  0xa0   :  { %839 = vmatpush.msra.mxu0 %v2010_v45  ;;  %932 = vmatpush.msra.mxu2 %v1977_v24 }
  0xa1   :  { %859 = vmatpush.msra.mxu1 %v2044_v0  ;;  %830 = vmatpush.msrb.mxu3 %v2116_v2 }
  0xa2   :  { %840 = vmatpush.msra.mxu0 %v2019_v34  ;;  %933 = vmatpush.msra.mxu2 %v1983_v27 }
  0xa3   :  { %860 = vmatpush.msra.mxu1 %v2054_v6  ;;  %952 = vmatpush.msra.mxu3 %v1979_v25 }
  0xa4   :  { %841 = vmatpush.msra.mxu0 %v2030_v37  ;;  %934 = vmatpush.msra.mxu2 %v1992_v30 }
  0xa5   :  { %861 = vmatpush.msra.mxu1 %v2064_v46  ;;  %953 = vmatpush.msra.mxu3 %v1985_v28 }
  0xa6   :  { %842 = vmatpush.msra.mxu0 %v2039_v40  ;;  %935 = vmatpush.msra.mxu2 %v2001_v32 }
  0xa7   :  { %862 = vmatpush.msra.mxu1 %v2074_v49  ;;  %954 = vmatpush.msra.mxu3 %v1994_v31 }
  0xa8   :  { %843 = vmatpush.msra.mxu0 %v2048_v41  ;;  %936 = vmatpush.msra.mxu2 %v2008_v44 }
  0xa9   :  { %863 = vmatpush.msra.mxu1 %v2084_v53  ;;  %955 = vmatpush.msra.mxu3 %v2003_v33 }
  0xaa   :  { %844 = vmatpush.msra.mxu0 %v2058_v43  ;;  %937 = vmatpush.msra.mxu2 %v2017_v50 }
  0xab   :  { %864 = vmatpush.msra.mxu1 %v2094_v56  ;;  %956 = vmatpush.msra.mxu3 %v2010_v45 }
  0xac   :  { %845 = vmatpush.msra.mxu0 %v2068_v48  ;;  %938 = vmatpush.msra.mxu2 %v2028_v36 }
  0xad   :  { %865 = vmatpush.msra.mxu1 %v2104_v60  ;;  %957 = vmatpush.msra.mxu3 %v2019_v34 }
  0xae   :  { %846 = vmatpush.msra.mxu0 %v2078_v52  ;;  %939 = vmatpush.msra.mxu2 %v2037_v38 }
  0xaf   :  { %866 = vmatpush.msra.mxu1 %v2114_v63  ;;  %958 = vmatpush.msra.mxu3 %v2030_v37 }
  0xb0   :  { %847 = vmatpush.msra.mxu0 %v2088_v55  ;;  %940 = vmatpush.msra.mxu2 %v2046_v1 }
  0xb1   :  { %867 = vmatpush.msra.mxu1 %v2127_v5  ;;  %959 = vmatpush.msra.mxu3 %v2039_v40 }
  0xb2   :  { %848 = vmatpush.msra.mxu0 %v2098_v58  ;;  %941 = vmatpush.msra.mxu2 %v2056_v42 }
  0xb3   :  { %868 = vmatpush.msra.mxu1 %v2134_v7  ;;  %960 = vmatpush.msra.mxu3 %v2048_v41 }
  0xb4   :  { %849 = vmatpush.msra.mxu0 %v2108_v62  ;;  %942 = vmatpush.msra.mxu2 %v2066_v47 }
  0xb5   :  { %869 = vmatpush.msra.mxu1 %v2138_v8  ;;  %961 = vmatpush.msra.mxu3 %v2058_v43 }
  0xb6   :  { %850 = vmatpush.msra.mxu0 %v2118_v3  ;;  %943 = vmatpush.msra.mxu2 %v2076_v51 }
  0xb7   :  { %870 = vmatpush.msra.mxu1 %v2144_v9  ;;  %962 = vmatpush.msra.mxu3 %v2068_v48 }
  0xb8   :  { %972 = vmatpush.msrb.mxu0 %v1988_v29  ;;  %944 = vmatpush.msra.mxu2 %v2086_v54 }
  0xb9   :  { %1049 = vmatpush.msrb.mxu1 %v1977_v24  ;;  %963 = vmatpush.msra.mxu3 %v2078_v52 }
  0xba   :  { %973 = vmatpush.msrb.mxu0 %v1998_v39  ;;  %945 = vmatpush.msra.mxu2 %v2096_v57 }
  0xbb   :  { %1050 = vmatpush.msrb.mxu1 %v1983_v27  ;;  %964 = vmatpush.msra.mxu3 %v2088_v55 }
  0xbc   :  { %974 = vmatpush.msrb.mxu0 %v2024_v35  ;;  %946 = vmatpush.msra.mxu2 %v2106_v61 }
  0xbd   :  { %1051 = vmatpush.msrb.mxu1 %v1992_v30  ;;  %965 = vmatpush.msra.mxu3 %v2098_v58 }
  0xbe   :  { %975 = vmatpush.msrb.mxu0 %v2034_v59  ;;  %947 = vmatpush.msra.mxu2 %v2116_v2  ;;  %v334_v10 = vpop.f32.mrf.mxu0 }
  0xbf   :  { %1052 = vmatpush.msrb.mxu1 %v2001_v32  ;;  %966 = vmatpush.msra.mxu3 %v2108_v62 }
  0xc0   :  { %976 = vmatpush.msrb.mxu0 %v2044_v0  ;;  %1069 = vmatpush.msrb.mxu2 %v1979_v25 }
  0xc1   :  { %967 = vmatpush.msra.mxu3 %v2118_v3  ;;  %1053 = vmatpush.msrb.mxu1 %v2008_v44  ;;  %v357_v11 = vpop.f32.mrf.mxu1 }
  0xc2   :  { %977 = vmatpush.msrb.mxu0 %v2054_v6  ;;  %1070 = vmatpush.msrb.mxu2 %v1985_v28  ;;  %v380_v12 = vpop.f32.mrf.mxu2 }
  0xc3   :  { %1054 = vmatpush.msrb.mxu1 %v2017_v50 }
  0xc4   :  { %978 = vmatpush.msrb.mxu0 %v2064_v46  ;;  %1071 = vmatpush.msrb.mxu2 %v1994_v31  ;;  %v403_v13 = vpop.f32.mrf.mxu3 }
  0xc5   :  { %1055 = vmatpush.msrb.mxu1 %v2028_v36 }
  0xc6   :  { %979 = vmatpush.msrb.mxu0 %v2074_v49  ;;  %1072 = vmatpush.msrb.mxu2 %v2003_v33 }
  0xc7   :  { %1056 = vmatpush.msrb.mxu1 %v2037_v38 }
  0xc8   :  { %980 = vmatpush.msrb.mxu0 %v2084_v53  ;;  %1073 = vmatpush.msrb.mxu2 %v2010_v45  ;;  %v337_v14 = vpop.f32.mrf.mxu0 }
  0xc9   :  { %1057 = vmatpush.msrb.mxu1 %v2046_v1 }
  0xca   :  { %981 = vmatpush.msrb.mxu0 %v2094_v56  ;;  %1074 = vmatpush.msrb.mxu2 %v2019_v34 }
  0xcb   :  { %1058 = vmatpush.msrb.mxu1 %v2056_v42  ;;  %v360_v15 = vpop.f32.mrf.mxu1  ;;  %v383_v16 = vpop.f32.mrf.mxu2 }
  0xcc   :  { %982 = vmatpush.msrb.mxu0 %v2104_v60  ;;  %1075 = vmatpush.msrb.mxu2 %v2030_v37 }
  0xcd   :  { %1059 = vmatpush.msrb.mxu1 %v2066_v47 }
  0xce   :  { %983 = vmatpush.msrb.mxu0 %v2114_v63  ;;  %1076 = vmatpush.msrb.mxu2 %v2039_v40  ;;  %v2262_v17 = vpop.f32.mrf.mxu3 }
  0xcf   :  { %1060 = vmatpush.msrb.mxu1 %v2076_v51 }
  0xd0   :  { %984 = vmatpush.msrb.mxu0 %v2127_v5  ;;  %1077 = vmatpush.msrb.mxu2 %v2048_v41 }
  0xd1   :  { %1061 = vmatpush.msrb.mxu1 %v2086_v54 }
  0xd2   :  { %985 = vmatpush.msrb.mxu0 %v2134_v7  ;;  %1078 = vmatpush.msrb.mxu2 %v2058_v43  ;;  %v426_v19 = vpop.f32.mrf.mxu0 }
  0xd3   :  { %1062 = vmatpush.msrb.mxu1 %v2096_v57  ;;  %v427_v23 = vadd.f32 %v426_v19, %v273_v20  ;;  %v274_v57 = vperm.slane %v270_v18, 2 }
  0xd4   :  { %986 = vmatpush.msrb.mxu0 %v2138_v8  ;;  %1079 = vmatpush.msrb.mxu2 %v2068_v48 }
  0xd5   :  { %1063 = vmatpush.msrb.mxu1 %v2106_v61  ;;  %v449_v21 = vpop.f32.mrf.mxu1  ;;  %v472_v22 = vpop.f32.mrf.mxu2 }
  0xd6   :  { %987 = vmatpush.msrb.mxu0 %v2144_v9  ;;  %1080 = vmatpush.msrb.mxu2 %v2078_v52  ;;  %v450_v61 = vadd.f32 %v449_v21, %v427_v23 }
  0xd7   :  { %1064 = vmatpush.msrb.mxu1 %v2116_v2  ;;  %v272_v2 = vperm.slane %v270_v18, 0 }
  0xd8   :  { %1081 = vmatpush.msrb.mxu2 %v2088_v55  ;;  %v495_v26 = vpop.f32.mrf.mxu3 }
  0xd9   :  { %v335_v8 = vadd.f32 %v334_v10, %v272_v2  ;;  %v338_v52 = vadd.f32 %v337_v14, %v272_v2 }
  0xda   :  { %1082 = vmatpush.msrb.mxu2 %v2098_v58 }
  0xdb   :  { %v358_v54 = vadd.f32 %v357_v11, %v335_v8  ;;  %v361_v42 = vadd.f32 %v360_v15, %v338_v52 }
  0xdc   :  { %1083 = vmatpush.msrb.mxu2 %v2108_v62 }
  0xdd   :  { %v381_v60 = vadd.f32 %v380_v12, %v358_v54 }
  0xde   :  { %1084 = vmatpush.msrb.mxu2 %v2118_v3  ;;  %v473_v3 = vadd.f32 %v472_v22, %v450_v61 }
  0xdf   :  { %v404_v18 = vadd.f32 %v403_v13, %v381_v60 }
  0xe0   :  { %v496_v51 = vadd.f32 %v495_v26, %v473_v3  ;;  %v384_v3 = vadd.f32 %v383_v16, %v361_v42 }
  0xe2   :  { %v599_v56 = vrot.slane %v496_v51, 6 }
  0xe4   :  { %v429_v9 = vpop.f32.mrf.mxu0  ;;  %v608_v52 = vsel %vm607_vm1, %v404_v18, %v599_v56  ;;  %v617_v51 = vsel %vm616_vm3, %v599_v56, %v404_v18 }
  0xe5   :  { %v430_v7 = vadd.f32 %v429_v9, %v273_v20 }
  0xe7   :  { %v452_v62 = vpop.f32.mrf.mxu1  ;;  %v475_v58 = vpop.f32.mrf.mxu2 }
  0xe8   :  { %v453_v48 = vadd.f32 %v452_v62, %v430_v7  ;;  %v604_v62 = vsel %vm603_vm0, %v404_v18, %v599_v56 }
  0xea   :  { %v498_v55 = vpop.f32.mrf.mxu3  ;;  %v476_v10 = vadd.f32 %v475_v58, %v453_v48 }
  0xec   :  { %v499_v48 = vadd.f32 %v498_v55, %v476_v10  ;;  %v407_v55 = vadd.f32 %v2262_v17, %v384_v3 }
  0xf5   :  { %v518_v5 = vpop.f32.mrf.mxu0 }
  0xf6   :  { %v519_v63 = vadd.f32 %v518_v5, %v274_v57 }
  0xf8   :  { %v541_v47 = vpop.f32.mrf.mxu1 }
  0xf9   :  { %v542_v19 = vadd.f32 %v541_v47, %v519_v63  ;;  %v564_v43 = vpop.f32.mrf.mxu2 }
  0xfb   :  { %v565_v21 = vadd.f32 %v564_v43, %v542_v19  ;;  %v613_v43 = vsel %vm612_vm2, %v404_v18, %v599_v56  ;;  %v601_v56 = vrot.slane %v499_v48, 6 }
  0xfc   :  { %v587_v61 = vpop.f32.mrf.mxu3 }
  0xfd   :  { %v588_v8 = vadd.f32 %v587_v61, %v565_v21  ;;  %v521_v2 = vpop.f32.mrf.mxu0  ;;  %v620_v20 = vsel %vm603_vm0, %v407_v55, %v601_v56  ;;  %v622_v22 = vsel %vm607_vm1, %v407_v55, %v601_v56  ;;  %v625_v23 = vsel %vm612_vm2, %v407_v55, %v601_v56 }
  0xfe   :  { %v522_v47 = vadd.f32 %v521_v2, %v274_v57  ;;  %v628_v26 = vsel %vm616_vm3, %v601_v56, %v407_v55 }
  0xff   :  { %v600_v54 = vrot.slane %v588_v8, 4 }
 0x100   :  { %v544_v58 = vpop.f32.mrf.mxu1 }
 0x101   :  { %v606_v60 = vsel %vm605_vm4, %v604_v62, %v600_v54  ;;  %v610_v63 = vsel %vm609_vm5, %v608_v52, %v600_v54  ;;  %v614_v5 = vsel %vm605_vm4, %v600_v54, %v613_v43  ;;  %v618_v42 = vsel %vm609_vm5, %v600_v54, %v617_v51  ;;  %v567_v12 = vpop.f32.mrf.mxu2 }
 0x102   :  { %v611_v7 = vrot.slane %v610_v63, 2  ;;  %v615_v9 = vrot.slane %v614_v5, 4  ;;  %v619_v11 = vrot.slane %v618_v42, 6  ;;  %639 = vst [vmem:[#allocation3] sm:$0x3f] %v606_v60  ;;  %v545_v57 = vadd.f32 %v544_v58, %v522_v47 }
 0x104   :  { %640 = vst [vmem:[#allocation3 + $0x6] sm:$0x3f] %v611_v7  ;;  %v568_v13 = vadd.f32 %v567_v12, %v545_v57  ;;  %v590_v14 = vpop.f32.mrf.mxu3 }
 0x105   :  { %641 = vst [vmem:[#allocation3 + $0xc] sm:$0x3f] %v615_v9 }
 0x106   :  { %642 = vst [vmem:[#allocation3 + $0x12] sm:$0x3f] %v619_v11  ;;  %v591_v15 = vadd.f32 %v590_v14, %v568_v13  ;;  %v2284_v11 = vld [vmem:[#allocation8] ss:$0 sm:$0xff] }
 0x108   :  { %v602_v16 = vrot.slane %v591_v15, 4 }
 0x109   :  { %v760_v2 = vld [vmem:[#allocation3] sm:$0x3f] }
 0x10a   :  { %v621_v19 = vsel %vm605_vm4, %v620_v20, %v602_v16  ;;  %v623_v21 = vsel %vm609_vm5, %v622_v22, %v602_v16  ;;  %v626_v10 = vsel %vm605_vm4, %v602_v16, %v625_v23  ;;  %v629_v17 = vsel %vm609_vm5, %v602_v16, %v628_v26 }
 0x10b   :  { %v624_v61 = vrot.slane %v623_v21, 2  ;;  %v627_v18 = vrot.slane %v626_v10, 4  ;;  %v630_v8 = vrot.slane %v629_v17, 6  ;;  %643 = vst [vmem:[#allocation3 + $0x18] sm:$0x3f] %v621_v19  ;;  %v782_v3 = vrot.slane %v760_v2, 2 }
 0x10c   :  { %v806_v21 = vrot.slane %v760_v2, 4 }
 0x10d   :  { %644 = vst [vmem:[#allocation3 + $0x1e] sm:$0x3f] %v624_v61 }
 0x10e   :  { %645 = vst [vmem:[#allocation3 + $0x24] sm:$0x3f] %v627_v18 }
 0x10f   :  { %646 = vst [vmem:[#allocation3 + $0x2a] sm:$0x3f] %v630_v8 }
 0x113   :  { %v717_v62 = vpop.f32.mrf.mxu0 }
 0x114   :  { %v737_v54 = vpop.f32.mrf.mxu1  ;;  %v761_v47 = vadd.f32 %v760_v2, %v717_v62  ;;  %v2742_v2 = vld [vmem:[#allocation11_spill] sm:$0xff] }
 0x115   :  { %v784_v52 = vadd.f32 %v782_v3, %v737_v54 }
 0x116   :  { %v1641_v43 = vmul.f32 -1.442695, %v761_v47 }
 0x117   :  { %v1642_v51 = vmul.f32 -1.442695, %v784_v52 }
 0x118   :  { %1671 = vpow2.f32 %v1641_v43 }
 0x119   :  { %1673 = vpow2.f32 %v1642_v51 }
 0x11e   :  { %v1672_v48 = vpop.eup %1671 }
 0x11f   :  { %v1674_v58 = vpop.eup %1673  ;;  %v765_v60 = vadd.f32 1.0, %v1672_v48  ;;  %v2743_v48 = vld [vmem:[#allocation12_spill] sm:$0xff] }
 0x120   :  { %v788_v63 = vadd.f32 1.0, %v1674_v58  ;;  %v2744_v58 = vld [vmem:[#allocation22_spill] sm:$0xff] }
 0x121   :  { %1675 = vrcp.f32 %v765_v60  ;;  %v757_v13 = vpop.f32.mrf.mxu2  ;;  %v777_v14 = vand.u32 2147483648, %v765_v60  ;;  %v775_v56 = vand.u32 2147483647, %v765_v60  ;;  %vm771_vm7 = vweird.f32 %v765_v60 }
 0x122   :  { %1677 = vrcp.f32 %v788_v63  ;;  %v804_v20 = vadd.f32 %v2284_v11, %v757_v13  ;;  %v800_v10 = vand.u32 2147483648, %v788_v63  ;;  %vm794_vm11 = vweird.f32 %v788_v63  ;;  %v2753_v13 = vld [vmem:[#allocation29_spill] sm:$0xff] }
 0x123   :  { %v778_v22 = vor.u32 1.1754944e-38, %v777_v14  ;;  %vm776_vm9 = vcmp.eq.f32.partialorder %v775_v56, 8.507059e+37  ;;  %v798_v61 = vand.u32 2147483647, %v788_v63  ;;  %v2754_v14 = vld [vmem:[#allocation20_spill] sm:$0xff]  ;;  %v2756_v56 = vld [vmem:[#allocation30_spill] sm:$0xff] }
 0x124   :  { %v801_v3 = vor.u32 1.1754944e-38, %v800_v10 }
 0x125   :  { %vm799_vm13 = vcmp.eq.f32.partialorder %v798_v61, 8.507059e+37 }
 0x127   :  { %v1676_v5 = vpop.eup %1675 }
 0x128   :  { %v1678_v42 = vpop.eup %1677  ;;  %v767_v7 = vmul.f32 %v1676_v5, %v765_v60  ;;  %vm772_vm6 = vweird.f32 %v1676_v5  ;;  %v2745_v60 = vld [vmem:[#allocation13_spill] sm:$0xff] }
 0x129   :  { %v790_v9 = vmul.f32 %v1678_v42, %v788_v63  ;;  %vm773_vm8 = vmor %vm771_vm7, %vm772_vm6  ;;  %vm795_vm10 = vweird.f32 %v1678_v42  ;;  %v2746_v63 = vld [vmem:[#allocation14_spill] sm:$0xff] }
 0x12a   :  { %v768_v57 = vsub.f32 1.0, %v767_v7  ;;  %vm796_vm12 = vmor %vm794_vm11, %vm795_vm10  ;;  %v2749_v7 = vld [vmem:[#allocation16_spill] sm:$0xff] }
 0x12b   :  { %v791_v12 = vsub.f32 1.0, %v790_v9  ;;  %v2750_v9 = vld [vmem:[#allocation28_spill] sm:$0xff] }
 0x12c   :  { %v769_v55 = vmul.f32 %v1676_v5, %v768_v57  ;;  %v2751_v57 = vld [vmem:[#allocation17_spill] sm:$0xff] }
 0x12d   :  { %v792_v15 = vmul.f32 %v1678_v42, %v791_v12  ;;  %v2752_v12 = vld [vmem:[#allocation18_spill] sm:$0xff] }
 0x12e   :  { %v770_v16 = vadd.f32 %v1676_v5, %v769_v55  ;;  %v2755_v55 = vld [vmem:[#allocation21_spill] sm:$0xff] }
 0x12f   :  { %v793_v26 = vadd.f32 %v1678_v42, %v792_v15  ;;  %v2757_v15 = vld [vmem:[#allocation23_spill] sm:$0xff] }
 0x130   :  { %v774_v23 = vsel %vm773_vm8, %v1676_v5, %v770_v16  ;;  %v2747_v5 = vld [vmem:[#allocation25_spill] sm:$0xff]  ;;  %v2758_v16 = vld [vmem:[#allocation24_spill] sm:$0xff] }
 0x131   :  { %v779_v19 = vsel %vm776_vm9, %v778_v22, %v774_v23  ;;  %v797_v8 = vsel %vm796_vm12, %v1678_v42, %v793_v26  ;;  %v2748_v42 = vld [vmem:[#allocation15_spill] sm:$0xff]  ;;  %v2760_v22 = vld [vmem:[#allocation26_spill] sm:$0xff] }
 0x132   :  { %v805_v17 = vmul.f32 %v804_v20, %v779_v19  ;;  %v802_v62 = vsel %vm799_vm13, %v801_v3, %v797_v8  ;;  %v2759_v20 = vld [vmem:[#allocation31_spill] sm:$0xff]  ;;  %v876_v26 = vld [vmem:[#allocation3 + $0x6] sm:$0x3f] }
 0x133   :  { %v810_v54 = vsub.f32 1.0, %v802_v62  ;;  %v812_v43 = vmul.f32 %v802_v62, %v2124_v4  ;;  %v2741_v4 = vld [vmem:[#allocation19_spill] sm:$0xff]  ;;  %v898_v19 = vrot.slane %v876_v26, 2 }
 0x134   :  { %v808_v18 = vadd.f32 %v806_v21, %v805_v17  ;;  %v2761_v23 = vld [vmem:[#allocation27_spill] sm:$0xff] }
 0x136   :  { %1679 = vtanh.f32 %v808_v18 }
 0x13c   :  { %v1680_v47 = vpop.eup %1679 }
 0x13d   :  { %v811_v52 = vmul.f32 %v1680_v47, %v810_v54 }
 0x13f   :  { %v2288_v51 = vadd.f32 %v812_v43, %v811_v52 }
 0x141   :  { %814 = vst [vmem:[%s2665_s5] sm:$0x3] %v2288_v51  ;;  %831 = vmatmul.f32.vlgmr.msrb.gmra.mxu3 %v2288_v51  ;;  %851 = vmatmul.f32.vlgmr.msra.gmra.mxu0 %v2288_v51 }
 0x142   :  { %871 = vmatmul.f32.vlgmr.msra.gmra.mxu1 %v2288_v51  ;;  %1089 = vmatpush.msrb.mxu3 %v1988_v29 }
 0x143   :  { %1166 = vmatpush.msra.mxu0 %v1977_v24  ;;  %1186 = vmatpush.msra.mxu1 %v1979_v25 }
 0x144   :  { %1090 = vmatpush.msrb.mxu3 %v1998_v39 }
 0x145   :  { %1167 = vmatpush.msra.mxu0 %v1983_v27  ;;  %1187 = vmatpush.msra.mxu1 %v1985_v28 }
 0x146   :  { %1091 = vmatpush.msrb.mxu3 %v2024_v35 }
 0x147   :  { %1168 = vmatpush.msra.mxu0 %v1992_v30  ;;  %1188 = vmatpush.msra.mxu1 %v1994_v31 }
 0x148   :  { %1092 = vmatpush.msrb.mxu3 %v2034_v59 }
 0x149   :  { %1169 = vmatpush.msra.mxu0 %v2001_v32  ;;  %1189 = vmatpush.msra.mxu1 %v2003_v33 }
 0x14a   :  { %1093 = vmatpush.msrb.mxu3 %v2044_v0 }
 0x14b   :  { %1170 = vmatpush.msra.mxu0 %v2008_v44  ;;  %1190 = vmatpush.msra.mxu1 %v2010_v45 }
 0x14c   :  { %1094 = vmatpush.msrb.mxu3 %v2054_v6 }
 0x14d   :  { %1171 = vmatpush.msra.mxu0 %v2017_v50  ;;  %1191 = vmatpush.msra.mxu1 %v2019_v34 }
 0x14e   :  { %1095 = vmatpush.msrb.mxu3 %v2064_v46 }
 0x14f   :  { %1172 = vmatpush.msra.mxu0 %v2028_v36  ;;  %1192 = vmatpush.msra.mxu1 %v2030_v37 }
 0x150   :  { %1096 = vmatpush.msrb.mxu3 %v2074_v49 }
 0x151   :  { %1173 = vmatpush.msra.mxu0 %v2037_v38  ;;  %1193 = vmatpush.msra.mxu1 %v2039_v40 }
 0x152   :  { %1097 = vmatpush.msrb.mxu3 %v2084_v53 }
 0x153   :  { %1174 = vmatpush.msra.mxu0 %v2046_v1  ;;  %1194 = vmatpush.msra.mxu1 %v2048_v41 }
 0x154   :  { %1098 = vmatpush.msrb.mxu3 %v2741_v4 }
 0x155   :  { %1175 = vmatpush.msra.mxu0 %v2742_v2  ;;  %1195 = vmatpush.msra.mxu1 %v2743_v48 }
 0x156   :  { %1099 = vmatpush.msrb.mxu3 %v2744_v58 }
 0x157   :  { %1176 = vmatpush.msra.mxu0 %v2745_v60  ;;  %1196 = vmatpush.msra.mxu1 %v2746_v63 }
 0x158   :  { %1100 = vmatpush.msrb.mxu3 %v2747_v5 }
 0x159   :  { %1177 = vmatpush.msra.mxu0 %v2748_v42  ;;  %1197 = vmatpush.msra.mxu1 %v2749_v7 }
 0x15a   :  { %1101 = vmatpush.msrb.mxu3 %v2750_v9 }
 0x15b   :  { %1178 = vmatpush.msra.mxu0 %v2751_v57  ;;  %1198 = vmatpush.msra.mxu1 %v2752_v12 }
 0x15c   :  { %1102 = vmatpush.msrb.mxu3 %v2753_v13 }
 0x15d   :  { %1179 = vmatpush.msra.mxu0 %v2754_v14  ;;  %1199 = vmatpush.msra.mxu1 %v2755_v55 }
 0x15e   :  { %1103 = vmatpush.msrb.mxu3 %v2756_v56 }
 0x15f   :  { %1180 = vmatpush.msra.mxu0 %v2757_v15  ;;  %1200 = vmatpush.msra.mxu1 %v2758_v16 }
 0x160   :  { %1104 = vmatpush.msrb.mxu3 %v2759_v20 }
 0x161   :  { %1181 = vmatpush.msra.mxu0 %v2760_v22  ;;  %1201 = vmatpush.msra.mxu1 %v2761_v23 }
 0x1be   :  { %v852_v21 = vpop.f32.mrf.mxu0 }
 0x1bf   :  { %v900_v10 = vadd.f32 %v898_v19, %v852_v21 }
 0x1c1   :  { %v1644_v17 = vmul.f32 -1.442695, %v900_v10 }
 0x1c3   :  { %1681 = vpow2.f32 %v1644_v17  ;;  %v872_v17 = vpop.f32.mrf.mxu1 }
 0x1c4   :  { %v832_v61 = vpop.f32.mrf.mxu3 }
 0x1c5   :  { %v877_v18 = vadd.f32 %v876_v26, %v832_v61 }
 0x1c7   :  { %v1643_v8 = vmul.f32 -1.442695, %v877_v18 }
 0x1c9   :  { %v1682_v3 = vpop.eup %1681  ;;  %1683 = vpow2.f32 %v1643_v8  ;;  %v920_v8 = vadd.f32 %v2284_v11, %v872_v17 }
 0x1ca   :  { %v904_v62 = vadd.f32 1.0, %v1682_v3 }
 0x1cc   :  { %1685 = vrcp.f32 %v904_v62  ;;  %v916_v55 = vand.u32 2147483648, %v904_v62  ;;  %vm910_vm3 = vweird.f32 %v904_v62 }
 0x1ce   :  { %v917_v13 = vor.u32 1.1754944e-38, %v916_v55 }
 0x1cf   :  { %v1684_v54 = vpop.eup %1683 }
 0x1d0   :  { %v881_v47 = vadd.f32 1.0, %v1684_v54 }
 0x1d2   :  { %1687 = vrcp.f32 %v881_v47  ;;  %v1686_v52 = vpop.eup %1685  ;;  %v893_v15 = vand.u32 2147483648, %v881_v47  ;;  %v891_v21 = vand.u32 2147483647, %v881_v47  ;;  %vm887_vm15 = vweird.f32 %v881_v47 }
 0x1d3   :  { %v906_v43 = vmul.f32 %v1686_v52, %v904_v62  ;;  %vm911_vm2 = vweird.f32 %v1686_v52 }
 0x1d4   :  { %v894_v18 = vor.u32 1.1754944e-38, %v893_v15  ;;  %vm892_vm1 = vcmp.eq.f32.partialorder %v891_v21, 8.507059e+37  ;;  %vm912_vm4 = vmor %vm910_vm3, %vm911_vm2 }
 0x1d5   :  { %v907_v20 = vsub.f32 1.0, %v906_v43  ;;  %v922_v43 = vrot.slane %v876_v26, 4 }
 0x1d7   :  { %v908_v10 = vmul.f32 %v1686_v52, %v907_v20 }
 0x1d8   :  { %v1688_v22 = vpop.eup %1687 }
 0x1d9   :  { %v883_v23 = vmul.f32 %v1688_v22, %v881_v47  ;;  %vm888_vm14 = vweird.f32 %v1688_v22  ;;  %v909_v54 = vadd.f32 %v1686_v52, %v908_v10 }
 0x1da   :  { %vm889_vm0 = vmor %vm887_vm15, %vm888_vm14 }
 0x1db   :  { %v884_v16 = vsub.f32 1.0, %v883_v23  ;;  %v913_v20 = vsel %vm912_vm4, %v1686_v52, %v909_v54  ;;  %v2418_v54 = vld [vmem:[#allocation6 + $0x168] sm:$0xff] }
 0x1dd   :  { %v885_v19 = vmul.f32 %v1688_v22, %v884_v16  ;;  %v914_v16 = vand.u32 2147483647, %v904_v62 }
 0x1df   :  { %v886_v61 = vadd.f32 %v1688_v22, %v885_v19  ;;  %vm915_vm5 = vcmp.eq.f32.partialorder %v914_v16, 8.507059e+37  ;;  %v2427_v16 = vld [vmem:[#allocation6 + $0x150] sm:$0xff] }
 0x1e0   :  { %v918_v47 = vsel %vm915_vm5, %v917_v13, %v913_v20  ;;  %v2430_v20 = vld [vmem:[#allocation6 + $0x158] sm:$0xff] }
 0x1e1   :  { %v890_v3 = vsel %vm889_vm0, %v1688_v22, %v886_v61  ;;  %v926_v15 = vsub.f32 1.0, %v918_v47  ;;  %v928_v22 = vmul.f32 %v918_v47, %v2288_v51  ;;  %v2433_v47 = vld [vmem:[#allocation6 + $0x148] sm:$0xff] }
 0x1e2   :  { %v895_v56 = vsel %vm892_vm1, %v894_v18, %v890_v3  ;;  %v2415_v3 = vld [vmem:[#allocation6 + $0x178] sm:$0xff] }
 0x1e3   :  { %v921_v23 = vmul.f32 %v920_v8, %v895_v56 }
 0x1e5   :  { %v924_v14 = vadd.f32 %v922_v43, %v921_v23  ;;  %v2421_v43 = vld [vmem:[#allocation6 + $0x170] sm:$0xff]  ;;  %v2424_v23 = vld [vmem:[#allocation6 + $0x160] sm:$0xff] }
 0x1e7   :  { %1689 = vtanh.f32 %v924_v14 }
 0x1ed   :  { %v1690_v19 = vpop.eup %1689 }
 0x1ee   :  { %v927_v17 = vmul.f32 %v1690_v19, %v926_v15  ;;  %v2436_v15 = vld [vmem:[#allocation6 + $0x138] sm:$0xff]  ;;  %v2439_v19 = vld [vmem:[#allocation6 + $0x140] sm:$0xff] }
 0x1f0   :  { %v2347_v21 = vadd.f32 %v928_v22, %v927_v17  ;;  %v2442_v17 = vld [vmem:[#allocation6 + $0x130] sm:$0xff]  ;;  %v2445_v22 = vld [vmem:[#allocation6 + $0x120] sm:$0xff] }
 0x1f2   :  { %1645 = vst [vmem:[%s2665_s5 + $0x2] sm:$0x3] %v2347_v21  ;;  %948 = vmatmul.f32.vlgmr.msra.gmra.mxu2 %v2347_v21  ;;  %968 = vmatmul.f32.vlgmr.msra.gmra.mxu3 %v2347_v21 }
 0x1f3   :  { %988 = vmatmul.f32.vlgmr.msrb.gmra.mxu0 %v2347_v21  ;;  %1206 = vmatpush.msra.mxu2 %v1988_v29  ;;  %v2766_v29 = vld [vmem:[#allocation23_spill] sm:$0xff] }
 0x1f4   :  { %1283 = vmatpush.msra.mxu3 %v1977_v24  ;;  %1303 = vmatpush.msrb.mxu0 %v1979_v25  ;;  %v2762_v24 = vld [vmem:[#allocation29_spill] sm:$0xff]  ;;  %v2763_v25 = vld [vmem:[#allocation20_spill] sm:$0xff] }
 0x1f5   :  { %1207 = vmatpush.msra.mxu2 %v1998_v39  ;;  %v2769_v39 = vld [vmem:[#allocation26_spill] sm:$0xff] }
 0x1f6   :  { %1284 = vmatpush.msra.mxu3 %v1983_v27  ;;  %1304 = vmatpush.msrb.mxu0 %v1985_v28  ;;  %v2764_v27 = vld [vmem:[#allocation21_spill] sm:$0xff]  ;;  %v2765_v28 = vld [vmem:[#allocation30_spill] sm:$0xff] }
 0x1f7   :  { %1208 = vmatpush.msra.mxu2 %v2024_v35 }
 0x1f8   :  { %1285 = vmatpush.msra.mxu3 %v1992_v30  ;;  %1305 = vmatpush.msrb.mxu0 %v1994_v31  ;;  %v2767_v30 = vld [vmem:[#allocation24_spill] sm:$0xff]  ;;  %v2768_v31 = vld [vmem:[#allocation31_spill] sm:$0xff] }
 0x1f9   :  { %1209 = vmatpush.msra.mxu2 %v2034_v59 }
 0x1fa   :  { %1286 = vmatpush.msra.mxu3 %v2001_v32  ;;  %1306 = vmatpush.msrb.mxu0 %v2003_v33  ;;  %v2770_v32 = vld [vmem:[#allocation27_spill] sm:$0xff]  ;;  %v993_v33 = vld [vmem:[#allocation3 + $0xc] sm:$0x3f] }
 0x1fb   :  { %1210 = vmatpush.msra.mxu2 %v2044_v0 }
 0x1fc   :  { %1287 = vmatpush.msra.mxu3 %v2008_v44  ;;  %1307 = vmatpush.msrb.mxu0 %v2010_v45  ;;  %v1015_v44 = vrot.slane %v993_v33, 2 }
 0x1fd   :  { %1211 = vmatpush.msra.mxu2 %v2054_v6 }
 0x1fe   :  { %1288 = vmatpush.msra.mxu3 %v2017_v50  ;;  %1308 = vmatpush.msrb.mxu0 %v2019_v34 }
 0x1ff   :  { %1212 = vmatpush.msra.mxu2 %v2064_v46 }
 0x200   :  { %1289 = vmatpush.msra.mxu3 %v2028_v36  ;;  %1309 = vmatpush.msrb.mxu0 %v2030_v37 }
 0x201   :  { %1213 = vmatpush.msra.mxu2 %v2074_v49 }
 0x202   :  { %1290 = vmatpush.msra.mxu3 %v2037_v38  ;;  %1310 = vmatpush.msrb.mxu0 %v2039_v40 }
 0x203   :  { %1214 = vmatpush.msra.mxu2 %v2084_v53 }
 0x204   :  { %1291 = vmatpush.msra.mxu3 %v2046_v1  ;;  %1311 = vmatpush.msrb.mxu0 %v2048_v41 }
 0x205   :  { %1215 = vmatpush.msra.mxu2 %v2741_v4 }
 0x206   :  { %1292 = vmatpush.msra.mxu3 %v2742_v2  ;;  %1312 = vmatpush.msrb.mxu0 %v2743_v48 }
 0x207   :  { %1216 = vmatpush.msra.mxu2 %v2744_v58 }
 0x208   :  { %1293 = vmatpush.msra.mxu3 %v2745_v60  ;;  %1313 = vmatpush.msrb.mxu0 %v2746_v63 }
 0x209   :  { %1217 = vmatpush.msra.mxu2 %v2747_v5 }
 0x20a   :  { %1294 = vmatpush.msra.mxu3 %v2748_v42  ;;  %1314 = vmatpush.msrb.mxu0 %v2749_v7 }
 0x20b   :  { %1218 = vmatpush.msra.mxu2 %v2750_v9 }
 0x20c   :  { %1295 = vmatpush.msra.mxu3 %v2751_v57  ;;  %1315 = vmatpush.msrb.mxu0 %v2752_v12  ;;  %v1039_v12 = vrot.slane %v993_v33, 4 }
 0x20d   :  { %1219 = vmatpush.msra.mxu2 %v2762_v24  ;;  %v2451_v24 = vld [vmem:[#allocation6 + $0x118] sm:$0xff] }
 0x20e   :  { %1296 = vmatpush.msra.mxu3 %v2763_v25  ;;  %1316 = vmatpush.msrb.mxu0 %v2764_v27  ;;  %v2454_v25 = vld [vmem:[#allocation6 + $0x108] sm:$0xff]  ;;  %v2457_v27 = vld [vmem:[#allocation6 + $0x110] sm:$0xff] }
 0x20f   :  { %1220 = vmatpush.msra.mxu2 %v2765_v28  ;;  %v2460_v28 = vld [vmem:[#allocation6 + $0x100] sm:$0xff] }
 0x210   :  { %1297 = vmatpush.msra.mxu3 %v2766_v29  ;;  %1317 = vmatpush.msrb.mxu0 %v2767_v30  ;;  %v2463_v29 = vld [vmem:[#allocation6 + $0xf0] sm:$0xff]  ;;  %v2466_v30 = vld [vmem:[#allocation6 + $0xf8] sm:$0xff] }
 0x211   :  { %1221 = vmatpush.msra.mxu2 %v2768_v31  ;;  %v2469_v31 = vld [vmem:[#allocation6 + $0xe8] sm:$0xff] }
 0x212   :  { %1298 = vmatpush.msra.mxu3 %v2769_v39  ;;  %1318 = vmatpush.msrb.mxu0 %v2770_v32  ;;  %v2472_v39 = vld [vmem:[#allocation6 + $0xd8] sm:$0xff]  ;;  %v2475_v32 = vld [vmem:[#allocation6 + $0xe0] sm:$0xff] }
 0x270   :  { %v989_v48 = vpop.f32.mrf.mxu0 }
 0x271   :  { %v1037_v5 = vadd.f32 %v2284_v11, %v989_v48  ;;  %v2541_v48 = vld [vmem:[#allocation6 + $0x28] sm:$0xff] }
 0x272   :  { %2774 = vst [vmem:[#allocation22_spill] sm:$0xff] %v2541_v48 }
 0x275   :  { %v949_v45 = vpop.f32.mrf.mxu2  ;;  %v969_v50 = vpop.f32.mrf.mxu3 }
 0x276   :  { %v994_v34 = vadd.f32 %v993_v33, %v949_v45  ;;  %v1017_v35 = vadd.f32 %v1015_v44, %v969_v50  ;;  %v2478_v33 = vld [vmem:[#allocation6 + $0xd0] sm:$0xff]  ;;  %v2481_v44 = vld [vmem:[#allocation6 + $0xc0] sm:$0xff]  ;;  %v2484_v45 = vld [vmem:[#allocation6 + $0xc8] sm:$0xff] }
 0x277   :  { %v2487_v50 = vld [vmem:[#allocation6 + $0xb8] sm:$0xff] }
 0x278   :  { %v1646_v36 = vmul.f32 -1.442695, %v994_v34  ;;  %v1647_v37 = vmul.f32 -1.442695, %v1017_v35  ;;  %v2490_v34 = vld [vmem:[#allocation6 + $0xa8] sm:$0xff]  ;;  %v2493_v35 = vld [vmem:[#allocation6 + $0xb0] sm:$0xff] }
 0x27a   :  { %1691 = vpow2.f32 %v1646_v36  ;;  %v2496_v36 = vld [vmem:[#allocation6 + $0xa0] sm:$0xff] }
 0x27b   :  { %1693 = vpow2.f32 %v1647_v37  ;;  %v2499_v37 = vld [vmem:[#allocation6 + $0x90] sm:$0xff] }
 0x280   :  { %v1692_v59 = vpop.eup %1691 }
 0x281   :  { %v1694_v38 = vpop.eup %1693  ;;  %v998_v40 = vadd.f32 1.0, %v1692_v59  ;;  %v2502_v59 = vld [vmem:[#allocation6 + $0x98] sm:$0xff] }
 0x282   :  { %v1021_v0 = vadd.f32 1.0, %v1694_v38  ;;  %v2505_v38 = vld [vmem:[#allocation6 + $0x88] sm:$0xff] }
 0x283   :  { %1695 = vrcp.f32 %v998_v40  ;;  %v1010_v53 = vand.u32 2147483648, %v998_v40  ;;  %v1008_v2 = vand.u32 2147483647, %v998_v40  ;;  %vm1004_vm7 = vweird.f32 %v998_v40 }
 0x284   :  { %1697 = vrcp.f32 %v1021_v0  ;;  %v1033_v13 = vand.u32 2147483648, %v1021_v0  ;;  %vm1027_vm11 = vweird.f32 %v1021_v0  ;;  %v1031_v14 = vand.u32 2147483647, %v1021_v0 }
 0x285   :  { %v1011_v63 = vor.u32 1.1754944e-38, %v1010_v53  ;;  %vm1009_vm9 = vcmp.eq.f32.partialorder %v1008_v2, 8.507059e+37  ;;  %v2529_v53 = vld [vmem:[#allocation6 + $0x50] sm:$0xff]  ;;  %v2538_v2 = vld [vmem:[#allocation6 + $0x38] sm:$0xff] }
 0x286   :  { %v1034_v26 = vor.u32 1.1754944e-38, %v1033_v13  ;;  %vm1032_vm13 = vcmp.eq.f32.partialorder %v1031_v14, 8.507059e+37  ;;  %2773 = vst [vmem:[#allocation12_spill] sm:$0xff] %v2538_v2 }
 0x289   :  { %v1696_v1 = vpop.eup %1695 }
 0x28a   :  { %v1698_v41 = vpop.eup %1697  ;;  %v1000_v6 = vmul.f32 %v1696_v1, %v998_v40  ;;  %vm1005_vm6 = vweird.f32 %v1696_v1  ;;  %v2508_v40 = vld [vmem:[#allocation6 + $0x78] sm:$0xff] }
 0x28b   :  { %v1023_v46 = vmul.f32 %v1698_v41, %v1021_v0  ;;  %vm1006_vm8 = vmor %vm1004_vm7, %vm1005_vm6  ;;  %vm1028_vm10 = vweird.f32 %v1698_v41  ;;  %v2511_v0 = vld [vmem:[#allocation6 + $0x80] sm:$0xff] }
 0x28c   :  { %v1001_v49 = vsub.f32 1.0, %v1000_v6  ;;  %vm1029_vm12 = vmor %vm1027_vm11, %vm1028_vm10  ;;  %v2520_v6 = vld [vmem:[#allocation6 + $0x68] sm:$0xff] }
 0x28d   :  { %v1024_v51 = vsub.f32 1.0, %v1023_v46  ;;  %v2523_v46 = vld [vmem:[#allocation6 + $0x58] sm:$0xff] }
 0x28e   :  { %v1002_v4 = vmul.f32 %v1696_v1, %v1001_v49  ;;  %v2526_v49 = vld [vmem:[#allocation6 + $0x48] sm:$0xff] }
 0x28f   :  { %v1025_v58 = vmul.f32 %v1698_v41, %v1024_v51  ;;  %v2532_v51 = vld [vmem:[#allocation6 + $0x40] sm:$0xff] }
 0x290   :  { %v1003_v60 = vadd.f32 %v1696_v1, %v1002_v4  ;;  %2771 = vst [vmem:[#allocation19_spill] sm:$0xff] %v2532_v51  ;;  %v2535_v4 = vld [vmem:[#allocation6 + $0x30] sm:$0xff] }
 0x291   :  { %v1026_v9 = vadd.f32 %v1698_v41, %v1025_v58  ;;  %2772 = vst [vmem:[#allocation11_spill] sm:$0xff] %v2535_v4  ;;  %v2544_v58 = vld [vmem:[#allocation6 + $0x18] sm:$0xff] }
 0x292   :  { %v1007_v42 = vsel %vm1006_vm8, %v1696_v1, %v1003_v60  ;;  %v2514_v1 = vld [vmem:[#allocation6 + $0x70] sm:$0xff]  ;;  %2775 = vst [vmem:[#allocation13_spill] sm:$0xff] %v2544_v58  ;;  %v2547_v60 = vld [vmem:[#allocation6 + $0x20] sm:$0xff] }
 0x293   :  { %v1012_v7 = vsel %vm1009_vm9, %v1011_v63, %v1007_v42  ;;  %v1030_v56 = vsel %vm1029_vm12, %v1698_v41, %v1026_v9  ;;  %v2517_v41 = vld [vmem:[#allocation6 + $0x60] sm:$0xff]  ;;  %2776 = vst [vmem:[#allocation14_spill] sm:$0xff] %v2547_v60  ;;  %v2550_v63 = vld [vmem:[#allocation6 + $0x10] sm:$0xff]  ;;  %v2556_v42 = vld [vmem:[#allocation6 + $0x8] sm:$0xff] }
 0x294   :  { %v1038_v57 = vmul.f32 %v1037_v5, %v1012_v7  ;;  %v1035_v62 = vsel %vm1032_vm13, %v1034_v26, %v1030_v56  ;;  %2777 = vst [vmem:[#allocation25_spill] sm:$0xff] %v2550_v63  ;;  %v2553_v5 = vld [vmem:[#allocation6] sm:$0xff] }
 0x295   :  { %v1043_v52 = vsub.f32 1.0, %v1035_v62  ;;  %v1045_v18 = vmul.f32 %v1035_v62, %v2347_v21  ;;  %v2448_v21 = vld [vmem:[#allocation6 + $0x128] sm:$0xff]  ;;  %2778 = vst [vmem:[#allocation15_spill] sm:$0xff] %v2553_v5  ;;  %v1110_v9 = vld [vmem:[#allocation3 + $0x12] sm:$0x3f] }
 0x296   :  { %v1041_v55 = vadd.f32 %v1039_v12, %v1038_v57  ;;  %2779 = vst [vmem:[#allocation16_spill] sm:$0xff] %v2556_v42  ;;  %v1132_v13 = vrot.slane %v1110_v9, 2 }
 0x298   :  { %1699 = vtanh.f32 %v1041_v55 }
 0x29e   :  { %v1700_v10 = vpop.eup %1699 }
 0x29f   :  { %v1044_v61 = vmul.f32 %v1700_v10, %v1043_v52 }
 0x2a1   :  { %v2406_v8 = vadd.f32 %v1045_v18, %v1044_v61 }
 0x2a3   :  { %1648 = vst [vmem:[%s2665_s5 + $0x4] sm:$0x3] %v2406_v8  ;;  %1065 = vmatmul.f32.vlgmr.msrb.gmra.mxu1 %v2406_v8  ;;  %1085 = vmatmul.f32.vlgmr.msrb.gmra.mxu2 %v2406_v8 }
 0x2a4   :  { %1105 = vmatmul.f32.vlgmr.msrb.gmra.mxu3 %v2406_v8  ;;  %1323 = vmatpush.msrb.mxu1 %v2415_v3 }
 0x2a5   :  { %1400 = vmatpush.msrb.mxu2 %v2418_v54  ;;  %1420 = vmatpush.msrb.mxu3 %v2421_v43 }
 0x2a6   :  { %1324 = vmatpush.msrb.mxu1 %v2424_v23 }
 0x2a7   :  { %1401 = vmatpush.msrb.mxu2 %v2427_v16  ;;  %1421 = vmatpush.msrb.mxu3 %v2430_v20 }
 0x2a8   :  { %1325 = vmatpush.msrb.mxu1 %v2433_v47 }
 0x2a9   :  { %1402 = vmatpush.msrb.mxu2 %v2436_v15  ;;  %1422 = vmatpush.msrb.mxu3 %v2439_v19 }
 0x2aa   :  { %1326 = vmatpush.msrb.mxu1 %v2442_v17 }
 0x2ab   :  { %1403 = vmatpush.msrb.mxu2 %v2445_v22  ;;  %1423 = vmatpush.msrb.mxu3 %v2448_v21 }
 0x2ac   :  { %1327 = vmatpush.msrb.mxu1 %v2451_v24 }
 0x2ad   :  { %1404 = vmatpush.msrb.mxu2 %v2454_v25  ;;  %1424 = vmatpush.msrb.mxu3 %v2457_v27 }
 0x2ae   :  { %1328 = vmatpush.msrb.mxu1 %v2460_v28 }
 0x2af   :  { %1405 = vmatpush.msrb.mxu2 %v2463_v29  ;;  %1425 = vmatpush.msrb.mxu3 %v2466_v30 }
 0x2b0   :  { %1329 = vmatpush.msrb.mxu1 %v2469_v31 }
 0x2b1   :  { %1406 = vmatpush.msrb.mxu2 %v2472_v39  ;;  %1426 = vmatpush.msrb.mxu3 %v2475_v32 }
 0x2b2   :  { %1330 = vmatpush.msrb.mxu1 %v2478_v33 }
 0x2b3   :  { %1407 = vmatpush.msrb.mxu2 %v2481_v44  ;;  %1427 = vmatpush.msrb.mxu3 %v2484_v45 }
 0x2b4   :  { %1331 = vmatpush.msrb.mxu1 %v2487_v50 }
 0x2b5   :  { %1408 = vmatpush.msrb.mxu2 %v2490_v34  ;;  %1428 = vmatpush.msrb.mxu3 %v2493_v35 }
 0x2b6   :  { %1332 = vmatpush.msrb.mxu1 %v2496_v36 }
 0x2b7   :  { %1409 = vmatpush.msrb.mxu2 %v2499_v37  ;;  %1429 = vmatpush.msrb.mxu3 %v2502_v59 }
 0x2b8   :  { %1333 = vmatpush.msrb.mxu1 %v2505_v38 }
 0x2b9   :  { %1410 = vmatpush.msrb.mxu2 %v2508_v40  ;;  %1430 = vmatpush.msrb.mxu3 %v2511_v0 }
 0x2ba   :  { %1334 = vmatpush.msrb.mxu1 %v2514_v1 }
 0x2bb   :  { %1411 = vmatpush.msrb.mxu2 %v2517_v41  ;;  %1431 = vmatpush.msrb.mxu3 %v2520_v6 }
 0x2bc   :  { %1335 = vmatpush.msrb.mxu1 %v2523_v46 }
 0x2bd   :  { %1412 = vmatpush.msrb.mxu2 %v2526_v49  ;;  %1432 = vmatpush.msrb.mxu3 %v2529_v53 }
 0x2be   :  { %1336 = vmatpush.msrb.mxu1 %v2532_v51 }
 0x2bf   :  { %1413 = vmatpush.msrb.mxu2 %v2535_v4  ;;  %1433 = vmatpush.msrb.mxu3 %v2538_v2 }
 0x2c0   :  { %1337 = vmatpush.msrb.mxu1 %v2541_v48 }
 0x2c1   :  { %1414 = vmatpush.msrb.mxu2 %v2544_v58  ;;  %1434 = vmatpush.msrb.mxu3 %v2547_v60 }
 0x2c2   :  { %1338 = vmatpush.msrb.mxu1 %v2550_v63 }
 0x2c3   :  { %1415 = vmatpush.msrb.mxu2 %v2553_v5  ;;  %1435 = vmatpush.msrb.mxu3 %v2556_v42 }
 0x320   :  { %v1066_v7 = vpop.f32.mrf.mxu1 }
 0x321   :  { %v1111_v57 = vadd.f32 %v1110_v9, %v1066_v7 }
 0x323   :  { %v1649_v12 = vmul.f32 -1.442695, %v1111_v57 }
 0x325   :  { %1701 = vpow2.f32 %v1649_v12 }
 0x326   :  { %v1086_v14 = vpop.f32.mrf.mxu2 }
 0x327   :  { %v1134_v55 = vadd.f32 %v1132_v13, %v1086_v14  ;;  %v1106_v12 = vpop.f32.mrf.mxu3 }
 0x329   :  { %v1650_v56 = vmul.f32 -1.442695, %v1134_v55 }
 0x32b   :  { %v1702_v26 = vpop.eup %1701  ;;  %1703 = vpow2.f32 %v1650_v56  ;;  %v1154_v56 = vadd.f32 %v2284_v11, %v1106_v12 }
 0x32c   :  { %v1115_v62 = vadd.f32 1.0, %v1702_v26  ;;  %v1156_v26 = vrot.slane %v1110_v9, 4 }
 0x32e   :  { %1705 = vrcp.f32 %v1115_v62  ;;  %v1127_v42 = vand.u32 2147483648, %v1115_v62  ;;  %v1125_v7 = vand.u32 2147483647, %v1115_v62  ;;  %vm1121_vm15 = vweird.f32 %v1115_v62 }
 0x330   :  { %v1128_v13 = vor.u32 1.1754944e-38, %v1127_v42  ;;  %vm1126_vm1 = vcmp.eq.f32.partialorder %v1125_v7, 8.507059e+37 }
 0x331   :  { %v1704_v52 = vpop.eup %1703 }
 0x332   :  { %v1138_v10 = vadd.f32 1.0, %v1704_v52 }
 0x334   :  { %v1706_v61 = vpop.eup %1705  ;;  %1707 = vrcp.f32 %v1138_v10  ;;  %v1148_v2 = vand.u32 2147483647, %v1138_v10  ;;  %vm1144_vm3 = vweird.f32 %v1138_v10 }
 0x335   :  { %v1117_v18 = vmul.f32 %v1706_v61, %v1115_v62  ;;  %vm1122_vm14 = vweird.f32 %v1706_v61 }
 0x336   :  { %vm1123_vm0 = vmor %vm1121_vm15, %vm1122_vm14  ;;  %vm1149_vm5 = vcmp.eq.f32.partialorder %v1148_v2, 8.507059e+37 }
 0x337   :  { %v1118_v5 = vsub.f32 1.0, %v1117_v18  ;;  %v1150_v18 = vand.u32 2147483648, %v1138_v10 }
 0x339   :  { %v1119_v63 = vmul.f32 %v1706_v61, %v1118_v5 }
 0x33a   :  { %v1708_v57 = vpop.eup %1707 }
 0x33b   :  { %v1140_v60 = vmul.f32 %v1708_v57, %v1138_v10  ;;  %v1120_v58 = vadd.f32 %v1706_v61, %v1119_v63  ;;  %vm1145_vm2 = vweird.f32 %v1708_v57  ;;  %v1151_v63 = vor.u32 1.1754944e-38, %v1150_v18 }
 0x33c   :  { %vm1146_vm4 = vmor %vm1144_vm3, %vm1145_vm2 }
 0x33d   :  { %v1141_v14 = vsub.f32 1.0, %v1140_v60  ;;  %v1124_v55 = vsel %vm1123_vm0, %v1706_v61, %v1120_v58 }
 0x33e   :  { %v1129_v52 = vsel %vm1126_vm1, %v1128_v13, %v1124_v55 }
 0x33f   :  { %v1142_v48 = vmul.f32 %v1708_v57, %v1141_v14  ;;  %v1155_v5 = vmul.f32 %v1154_v56, %v1129_v52 }
 0x341   :  { %v1143_v4 = vadd.f32 %v1708_v57, %v1142_v48  ;;  %v1158_v51 = vadd.f32 %v1156_v26, %v1155_v5 }
 0x343   :  { %v1147_v62 = vsel %vm1146_vm4, %v1708_v57, %v1143_v4  ;;  %1709 = vtanh.f32 %v1158_v51 }
 0x344   :  { %v1152_v60 = vsel %vm1149_vm5, %v1151_v63, %v1147_v62 }
 0x345   :  { %v1160_v58 = vsub.f32 1.0, %v1152_v60  ;;  %v1162_v9 = vmul.f32 %v1152_v60, %v2406_v8  ;;  %v2780_v8 = vld [vmem:[#allocation19_spill] sm:$0xff] }
 0x349   :  { %v1710_v42 = vpop.eup %1709 }
 0x34a   :  { %v1161_v61 = vmul.f32 %v1710_v42, %v1160_v58 }
 0x34c   :  { %v2561_v7 = vadd.f32 %v1162_v9, %v1161_v61 }
 0x34e   :  { %1651 = vst [vmem:[%s2665_s5 + $0x6] sm:$0x3] %v2561_v7  ;;  %1182 = vmatmul.f32.vlgmr.msra.gmra.mxu0 %v2561_v7  ;;  %1202 = vmatmul.f32.vlgmr.msra.gmra.mxu1 %v2561_v7 }
 0x34f   :  { %1222 = vmatmul.f32.vlgmr.msra.gmra.mxu2 %v2561_v7  ;;  %1440 = vmatpush.msra.mxu0 %v2415_v3 }
 0x350   :  { %1517 = vmatpush.msra.mxu1 %v2418_v54  ;;  %1537 = vmatpush.msra.mxu2 %v2421_v43  ;;  %v2781_v54 = vld [vmem:[#allocation11_spill] sm:$0xff]  ;;  %v2782_v43 = vld [vmem:[#allocation12_spill] sm:$0xff] }
 0x351   :  { %1441 = vmatpush.msra.mxu0 %v2424_v23 }
 0x352   :  { %1518 = vmatpush.msra.mxu1 %v2427_v16  ;;  %1538 = vmatpush.msra.mxu2 %v2430_v20  ;;  %v2783_v16 = vld [vmem:[#allocation22_spill] sm:$0xff]  ;;  %v2784_v20 = vld [vmem:[#allocation13_spill] sm:$0xff] }
 0x353   :  { %1442 = vmatpush.msra.mxu0 %v2433_v47 }
 0x354   :  { %1519 = vmatpush.msra.mxu1 %v2436_v15  ;;  %1539 = vmatpush.msra.mxu2 %v2439_v19  ;;  %v2785_v15 = vld [vmem:[#allocation14_spill] sm:$0xff]  ;;  %v2786_v19 = vld [vmem:[#allocation25_spill] sm:$0xff] }
 0x355   :  { %1443 = vmatpush.msra.mxu0 %v2442_v17 }
 0x356   :  { %1520 = vmatpush.msra.mxu1 %v2445_v22  ;;  %1540 = vmatpush.msra.mxu2 %v2448_v21  ;;  %v2787_v22 = vld [vmem:[#allocation15_spill] sm:$0xff]  ;;  %v2788_v21 = vld [vmem:[#allocation16_spill] sm:$0xff] }
 0x357   :  { %1444 = vmatpush.msra.mxu0 %v2451_v24 }
 0x358   :  { %1521 = vmatpush.msra.mxu1 %v2454_v25  ;;  %1541 = vmatpush.msra.mxu2 %v2457_v27  ;;  %v1227_v25 = vld [vmem:[#allocation3 + $0x18] sm:$0x3f] }
 0x359   :  { %1445 = vmatpush.msra.mxu0 %v2460_v28  ;;  %v1249_v27 = vrot.slane %v1227_v25, 2  ;;  %v1273_v26 = vrot.slane %v1227_v25, 4 }
 0x35a   :  { %1522 = vmatpush.msra.mxu1 %v2463_v29  ;;  %1542 = vmatpush.msra.mxu2 %v2466_v30 }
 0x35b   :  { %1446 = vmatpush.msra.mxu0 %v2469_v31 }
 0x35c   :  { %1523 = vmatpush.msra.mxu1 %v2472_v39  ;;  %1543 = vmatpush.msra.mxu2 %v2475_v32 }
 0x35d   :  { %1447 = vmatpush.msra.mxu0 %v2478_v33 }
 0x35e   :  { %1524 = vmatpush.msra.mxu1 %v2481_v44  ;;  %1544 = vmatpush.msra.mxu2 %v2484_v45 }
 0x35f   :  { %1448 = vmatpush.msra.mxu0 %v2487_v50 }
 0x360   :  { %1525 = vmatpush.msra.mxu1 %v2490_v34  ;;  %1545 = vmatpush.msra.mxu2 %v2493_v35 }
 0x361   :  { %1449 = vmatpush.msra.mxu0 %v2496_v36 }
 0x362   :  { %1526 = vmatpush.msra.mxu1 %v2499_v37  ;;  %1546 = vmatpush.msra.mxu2 %v2502_v59 }
 0x363   :  { %1450 = vmatpush.msra.mxu0 %v2505_v38 }
 0x364   :  { %1527 = vmatpush.msra.mxu1 %v2508_v40  ;;  %1547 = vmatpush.msra.mxu2 %v2511_v0 }
 0x365   :  { %1451 = vmatpush.msra.mxu0 %v2514_v1 }
 0x366   :  { %1528 = vmatpush.msra.mxu1 %v2517_v41  ;;  %1548 = vmatpush.msra.mxu2 %v2520_v6 }
 0x367   :  { %1452 = vmatpush.msra.mxu0 %v2523_v46 }
 0x368   :  { %1529 = vmatpush.msra.mxu1 %v2526_v49  ;;  %1549 = vmatpush.msra.mxu2 %v2529_v53 }
 0x369   :  { %1453 = vmatpush.msra.mxu0 %v2780_v8 }
 0x36a   :  { %1530 = vmatpush.msra.mxu1 %v2781_v54  ;;  %1550 = vmatpush.msra.mxu2 %v2782_v43 }
 0x36b   :  { %1454 = vmatpush.msra.mxu0 %v2783_v16 }
 0x36c   :  { %1531 = vmatpush.msra.mxu1 %v2784_v20  ;;  %1551 = vmatpush.msra.mxu2 %v2785_v15 }
 0x36d   :  { %1455 = vmatpush.msra.mxu0 %v2786_v19 }
 0x36e   :  { %1532 = vmatpush.msra.mxu1 %v2787_v22  ;;  %1552 = vmatpush.msra.mxu2 %v2788_v21 }
 0x3cb   :  { %v1183_v29 = vpop.f32.mrf.mxu0  ;;  %v1203_v30 = vpop.f32.mrf.mxu1 }
 0x3cc   :  { %v1228_v39 = vadd.f32 %v1227_v25, %v1183_v29  ;;  %v1251_v32 = vadd.f32 %v1249_v27, %v1203_v30  ;;  %v2645_v30 = vld [vmem:[#allocation8] ss:$0 sm:$0xff] }
 0x3ce   :  { %v1652_v44 = vmul.f32 -1.442695, %v1228_v39  ;;  %v1653_v45 = vmul.f32 -1.442695, %v1251_v32 }
 0x3d0   :  { %1711 = vpow2.f32 %v1652_v44 }
 0x3d1   :  { %1713 = vpow2.f32 %v1653_v45 }
 0x3d2   :  { %v1223_v10 = vpop.f32.mrf.mxu2 }
 0x3d3   :  { %v1271_v14 = vadd.f32 %v2284_v11, %v1223_v10 }
 0x3d6   :  { %v1712_v34 = vpop.eup %1711 }
 0x3d7   :  { %v1714_v35 = vpop.eup %1713  ;;  %v1232_v37 = vadd.f32 1.0, %v1712_v34 }
 0x3d8   :  { %v1255_v59 = vadd.f32 1.0, %v1714_v35 }
 0x3d9   :  { %1715 = vrcp.f32 %v1232_v37  ;;  %v1244_v51 = vand.u32 2147483648, %v1232_v37  ;;  %v1242_v2 = vand.u32 2147483647, %v1232_v37  ;;  %vm1238_vm7 = vweird.f32 %v1232_v37 }
 0x3da   :  { %1717 = vrcp.f32 %v1255_v59  ;;  %v1267_v52 = vand.u32 2147483648, %v1255_v59  ;;  %vm1261_vm11 = vweird.f32 %v1255_v59  ;;  %v1265_v5 = vand.u32 2147483647, %v1255_v59 }
 0x3db   :  { %v1245_v12 = vor.u32 1.1754944e-38, %v1244_v51  ;;  %vm1243_vm9 = vcmp.eq.f32.partialorder %v1242_v2, 8.507059e+37 }
 0x3dc   :  { %v1268_v60 = vor.u32 1.1754944e-38, %v1267_v52  ;;  %vm1266_vm13 = vcmp.eq.f32.partialorder %v1265_v5, 8.507059e+37 }
 0x3df   :  { %v1716_v40 = vpop.eup %1715 }
 0x3e0   :  { %v1718_v0 = vpop.eup %1717  ;;  %v1234_v41 = vmul.f32 %v1716_v40, %v1232_v37  ;;  %vm1239_vm6 = vweird.f32 %v1716_v40 }
 0x3e1   :  { %v1257_v6 = vmul.f32 %v1718_v0, %v1255_v59  ;;  %vm1240_vm8 = vmor %vm1238_vm7, %vm1239_vm6  ;;  %vm1262_vm10 = vweird.f32 %v1718_v0 }
 0x3e2   :  { %v1235_v49 = vsub.f32 1.0, %v1234_v41  ;;  %vm1263_vm12 = vmor %vm1261_vm11, %vm1262_vm10 }
 0x3e3   :  { %v1258_v53 = vsub.f32 1.0, %v1257_v6 }
 0x3e4   :  { %v1236_v4 = vmul.f32 %v1716_v40, %v1235_v49 }
 0x3e5   :  { %v1259_v48 = vmul.f32 %v1718_v0, %v1258_v53 }
 0x3e6   :  { %v1237_v57 = vadd.f32 %v1716_v40, %v1236_v4 }
 0x3e7   :  { %v1260_v55 = vadd.f32 %v1718_v0, %v1259_v48  ;;  %v1461_v48 = vld [vmem:[#allocation3 + $0x24] sm:$0x3f] }
 0x3e8   :  { %v1241_v13 = vsel %vm1240_vm8, %v1716_v40, %v1237_v57  ;;  %v1483_v10 = vrot.slane %v1461_v48, 2 }
 0x3e9   :  { %v1246_v56 = vsel %vm1243_vm9, %v1245_v12, %v1241_v13  ;;  %v1264_v62 = vsel %vm1263_vm12, %v1718_v0, %v1260_v55 }
 0x3ea   :  { %v1272_v18 = vmul.f32 %v1271_v14, %v1246_v56  ;;  %v1269_v58 = vsel %vm1266_vm13, %v1268_v60, %v1264_v62 }
 0x3eb   :  { %v1277_v42 = vsub.f32 1.0, %v1269_v58  ;;  %v1279_v11 = vmul.f32 %v1269_v58, %v2561_v7 }
 0x3ec   :  { %v1275_v63 = vadd.f32 %v1273_v26, %v1272_v18 }
 0x3ee   :  { %1719 = vtanh.f32 %v1275_v63 }
 0x3f4   :  { %v1720_v61 = vpop.eup %1719 }
 0x3f5   :  { %v1278_v9 = vmul.f32 %v1720_v61, %v1277_v42 }
 0x3f7   :  { %v2620_v54 = vadd.f32 %v1279_v11, %v1278_v9 }
 0x3f9   :  { %1654 = vst [vmem:[%s2665_s5 + $0x8] sm:$0x3] %v2620_v54  ;;  %1299 = vmatmul.f32.vlgmr.msra.gmra.mxu3 %v2620_v54  ;;  %1319 = vmatmul.f32.vlgmr.msrb.gmra.mxu0 %v2620_v54 }
 0x3fa   :  { %1339 = vmatmul.f32.vlgmr.msrb.gmra.mxu1 %v2620_v54  ;;  %1557 = vmatpush.msra.mxu3 %v2415_v3  ;;  %v1344_v3 = vld [vmem:[#allocation3 + $0x1e] sm:$0x3f] }
 0x3fb   :  { %v1390_v35 = vrot.slane %v1344_v3, 4 }
 0x3fc   :  { %1558 = vmatpush.msra.mxu3 %v2424_v23  ;;  %v1366_v23 = vrot.slane %v1344_v3, 2 }
 0x3fe   :  { %1559 = vmatpush.msra.mxu3 %v2433_v47 }
 0x400   :  { %1560 = vmatpush.msra.mxu3 %v2442_v17 }
 0x402   :  { %1561 = vmatpush.msra.mxu3 %v2451_v24 }
 0x404   :  { %1562 = vmatpush.msra.mxu3 %v2460_v28 }
 0x406   :  { %1563 = vmatpush.msra.mxu3 %v2469_v31 }
 0x408   :  { %1564 = vmatpush.msra.mxu3 %v2478_v33 }
 0x40a   :  { %1565 = vmatpush.msra.mxu3 %v2487_v50 }
 0x40c   :  { %1566 = vmatpush.msra.mxu3 %v2496_v36 }
 0x40e   :  { %1567 = vmatpush.msra.mxu3 %v2505_v38 }
 0x410   :  { %1568 = vmatpush.msra.mxu3 %v2514_v1 }
 0x412   :  { %1569 = vmatpush.msra.mxu3 %v2523_v46 }
 0x414   :  { %1570 = vmatpush.msra.mxu3 %v2780_v8 }
 0x416   :  { %1571 = vmatpush.msra.mxu3 %v2783_v16 }
 0x418   :  { %1572 = vmatpush.msra.mxu3 %v2786_v19 }
 0x476   :  { %v1320_v47 = vpop.f32.mrf.mxu0 }
 0x477   :  { %v1368_v17 = vadd.f32 %v1366_v23, %v1320_v47  ;;  %v1340_v25 = vpop.f32.mrf.mxu1 }
 0x478   :  { %v1388_v39 = vadd.f32 %v2645_v30, %v1340_v25  ;;  %v1578_v25 = vld [vmem:[#allocation3 + $0x2a] sm:$0x3f] }
 0x479   :  { %v1656_v24 = vmul.f32 -1.442695, %v1368_v17 }
 0x47b   :  { %1721 = vpow2.f32 %v1656_v24 }
 0x47c   :  { %v1300_v28 = vpop.f32.mrf.mxu3 }
 0x47d   :  { %v1345_v31 = vadd.f32 %v1344_v3, %v1300_v28 }
 0x47f   :  { %v1655_v33 = vmul.f32 -1.442695, %v1345_v31 }
 0x481   :  { %v1722_v50 = vpop.eup %1721  ;;  %1723 = vpow2.f32 %v1655_v33 }
 0x482   :  { %v1372_v36 = vadd.f32 1.0, %v1722_v50 }
 0x484   :  { %1725 = vrcp.f32 %v1372_v36  ;;  %v1384_v34 = vand.u32 2147483648, %v1372_v36  ;;  %vm1378_vm3 = vweird.f32 %v1372_v36  ;;  %v1382_v59 = vand.u32 2147483647, %v1372_v36 }
 0x486   :  { %v1385_v41 = vor.u32 1.1754944e-38, %v1384_v34  ;;  %vm1383_vm5 = vcmp.eq.f32.partialorder %v1382_v59, 8.507059e+37 }
 0x487   :  { %v1724_v38 = vpop.eup %1723 }
 0x488   :  { %v1349_v1 = vadd.f32 1.0, %v1724_v38 }
 0x48a   :  { %1727 = vrcp.f32 %v1349_v1  ;;  %v1726_v46 = vpop.eup %1725  ;;  %v1361_v15 = vand.u32 2147483648, %v1349_v1  ;;  %v1359_v22 = vand.u32 2147483647, %v1349_v1  ;;  %vm1355_vm15 = vweird.f32 %v1349_v1 }
 0x48b   :  { %v1374_v7 = vmul.f32 %v1726_v46, %v1372_v36  ;;  %vm1379_vm2 = vweird.f32 %v1726_v46  ;;  %v1507_v36 = vrot.slane %v1461_v48, 4 }
 0x48c   :  { %v1362_v29 = vor.u32 1.1754944e-38, %v1361_v15  ;;  %vm1360_vm1 = vcmp.eq.f32.partialorder %v1359_v22, 8.507059e+37  ;;  %vm1380_vm4 = vmor %vm1378_vm3, %vm1379_vm2 }
 0x48d   :  { %v1375_v16 = vsub.f32 1.0, %v1374_v7 }
 0x48f   :  { %v1376_v21 = vmul.f32 %v1726_v46, %v1375_v16 }
 0x490   :  { %v1728_v8 = vpop.eup %1727 }
 0x491   :  { %v1351_v43 = vmul.f32 %v1728_v8, %v1349_v1  ;;  %vm1356_vm14 = vweird.f32 %v1728_v8  ;;  %v1377_v44 = vadd.f32 %v1726_v46, %v1376_v21 }
 0x492   :  { %vm1357_vm0 = vmor %vm1355_vm15, %vm1356_vm14 }
 0x493   :  { %v1352_v20 = vsub.f32 1.0, %v1351_v43  ;;  %v1381_v0 = vsel %vm1380_vm4, %v1726_v46, %v1377_v44 }
 0x494   :  { %v1386_v6 = vsel %vm1383_vm5, %v1385_v41, %v1381_v0 }
 0x495   :  { %v1353_v19 = vmul.f32 %v1728_v8, %v1352_v20  ;;  %v1394_v49 = vsub.f32 1.0, %v1386_v6  ;;  %v1396_v4 = vmul.f32 %v1386_v6, %v2620_v54 }
 0x497   :  { %v1354_v27 = vadd.f32 %v1728_v8, %v1353_v19 }
 0x499   :  { %v1358_v32 = vsel %vm1357_vm0, %v1728_v8, %v1354_v27 }
 0x49a   :  { %v1363_v45 = vsel %vm1360_vm1, %v1362_v29, %v1358_v32 }
 0x49b   :  { %v1389_v37 = vmul.f32 %v1388_v39, %v1363_v45  ;;  %v1600_v39 = vrot.slane %v1578_v25, 2 }
 0x49d   :  { %v1392_v40 = vadd.f32 %v1390_v35, %v1389_v37 }
 0x49f   :  { %1729 = vtanh.f32 %v1392_v40 }
 0x4a5   :  { %v1730_v53 = vpop.eup %1729 }
 0x4a6   :  { %v1395_v51 = vmul.f32 %v1730_v53, %v1394_v49 }
 0x4a8   :  { %v1397_v2 = vadd.f32 %v1396_v4, %v1395_v51 }
 0x4aa   :  { %1657 = vst [vmem:[%s2665_s5 + $0xa] sm:$0x3] %v1397_v2  ;;  %1416 = vmatmul.f32.vlgmr.msrb.gmra.mxu2 %v1397_v2  ;;  %1436 = vmatmul.f32.vlgmr.msrb.gmra.mxu3 %v1397_v2 }
 0x4ab   :  { %1456 = vmatmul.f32.vlgmr.msra.gmra.mxu0 %v1397_v2 }
 0x528   :  { %v1457_v3 = vpop.f32.mrf.mxu0 }
 0x529   :  { %v1505_v24 = vadd.f32 %v2645_v30, %v1457_v3 }
 0x52d   :  { %v1417_v57 = vpop.f32.mrf.mxu2  ;;  %v1437_v12 = vpop.f32.mrf.mxu3 }
 0x52e   :  { %v1462_v13 = vadd.f32 %v1461_v48, %v1417_v57  ;;  %v1485_v14 = vadd.f32 %v1483_v10, %v1437_v12 }
 0x530   :  { %v1658_v55 = vmul.f32 -1.442695, %v1462_v13  ;;  %v1659_v56 = vmul.f32 -1.442695, %v1485_v14  ;;  %v1624_v14 = vrot.slane %v1578_v25, 4 }
 0x532   :  { %1731 = vpow2.f32 %v1658_v55 }
 0x533   :  { %1733 = vpow2.f32 %v1659_v56 }
 0x538   :  { %v1732_v26 = vpop.eup %1731 }
 0x539   :  { %v1734_v52 = vpop.eup %1733  ;;  %v1466_v18 = vadd.f32 1.0, %v1732_v26 }
 0x53a   :  { %v1489_v5 = vadd.f32 1.0, %v1734_v52 }
 0x53b   :  { %1735 = vrcp.f32 %v1466_v18  ;;  %v1478_v61 = vand.u32 2147483648, %v1466_v18  ;;  %v1476_v54 = vand.u32 2147483647, %v1466_v18  ;;  %vm1472_vm7 = vweird.f32 %v1466_v18 }
 0x53c   :  { %1737 = vrcp.f32 %v1489_v5  ;;  %v1501_v38 = vand.u32 2147483648, %v1489_v5  ;;  %vm1495_vm11 = vweird.f32 %v1489_v5  ;;  %v1499_v1 = vand.u32 2147483647, %v1489_v5 }
 0x53d   :  { %v1479_v17 = vor.u32 1.1754944e-38, %v1478_v61  ;;  %vm1477_vm9 = vcmp.eq.f32.partialorder %v1476_v54, 8.507059e+37 }
 0x53e   :  { %v1502_v8 = vor.u32 1.1754944e-38, %v1501_v38  ;;  %vm1500_vm13 = vcmp.eq.f32.partialorder %v1499_v1, 8.507059e+37 }
 0x541   :  { %v1736_v63 = vpop.eup %1735 }
 0x542   :  { %v1738_v62 = vpop.eup %1737  ;;  %v1468_v60 = vmul.f32 %v1736_v63, %v1466_v18  ;;  %vm1473_vm6 = vweird.f32 %v1736_v63 }
 0x543   :  { %v1491_v58 = vmul.f32 %v1738_v62, %v1489_v5  ;;  %vm1474_vm8 = vmor %vm1472_vm7, %vm1473_vm6  ;;  %vm1496_vm10 = vweird.f32 %v1738_v62 }
 0x544   :  { %v1469_v42 = vsub.f32 1.0, %v1468_v60  ;;  %vm1497_vm12 = vmor %vm1495_vm11, %vm1496_vm10 }
 0x545   :  { %v1492_v9 = vsub.f32 1.0, %v1491_v58 }
 0x546   :  { %v1470_v11 = vmul.f32 %v1736_v63, %v1469_v42 }
 0x547   :  { %v1493_v23 = vmul.f32 %v1738_v62, %v1492_v9 }
 0x548   :  { %v1471_v47 = vadd.f32 %v1736_v63, %v1470_v11 }
 0x549   :  { %v1494_v33 = vadd.f32 %v1738_v62, %v1493_v23 }
 0x54a   :  { %v1475_v28 = vsel %vm1474_vm8, %v1736_v63, %v1471_v47 }
 0x54b   :  { %v1480_v31 = vsel %vm1477_vm9, %v1479_v17, %v1475_v28  ;;  %v1498_v7 = vsel %vm1497_vm12, %v1738_v62, %v1494_v33 }
 0x54c   :  { %v1506_v50 = vmul.f32 %v1505_v24, %v1480_v31  ;;  %v1503_v43 = vsel %vm1500_vm13, %v1502_v8, %v1498_v7 }
 0x54d   :  { %v1511_v16 = vsub.f32 1.0, %v1503_v43  ;;  %v1513_v19 = vmul.f32 %v1503_v43, %v1397_v2 }
 0x54e   :  { %v1509_v46 = vadd.f32 %v1507_v36, %v1506_v50 }
 0x550   :  { %1739 = vtanh.f32 %v1509_v46 }
 0x556   :  { %v1740_v20 = vpop.eup %1739 }
 0x557   :  { %v1512_v15 = vmul.f32 %v1740_v20, %v1511_v16 }
 0x559   :  { %v1514_v22 = vadd.f32 %v1513_v19, %v1512_v15 }
 0x55b   :  { %1660 = vst [vmem:[%s2665_s5 + $0xc] sm:$0x3] %v1514_v22  ;;  %1533 = vmatmul.f32.vlgmr.msra.gmra.mxu1 %v1514_v22  ;;  %1553 = vmatmul.f32.vlgmr.msra.gmra.mxu2 %v1514_v22 }
 0x55c   :  { %1573 = vmatmul.f32.vlgmr.msra.gmra.mxu3 %v1514_v22 }
 0x5d8   :  { %v1534_v21 = vpop.f32.mrf.mxu1 }
 0x5d9   :  { %v1579_v27 = vadd.f32 %v1578_v25, %v1534_v21 }
 0x5db   :  { %v1661_v29 = vmul.f32 -1.442695, %v1579_v27 }
 0x5dd   :  { %1741 = vpow2.f32 %v1661_v29 }
 0x5de   :  { %v1554_v32 = vpop.f32.mrf.mxu2 }
 0x5df   :  { %v1602_v44 = vadd.f32 %v1600_v39, %v1554_v32  ;;  %v1574_v4 = vpop.f32.mrf.mxu3 }
 0x5e0   :  { %v1622_v13 = vadd.f32 %v2645_v30, %v1574_v4 }
 0x5e1   :  { %v1662_v45 = vmul.f32 -1.442695, %v1602_v44 }
 0x5e3   :  { %v1742_v34 = vpop.eup %1741  ;;  %1743 = vpow2.f32 %v1662_v45 }
 0x5e4   :  { %v1583_v35 = vadd.f32 1.0, %v1742_v34 }
 0x5e6   :  { %1745 = vrcp.f32 %v1583_v35  ;;  %v1595_v6 = vand.u32 2147483648, %v1583_v35  ;;  %v1593_v53 = vand.u32 2147483647, %v1583_v35  ;;  %vm1589_vm15 = vweird.f32 %v1583_v35 }
 0x5e8   :  { %v1596_v10 = vor.u32 1.1754944e-38, %v1595_v6  ;;  %vm1594_vm1 = vcmp.eq.f32.partialorder %v1593_v53, 8.507059e+37 }
 0x5e9   :  { %v1744_v37 = vpop.eup %1743 }
 0x5ea   :  { %v1606_v59 = vadd.f32 1.0, %v1744_v37 }
 0x5ec   :  { %v1746_v40 = vpop.eup %1745  ;;  %1747 = vrcp.f32 %v1606_v59  ;;  %v1618_v26 = vand.u32 2147483648, %v1606_v59  ;;  %v1616_v18 = vand.u32 2147483647, %v1606_v59  ;;  %vm1612_vm3 = vweird.f32 %v1606_v59 }
 0x5ed   :  { %v1585_v0 = vmul.f32 %v1746_v40, %v1583_v35  ;;  %vm1590_vm14 = vweird.f32 %v1746_v40 }
 0x5ee   :  { %vm1591_vm0 = vmor %vm1589_vm15, %vm1590_vm14  ;;  %v1619_v62 = vor.u32 1.1754944e-38, %v1618_v26  ;;  %vm1617_vm5 = vcmp.eq.f32.partialorder %v1616_v18, 8.507059e+37 }
 0x5ef   :  { %v1586_v41 = vsub.f32 1.0, %v1585_v0 }
 0x5f1   :  { %v1587_v49 = vmul.f32 %v1746_v40, %v1586_v41 }
 0x5f2   :  { %v1748_v51 = vpop.eup %1747 }
 0x5f3   :  { %v1608_v2 = vmul.f32 %v1748_v51, %v1606_v59  ;;  %v1588_v48 = vadd.f32 %v1746_v40, %v1587_v49  ;;  %vm1613_vm2 = vweird.f32 %v1748_v51 }
 0x5f4   :  { %vm1614_vm4 = vmor %vm1612_vm3, %vm1613_vm2 }
 0x5f5   :  { %v1609_v57 = vsub.f32 1.0, %v1608_v2  ;;  %v1592_v12 = vsel %vm1591_vm0, %v1746_v40, %v1588_v48 }
 0x5f6   :  { %v1597_v55 = vsel %vm1594_vm1, %v1596_v10, %v1592_v12 }
 0x5f7   :  { %v1610_v56 = vmul.f32 %v1748_v51, %v1609_v57  ;;  %v1623_v52 = vmul.f32 %v1622_v13, %v1597_v55 }
 0x5f9   :  { %v1611_v5 = vadd.f32 %v1748_v51, %v1610_v56  ;;  %v1626_v63 = vadd.f32 %v1624_v14, %v1623_v52 }
 0x5fb   :  { %v1615_v60 = vsel %vm1614_vm4, %v1748_v51, %v1611_v5  ;;  %1749 = vtanh.f32 %v1626_v63 }
 0x5fc   :  { %v1620_v58 = vsel %vm1617_vm5, %v1619_v62, %v1615_v60 }
 0x5fd   :  { %v1628_v42 = vsub.f32 1.0, %v1620_v58  ;;  %v1630_v30 = vmul.f32 %v1620_v58, %v1514_v22 }
 0x601   :  { %v1750_v61 = vpop.eup %1749 }
 0x602   :  { %v1629_v9 = vmul.f32 %v1750_v61, %v1628_v42 }
 0x604   :  { %v1631_v11 = vadd.f32 %v1630_v30, %v1629_v9 }
 0x606   :  { %1663 = vst [vmem:[%s2665_s5 + $0xe] sm:$0x3] %v1631_v11 }
 0x607   :  { %1634 = vst [vmem:[#allocation2] sm:$0x3] %v1631_v11 }
 0x608   :  { %1639 = vsyncpa [#allocation5], 1 }
 0x609   :  { %1640 = vsyncpa [#allocation7], 1 }

</bundles_post_ra>
